<compile_context>
chip_gen: v6e
topology: v6e:2x2x1
jax: 0.10.0
libtpu: 0.0.40
codegen_flags: <defaults>
</compile_context>

<pallas_src>
import jax
import jax.numpy as jnp
from jax import lax
from jax.experimental import pallas as pl
from jax.experimental.pallas import tpu as pltpu


def _detect_vmem_limit():
    """~75% of physical VMEM: ~96 MiB on v5e/v6e (128 MiB), ~48 MiB on v7x (64 MiB)."""
    cap = 64 * 1024 * 1024
    try:
        info = pltpu.get_tpu_info()
        cap = int(getattr(info, "vmem_capacity_bytes", cap))
    except Exception:
        pass
    return max(32 * 1024 * 1024, min(cap * 3 // 4, 100 * 1024 * 1024))


_VMEM_LIMIT = _detect_vmem_limit()
_W_TILE_BUDGET = _VMEM_LIMIT // 4      # one weight block (Pallas double-buffers it)
_BN_TILE_BUDGET = _VMEM_LIMIT // 8     # one activation block of the BN-apply pass


# ----------------------------------------------------------------------------
# tile-size helpers
# ----------------------------------------------------------------------------
def _pick_cout_tile(cout, cin):
    """Cout tile for the polyphase conv kernel (weight block holds all 16 taps)."""
    if cout <= 128 or cout % 128 != 0:
        return cout
    limit = max(128, _W_TILE_BUDGET // (16 * cin * 2))
    tile = 128
    while tile * 2 <= min(cout, limit) and cout % (tile * 2) == 0:
        tile *= 2
    return tile


def _pick_fc_ctile(c, k):
    """Output-channel tile for the layer-0 per-pixel matmul kernel."""
    if c <= 128 or c % 128 != 0:
        return c
    limit = max(128, _W_TILE_BUDGET // (k * 2))
    tile = 128
    while tile * 2 <= min(c, limit) and c % (tile * 2) == 0:
        tile *= 2
    return tile


def _pick_row_tile(n, c):
    """Largest multiple-of-8 divisor of n whose bf16 (tile, c) block fits the
    per-block budget; full n if it already fits (full blocks are always legal)."""
    limit = max(8, _BN_TILE_BUDGET // max(2 * c, 1))
    if n <= limit:
        return n
    t = (min(n, limit) // 8) * 8
    while t >= 8:
        if n % t == 0:
            return t
        t -= 8
    return n


# ----------------------------------------------------------------------------
# Pallas kernel 1: layer-0 "FC" ConvTranspose on the 1x1 latent, fused with
# BatchNorm statistic partials.
#   x2d: (B, nIn) bf16,  w_pkc: (P, nIn, C) bf16   (P = s0*s0 output pixels)
#   -> y: (P, B, C) bf16,  s/q: (P, 1, C) f32 per-pixel partial sums
# ----------------------------------------------------------------------------
def _fc_kernel(x_ref, w_ref, y_ref, s_ref, q_ref):
    y = jnp.dot(x_ref[...], w_ref[0], preferred_element_type=jnp.float32)
    y_ref[0] = y.astype(y_ref.dtype)
    s_ref[0] = jnp.sum(y, axis=0, keepdims=True)
    q_ref[0] = jnp.sum(y * y, axis=0, keepdims=True)


def fc_convt(x2d, w_pkc):
    B, K = x2d.shape
    P, _, C = w_pkc.shape
    tC = _pick_fc_ctile(C, K)
    n_c = C // tC
    y, s, q = pl.pallas_call(
        _fc_kernel,
        out_shape=(jax.ShapeDtypeStruct((P, B, C), jnp.bfloat16),
                   jax.ShapeDtypeStruct((P, 1, C), jnp.float32),
                   jax.ShapeDtypeStruct((P, 1, C), jnp.float32)),
        grid_spec=pltpu.PrefetchScalarGridSpec(
            num_scalar_prefetch=0,
            grid=(P, n_c),
            in_specs=[pl.BlockSpec((B, K), lambda p, cj: (0, 0)),
                      pl.BlockSpec((1, K, tC), lambda p, cj: (p, 0, cj))],
            out_specs=(pl.BlockSpec((1, B, tC), lambda p, cj: (p, 0, cj)),
                       pl.BlockSpec((1, 1, tC), lambda p, cj: (p, 0, cj)),
                       pl.BlockSpec((1, 1, tC), lambda p, cj: (p, 0, cj)))),
        compiler_params=pltpu.CompilerParams(
            dimension_semantics=("parallel", "parallel"),
            vmem_limit_bytes=_VMEM_LIMIT),
    )(x2d, w_pkc)
    return y, s.reshape(P, C).sum(axis=0), q.reshape(P, C).sum(axis=0)


# ----------------------------------------------------------------------------
# Pallas kernel 2: polyphase ConvTranspose2d(k=4, stride=2, pad=1, bias=False)
# fused with BatchNorm statistic partials.
#   g: (B, L, Cin) bf16        -- zero-padded, row-flattened NHWC image
#   w: (4, 2, 2, Cin, Cout) bf16  -- per-phase 2x2 sub-kernels
#   m: (HWp, Cout) f32         -- lane-dense junk-column mask
#   -> y (wide, phase-major): (B, 4, HWp, Cout) bf16 (junk columns zeroed)
#      s/q: (B, 1, Cout) f32 per-batch-element partial sums over valid pixels
# ----------------------------------------------------------------------------
def _make_convt_kernel(H, Wp, tCout):
    HWp = H * Wp

    def kernel(g_ref, w_ref, m_ref, y_ref, s_ref, q_ref):
        mask = m_ref[...]                                       # (HWp, tCout) f32
        s_acc = jnp.zeros((1, tCout), jnp.float32)
        q_acc = jnp.zeros((1, tCout), jnp.float32)
        for py in range(2):
            for px in range(2):
                acc = jnp.zeros((HWp, tCout), jnp.float32)
                for dy in range(2):
                    for dx in range(2):
                        start = (py + dy) * Wp + (px + dx)      # static offset
                        lhs = g_ref[0, start:start + HWp, :]
                        acc = acc + jnp.dot(lhs, w_ref[2 * py + px, dy, dx],
                                            preferred_element_type=jnp.float32)
                am = acc * mask                                 # zero the junk columns
                y_ref[0, 2 * py + px] = am.astype(y_ref.dtype)
                s_acc = s_acc + jnp.sum(am, axis=0, keepdims=True)
                q_acc = q_acc + jnp.sum(am * am, axis=0, keepdims=True)
        s_ref[0] = s_acc
        q_ref[0] = q_acc

    return kernel


def conv_transpose_s2(x_nhwc, w_phase):
    """Returns (wide phase-major bf16 result, per-channel sum, per-channel sumsq)."""
    B, H, W, Cin = x_nhwc.shape
    Cout = w_phase.shape[-1]
    Wp = W + 2
    HWp = H * Wp
    L = (H + 3) * Wp
    # pad 1 top / 2 bottom / 1 left / 1 right, flatten rows (reshape is free)
    xp = jnp.pad(x_nhwc, ((0, 0), (1, 2), (1, 1), (0, 0)))
    g = xp.reshape(B, L, Cin)
    # lane-dense validity mask ("wide row" trick: 2 junk columns per padded row)
    colmask = (jnp.arange(Wp, dtype=jnp.int32) < W).astype(jnp.float32)
    mask = jnp.tile(colmask[None, :, None], (H, 1, Cout)).reshape(HWp, Cout)

    tCout = _pick_cout_tile(Cout, Cin)
    n_co = Cout // tCout
    kernel = _make_convt_kernel(H, Wp, tCout)
    y, s, q = pl.pallas_call(
        kernel,
        out_shape=(jax.ShapeDtypeStruct((B, 4, HWp, Cout), jnp.bfloat16),
                   jax.ShapeDtypeStruct((B, 1, Cout), jnp.float32),
                   jax.ShapeDtypeStruct((B, 1, Cout), jnp.float32)),
        grid_spec=pltpu.PrefetchScalarGridSpec(
            num_scalar_prefetch=0,
            grid=(n_co, B),                       # cout outer: weight slab stays put
            in_specs=[
                pl.BlockSpec((1, L, Cin), lambda co, b: (b, 0, 0)),
                pl.BlockSpec((4, 2, 2, Cin, tCout),
                             lambda co, b: (0, 0, 0, 0, co)),
                pl.BlockSpec((HWp, tCout), lambda co, b: (0, co)),
            ],
            out_specs=(
                pl.BlockSpec((1, 4, HWp, tCout), lambda co, b: (b, 0, 0, co)),
                pl.BlockSpec((1, 1, tCout), lambda co, b: (b, 0, co)),
                pl.BlockSpec((1, 1, tCout), lambda co, b: (b, 0, co)),
            )),
        compiler_params=pltpu.CompilerParams(
            dimension_semantics=("parallel", "parallel"),
            vmem_limit_bytes=_VMEM_LIMIT),
    )(g, w_phase, mask)
    return y, s.reshape(B, Cout).sum(axis=0), q.reshape(B, Cout).sum(axis=0)


_KIDX = ((3, 1), (2, 0))   # [output parity][tap] -> kernel row/col index


def _phase_weights(w):
    """PyTorch ConvTranspose2d weight (Cin, Cout, 4, 4) -> (4, 2, 2, Cin, Cout)
    polyphase sub-kernels (phase = 2*py + px)."""
    Cin, Cout = w.shape[0], w.shape[1]
    wt = jnp.transpose(w, (2, 3, 0, 1))                      # (ky, kx, Cin, Cout)
    rows = jnp.array(_KIDX, dtype=jnp.int32)                 # (2, 2)
    wp = wt[rows[:, None, :, None], rows[None, :, None, :]]  # (2,2,2,2,Cin,Cout)
    return wp.reshape(4, 2, 2, Cin, Cout)


def _interleave_phases(wide, H, W):
    """(B, 4, H*(W+2), C) phase-major wide -> (B, 2H, 2W, C)."""
    B, _, _, C = wide.shape
    Wp = W + 2
    y = wide.reshape(B, 2, 2, H, Wp, C)[:, :, :, :, :W, :]
    y = jnp.transpose(y, (0, 3, 1, 4, 2, 5))                 # (B, H, 2, W, 2, C)
    return y.reshape(B, 2 * H, 2 * W, C)


# ----------------------------------------------------------------------------
# Pallas kernel 3: BatchNorm(batch stats) affine + ReLU apply pass.
# Stats come pre-reduced from the conv / FC kernels; here we only apply
# y = max(x*a + b, 0) tile by tile (channels < 128 folded into the lane dim).
# ----------------------------------------------------------------------------
def _bn_affine(ssum, qsum, gamma, beta, count, eps=1e-5):
    inv_n = 1.0 / float(count)
    mean = ssum * inv_n
    var = jnp.maximum(qsum * inv_n - mean * mean, 0.0)       # biased var (training BN)
    inv = lax.rsqrt(var + eps)
    a = gamma.astype(jnp.float32) * inv
    b = beta.astype(jnp.float32) - mean * a
    return a, b


def _bn_apply_kernel(x_ref, a_ref, b_ref, o_ref):
    y = x_ref[...].astype(jnp.float32) * a_ref[...] + b_ref[...]
    o_ref[...] = jnp.maximum(y, 0.0).astype(o_ref.dtype)


def bn_relu_apply(x2d, a, b, out_dtype=jnp.bfloat16):
    N, C = x2d.shape
    # lane-dense folding: pack k = 128//C row-groups into the lane dimension
    k = 1
    if C < 128 and 128 % C == 0:
        kk = 128 // C
        if N % (8 * kk) == 0:
            k = kk
    Nf, Cf = N // k, C * k
    xf = x2d.reshape(Nf, Cf)
    af = jnp.tile(a.reshape(1, C).astype(jnp.float32), (1, k))
    bf = jnp.tile(b.reshape(1, C).astype(jnp.float32), (1, k))
    tN = _pick_row_tile(Nf, Cf)
    yf = pl.pallas_call(
        _bn_apply_kernel,
        out_shape=jax.ShapeDtypeStruct((Nf, Cf), out_dtype),
        grid_spec=pltpu.PrefetchScalarGridSpec(
            num_scalar_prefetch=0,
            grid=(Nf // tN,),
            in_specs=[pl.BlockSpec((tN, Cf), lambda i: (i, 0)),
                      pl.BlockSpec((1, Cf), lambda i: (0, 0)),
                      pl.BlockSpec((1, Cf), lambda i: (0, 0))],
            out_specs=pl.BlockSpec((tN, Cf), lambda i: (i, 0))),
        compiler_params=pltpu.CompilerParams(
            dimension_semantics=("parallel",),
            vmem_limit_bytes=_VMEM_LIMIT),
    )(xf, af, bf)
    return yf.reshape(N, C)


# ----------------------------------------------------------------------------
# _dcDecoder parameters + forward (NCHW in / NCHW out, like the PyTorch module)
# ----------------------------------------------------------------------------
def init_decoder_params(key, nIn, nOut, nf, nLayer, sizeX):
    s0 = sizeX // (2 ** nLayer)
    c = nf * 2 ** (nLayer - 1)
    keys = iter(jax.random.split(key, 2 * (nLayer + 1)))
    layers = []
    # FC_{c}x{s0}x{s0}: ConvTranspose2d(nIn, c, s0, stride=1, pad=0, bias=False)
    w = 0.02 * jax.random.normal(next(keys), (nIn, c, s0, s0), jnp.float32)
    gamma = 1.0 + 0.02 * jax.random.normal(next(keys), (c,), jnp.float32)
    layers.append(dict(w=w, gamma=gamma, beta=jnp.zeros((c,), jnp.float32)))
    for _ in range(1, nLayer):
        w = 0.02 * jax.random.normal(next(keys), (c, c // 2, 4, 4), jnp.float32)
        gamma = 1.0 + 0.02 * jax.random.normal(next(keys), (c // 2,), jnp.float32)
        layers.append(dict(w=w, gamma=gamma, beta=jnp.zeros((c // 2,), jnp.float32)))
        c //= 2
    w = 0.02 * jax.random.normal(next(keys), (c, nOut, 4, 4), jnp.float32)
    layers.append(dict(w=w, gamma=None, beta=None))
    return layers


def dc_decoder_forward(x_nchw, params):
    B = x_nchw.shape[0]
    p0 = params[0]
    nIn, c0, s0, _ = p0["w"].shape
    # DCGAN decoder contract: 1x1 latent input ("FC" first layer)
    assert x_nchw.shape[1] == nIn and x_nchw.shape[2] == 1 and x_nchw.shape[3] == 1
    P = s0 * s0

    # ---- layer 0: ConvTranspose(nIn, c, s0) on 1x1 latent (+ fused BN stats)
    x2d = x_nchw.reshape(B, nIn).astype(jnp.bfloat16)
    w0 = jnp.transpose(p0["w"], (2, 3, 0, 1)).reshape(P, nIn, c0).astype(jnp.bfloat16)
    y0, ssum, qsum = fc_convt(x2d, w0)                         # (P, B, c0) bf16
    a, b = _bn_affine(ssum, qsum, p0["gamma"], p0["beta"], count=B * P)
    y0 = bn_relu_apply(y0.reshape(P * B, c0), a, b)            # bf16
    x = jnp.transpose(y0.reshape(P, B, c0), (1, 0, 2)).reshape(B, s0, s0, c0)

    # ---- stride-2 ConvTranspose layers (polyphase, BN stats fused) ----------
    for p in params[1:]:
        H, W = x.shape[1], x.shape[2]
        Cout = p["w"].shape[1]
        wph = _phase_weights(p["w"]).astype(jnp.bfloat16)
        wide, ssum, qsum = conv_transpose_s2(x, wph)           # (B,4,H*(W+2),Cout) bf16
        if p["gamma"] is not None:
            a, b = _bn_affine(ssum, qsum, p["gamma"], p["beta"],
                              count=B * (2 * H) * (2 * W))
            flat = bn_relu_apply(wide.reshape(B * 4 * H * (W + 2), Cout), a, b)
            wide = flat.reshape(B, 4, H * (W + 2), Cout)
        x = _interleave_phases(wide, H, W)                     # (B, 2H, 2W, Cout)

    return jnp.transpose(x, (0, 3, 1, 2)).astype(jnp.float32)  # NHWC -> NCHW


# ----------------------------------------------------------------------------
# Plain-JAX reference (lax conv + jnp BN, f32 HIGHEST) for correctness
# ----------------------------------------------------------------------------
def _ref_forward(x_nchw, params):
    x = jnp.transpose(x_nchw, (0, 2, 3, 1)).astype(jnp.float32)
    for li, p in enumerate(params):
        K = p["w"].shape[2]
        s, pad = (1, 0) if li == 0 else (2, 1)
        q = K - 1 - pad
        xp = lax.pad(x, jnp.float32(0),
                     [(0, 0, 0), (q, q, s - 1), (q, q, s - 1), (0, 0, 0)])
        wf = jnp.flip(p["w"], axis=(2, 3)).transpose(2, 3, 0, 1)
        x = lax.conv_general_dilated(
            xp, wf, (1, 1), "VALID",
            dimension_numbers=("NHWC", "HWIO", "NHWC"),
            precision=lax.Precision.HIGHEST)
        if p["gamma"] is not None:
            mean = x.mean(axis=(0, 1, 2), keepdims=True)
            var = ((x - mean) ** 2).mean(axis=(0, 1, 2), keepdims=True)
            x = (x - mean) * lax.rsqrt(var + 1e-5) * p["gamma"] + p["beta"]
            x = jnp.maximum(x, 0.0)
    return jnp.transpose(x, (0, 3, 1, 2))


if __name__ == "__main__":
    # small config consistent with the module: nIn=32, nOut=3, nf=16, nLayer=2, sizeX=16
    B, nIn, nOut, nf, nLayer, sizeX = 2, 32, 3, 16, 2, 16
    key = jax.random.PRNGKey(0)
    kx, kp = jax.random.split(key)
    params = init_decoder_params(kp, nIn, nOut, nf, nLayer, sizeX)
    x = jax.random.normal(kx, (B, nIn, 1, 1), jnp.float32)

    fwd = jax.jit(dc_decoder_forward)
    out = jax.block_until_ready(fwd(x, params))
    assert out.shape == (B, nOut, sizeX, sizeX), out.shape

    ref = jax.block_until_ready(_ref_forward(x, params))
    err = float(jnp.max(jnp.abs(out - ref)))
    scale = float(jnp.max(jnp.abs(ref))) + 1e-6
    assert err <= 5e-2 * scale + 1e-3, (err, scale)

    print("KERNEL_OK")
</pallas_src>

<mosaic_0001>
module attributes {stable_mosaic.version = 11 : i64} {
  func.func @_fc_kernel(%arg0: i32, %arg1: i32, %arg2: memref<2x32xbf16, #tpu.memory_space<vmem>>, %arg3: memref<1x32x32xbf16, #tpu.memory_space<vmem>>, %arg4: memref<1x2x32xbf16, #tpu.memory_space<vmem>>, %arg5: memref<1x1x32xf32, #tpu.memory_space<vmem>>, %arg6: memref<1x1x32xf32, #tpu.memory_space<vmem>>) attributes {dimension_semantics = [#tpu.dimension_semantics<parallel>, #tpu.dimension_semantics<parallel>], iteration_bounds = array<i64: 16, 1>, scalar_prefetch = 0 : i64, scratch_operands = 0 : i64, tpu.core_type = #tpu.core_type<tc>, window_params = [{pipeline_mode = #tpu.pipeline_mode<synchronous>, transform_indices = @transform_0, window_bounds = array<i64: 2, 32>}, {transform_indices = @transform_1, window_bounds = array<i64: 1, 32, 32>}, {transform_indices = @transform_2, window_bounds = array<i64: 1, 2, 32>}, {transform_indices = @transform_3, window_bounds = array<i64: 1, 1, 32>}, {transform_indices = @transform_4, window_bounds = array<i64: 1, 1, 32>}]} {
    %c0 = arith.constant 0 : index
    %c0_0 = arith.constant 0 : index
    %0 = vector.load %arg2[%c0, %c0_0] : memref<2x32xbf16, #tpu.memory_space<vmem>>, vector<2x32xbf16>
    %c0_1 = arith.constant 0 : index
    %c0_2 = arith.constant 0 : index
    %c0_3 = arith.constant 0 : index
    %1 = vector.load %arg3[%c0_1, %c0_2, %c0_3] : memref<1x32x32xbf16, #tpu.memory_space<vmem>>, vector<1x32x32xbf16>
    %2 = vector.shape_cast %1 : vector<1x32x32xbf16> to vector<32x32xbf16>
    %cst = arith.constant dense<0.000000e+00> : vector<2x32xf32>
    %3 = tpu.matmul %0, %2, %cst {dimension_numbers = #tpu.dot_dimension_numbers<[1], [0], [0], [1], [0, 0, 1, 1], [], []>} : vector<2x32xbf16>, vector<32x32xbf16>, vector<2x32xf32> -> vector<2x32xf32>
    %4 = arith.truncf %3 : vector<2x32xf32> to vector<2x32xbf16>
    %c0_4 = arith.constant 0 : index
    %c0_5 = arith.constant 0 : index
    %c0_6 = arith.constant 0 : index
    %5 = vector.load %arg4[%c0_4, %c0_5, %c0_6] : memref<1x2x32xbf16, #tpu.memory_space<vmem>>, vector<1x2x32xbf16>
    %6 = vector.shape_cast %5 : vector<1x2x32xbf16> to vector<2x32xbf16>
    %7 = vector.shape_cast %4 : vector<2x32xbf16> to vector<1x2x32xbf16>
    tpu.vector_store %arg4[%c0_4, %c0_5, %c0_6], %7 {strides = array<i32>} : memref<1x2x32xbf16, #tpu.memory_space<vmem>>, vector<1x2x32xbf16>,
    %cst_7 = arith.constant dense<0.000000e+00> : vector<32xf32>
    %8 = vector.multi_reduction <add>, %3, %cst_7 [0] : vector<2x32xf32> to vector<32xf32>
    %9 = vector.shape_cast %8 : vector<32xf32> to vector<1x32xf32>
    %c0_8 = arith.constant 0 : index
    %c0_9 = arith.constant 0 : index
    %c0_10 = arith.constant 0 : index
    %10 = vector.load %arg5[%c0_8, %c0_9, %c0_10] : memref<1x1x32xf32, #tpu.memory_space<vmem>>, vector<1x1x32xf32>
    %11 = vector.shape_cast %10 : vector<1x1x32xf32> to vector<1x32xf32>
    %12 = vector.shape_cast %9 : vector<1x32xf32> to vector<1x1x32xf32>
    tpu.vector_store %arg5[%c0_8, %c0_9, %c0_10], %12 {strides = array<i32>} : memref<1x1x32xf32, #tpu.memory_space<vmem>>, vector<1x1x32xf32>,
    %13 = arith.mulf %3, %3 : vector<2x32xf32>
    %cst_11 = arith.constant dense<0.000000e+00> : vector<32xf32>
    %14 = vector.multi_reduction <add>, %13, %cst_11 [0] : vector<2x32xf32> to vector<32xf32>
    %15 = vector.shape_cast %14 : vector<32xf32> to vector<1x32xf32>
    %c0_12 = arith.constant 0 : index
    %c0_13 = arith.constant 0 : index
    %c0_14 = arith.constant 0 : index
    %16 = vector.load %arg6[%c0_12, %c0_13, %c0_14] : memref<1x1x32xf32, #tpu.memory_space<vmem>>, vector<1x1x32xf32>
    %17 = vector.shape_cast %16 : vector<1x1x32xf32> to vector<1x32xf32>
    %18 = vector.shape_cast %15 : vector<1x32xf32> to vector<1x1x32xf32>
    tpu.vector_store %arg6[%c0_12, %c0_13, %c0_14], %18 {strides = array<i32>} : memref<1x1x32xf32, #tpu.memory_space<vmem>>, vector<1x1x32xf32>,
    return
  }
  func.func @transform_0(%arg0: i32, %arg1: i32) -> (i32, i32) {
    %c0_i32 = arith.constant 0 : i32
    %c0_i32_0 = arith.constant 0 : i32
    %c0_i32_1 = arith.constant 0 : i32
    return %c0_i32, %c0_i32_0 : i32, i32
  }
  func.func @transform_1(%arg0: i32, %arg1: i32) -> (i32, i32, i32) {
    %c0_i32 = arith.constant 0 : i32
    %c0_i32_0 = arith.constant 0 : i32
    return %arg0, %c0_i32, %arg1 : i32, i32, i32
  }
  func.func @transform_2(%arg0: i32, %arg1: i32) -> (i32, i32, i32) {
    %c0_i32 = arith.constant 0 : i32
    %c0_i32_0 = arith.constant 0 : i32
    return %arg0, %c0_i32, %arg1 : i32, i32, i32
  }
  func.func @transform_3(%arg0: i32, %arg1: i32) -> (i32, i32, i32) {
    %c0_i32 = arith.constant 0 : i32
    %c0_i32_0 = arith.constant 0 : i32
    return %arg0, %c0_i32, %arg1 : i32, i32, i32
  }
  func.func @transform_4(%arg0: i32, %arg1: i32) -> (i32, i32, i32) {
    %c0_i32 = arith.constant 0 : i32
    %c0_i32_0 = arith.constant 0 : i32
    return %arg0, %c0_i32, %arg1 : i32, i32, i32
  }
}

module attributes {stable_mosaic.version = 11 : i64} {
  func.func @_bn_apply_kernel(%arg0: i32, %arg1: memref<8x128xbf16, #tpu.memory_space<vmem>>, %arg2: memref<1x128xf32, #tpu.memory_space<vmem>>, %arg3: memref<1x128xf32, #tpu.memory_space<vmem>>, %arg4: memref<8x128xbf16, #tpu.memory_space<vmem>>) attributes {dimension_semantics = [#tpu.dimension_semantics<parallel>], iteration_bounds = array<i64: 1>, scalar_prefetch = 0 : i64, scratch_operands = 0 : i64, tpu.core_type = #tpu.core_type<tc>, window_params = [{transform_indices = @transform_0, window_bounds = array<i64: 8, 128>}, {pipeline_mode = #tpu.pipeline_mode<synchronous>, transform_indices = @transform_1, window_bounds = array<i64: 1, 128>}, {pipeline_mode = #tpu.pipeline_mode<synchronous>, transform_indices = @transform_2, window_bounds = array<i64: 1, 128>}, {transform_indices = @transform_3, window_bounds = array<i64: 8, 128>}]} {
    %c0 = arith.constant 0 : index
    %c0_0 = arith.constant 0 : index
    %0 = vector.load %arg1[%c0, %c0_0] : memref<8x128xbf16, #tpu.memory_space<vmem>>, vector<8x128xbf16>
    %1 = arith.extf %0 : vector<8x128xbf16> to vector<8x128xf32>
    %c0_1 = arith.constant 0 : index
    %c0_2 = arith.constant 0 : index
    %2 = vector.load %arg2[%c0_1, %c0_2] : memref<1x128xf32, #tpu.memory_space<vmem>>, vector<1x128xf32>
    %3 = vector.broadcast %2 : vector<1x128xf32> to vector<8x128xf32>
    %4 = arith.mulf %1, %3 : vector<8x128xf32>
    %c0_3 = arith.constant 0 : index
    %c0_4 = arith.constant 0 : index
    %5 = vector.load %arg3[%c0_3, %c0_4] : memref<1x128xf32, #tpu.memory_space<vmem>>, vector<1x128xf32>
    %6 = vector.broadcast %5 : vector<1x128xf32> to vector<8x128xf32>
    %7 = arith.addf %4, %6 : vector<8x128xf32>
    %cst = arith.constant 0.000000e+00 : f32
    %8 = vector.broadcast %cst : f32 to vector<8x128xf32>
    %9 = arith.maximumf %7, %8 : vector<8x128xf32>
    %10 = arith.truncf %9 : vector<8x128xf32> to vector<8x128xbf16>
    %c0_5 = arith.constant 0 : index
    %c0_6 = arith.constant 0 : index
    %11 = vector.load %arg4[%c0_5, %c0_6] : memref<8x128xbf16, #tpu.memory_space<vmem>>, vector<8x128xbf16>
    tpu.vector_store %arg4[%c0_5, %c0_6], %10 {strides = array<i32>} : memref<8x128xbf16, #tpu.memory_space<vmem>>, vector<8x128xbf16>,
    return
  }
  func.func @transform_0(%arg0: i32) -> (i32, i32) {
    %c0_i32 = arith.constant 0 : i32
    %c0_i32_0 = arith.constant 0 : i32
    return %arg0, %c0_i32 : i32, i32
  }
  func.func @transform_1(%arg0: i32) -> (i32, i32) {
    %c0_i32 = arith.constant 0 : i32
    %c0_i32_0 = arith.constant 0 : i32
    %c0_i32_1 = arith.constant 0 : i32
    return %c0_i32, %c0_i32_0 : i32, i32
  }
  func.func @transform_2(%arg0: i32) -> (i32, i32) {
    %c0_i32 = arith.constant 0 : i32
    %c0_i32_0 = arith.constant 0 : i32
    %c0_i32_1 = arith.constant 0 : i32
    return %c0_i32, %c0_i32_0 : i32, i32
  }
  func.func @transform_3(%arg0: i32) -> (i32, i32) {
    %c0_i32 = arith.constant 0 : i32
    %c0_i32_0 = arith.constant 0 : i32
    return %arg0, %c0_i32 : i32, i32
  }
}

module attributes {stable_mosaic.version = 11 : i64} {
  func.func @_bn_apply_kernel(%arg0: i32, %arg1: memref<24x128xbf16, #tpu.memory_space<vmem>>, %arg2: memref<1x128xf32, #tpu.memory_space<vmem>>, %arg3: memref<1x128xf32, #tpu.memory_space<vmem>>, %arg4: memref<24x128xbf16, #tpu.memory_space<vmem>>) attributes {dimension_semantics = [#tpu.dimension_semantics<parallel>], iteration_bounds = array<i64: 1>, scalar_prefetch = 0 : i64, scratch_operands = 0 : i64, tpu.core_type = #tpu.core_type<tc>, window_params = [{transform_indices = @transform_0, window_bounds = array<i64: 24, 128>}, {pipeline_mode = #tpu.pipeline_mode<synchronous>, transform_indices = @transform_1, window_bounds = array<i64: 1, 128>}, {pipeline_mode = #tpu.pipeline_mode<synchronous>, transform_indices = @transform_2, window_bounds = array<i64: 1, 128>}, {transform_indices = @transform_3, window_bounds = array<i64: 24, 128>}]} {
    %c0 = arith.constant 0 : index
    %c0_0 = arith.constant 0 : index
    %0 = vector.load %arg1[%c0, %c0_0] : memref<24x128xbf16, #tpu.memory_space<vmem>>, vector<24x128xbf16>
    %1 = arith.extf %0 : vector<24x128xbf16> to vector<24x128xf32>
    %c0_1 = arith.constant 0 : index
    %c0_2 = arith.constant 0 : index
    %2 = vector.load %arg2[%c0_1, %c0_2] : memref<1x128xf32, #tpu.memory_space<vmem>>, vector<1x128xf32>
    %3 = vector.broadcast %2 : vector<1x128xf32> to vector<24x128xf32>
    %4 = arith.mulf %1, %3 : vector<24x128xf32>
    %c0_3 = arith.constant 0 : index
    %c0_4 = arith.constant 0 : index
    %5 = vector.load %arg3[%c0_3, %c0_4] : memref<1x128xf32, #tpu.memory_space<vmem>>, vector<1x128xf32>
    %6 = vector.broadcast %5 : vector<1x128xf32> to vector<24x128xf32>
    %7 = arith.addf %4, %6 : vector<24x128xf32>
    %cst = arith.constant 0.000000e+00 : f32
    %8 = vector.broadcast %cst : f32 to vector<24x128xf32>
    %9 = arith.maximumf %7, %8 : vector<24x128xf32>
    %10 = arith.truncf %9 : vector<24x128xf32> to vector<24x128xbf16>
    %c0_5 = arith.constant 0 : index
    %c0_6 = arith.constant 0 : index
    %11 = vector.load %arg4[%c0_5, %c0_6] : memref<24x128xbf16, #tpu.memory_space<vmem>>, vector<24x128xbf16>
    tpu.vector_store %arg4[%c0_5, %c0_6], %10 {strides = array<i32>} : memref<24x128xbf16, #tpu.memory_space<vmem>>, vector<24x128xbf16>,
    return
  }
  func.func @transform_0(%arg0: i32) -> (i32, i32) {
    %c0_i32 = arith.constant 0 : i32
    %c0_i32_0 = arith.constant 0 : i32
    return %arg0, %c0_i32 : i32, i32
  }
  func.func @transform_1(%arg0: i32) -> (i32, i32) {
    %c0_i32 = arith.constant 0 : i32
    %c0_i32_0 = arith.constant 0 : i32
    %c0_i32_1 = arith.constant 0 : i32
    return %c0_i32, %c0_i32_0 : i32, i32
  }
  func.func @transform_2(%arg0: i32) -> (i32, i32) {
    %c0_i32 = arith.constant 0 : i32
    %c0_i32_0 = arith.constant 0 : i32
    %c0_i32_1 = arith.constant 0 : i32
    return %c0_i32, %c0_i32_0 : i32, i32
  }
  func.func @transform_3(%arg0: i32) -> (i32, i32) {
    %c0_i32 = arith.constant 0 : i32
    %c0_i32_0 = arith.constant 0 : i32
    return %arg0, %c0_i32 : i32, i32
  }
}

module attributes {stable_mosaic.version = 11 : i64} {
  func.func @kernel(%arg0: i32, %arg1: i32, %arg2: memref<1x42x32xbf16, #tpu.memory_space<vmem>>, %arg3: memref<4x2x2x32x16xbf16, #tpu.memory_space<vmem>>, %arg4: memref<24x16xf32, #tpu.memory_space<vmem>>, %arg5: memref<1x4x24x16xbf16, #tpu.memory_space<vmem>>, %arg6: memref<1x1x16xf32, #tpu.memory_space<vmem>>, %arg7: memref<1x1x16xf32, #tpu.memory_space<vmem>>) attributes {dimension_semantics = [#tpu.dimension_semantics<parallel>, #tpu.dimension_semantics<parallel>], iteration_bounds = array<i64: 1, 2>, scalar_prefetch = 0 : i64, scratch_operands = 0 : i64, tpu.core_type = #tpu.core_type<tc>, window_params = [{transform_indices = @transform_0, window_bounds = array<i64: 1, 42, 32>}, {transform_indices = @transform_1, window_bounds = array<i64: 4, 2, 2, 32, 16>}, {transform_indices = @transform_2, window_bounds = array<i64: 24, 16>}, {transform_indices = @transform_3, window_bounds = array<i64: 1, 4, 24, 16>}, {transform_indices = @transform_4, window_bounds = array<i64: 1, 1, 16>}, {transform_indices = @transform_5, window_bounds = array<i64: 1, 1, 16>}]} {
    %c0 = arith.constant 0 : index
    %c0_0 = arith.constant 0 : index
    %0 = vector.load %arg4[%c0, %c0_0] : memref<24x16xf32, #tpu.memory_space<vmem>>, vector<24x16xf32>
    %cst = arith.constant 0.000000e+00 : f32
    %1 = vector.broadcast %cst : f32 to vector<1x16xf32>
    %cst_1 = arith.constant 0.000000e+00 : f32
    %2 = vector.broadcast %cst_1 : f32 to vector<1x16xf32>
    %cst_2 = arith.constant 0.000000e+00 : f32
    %3 = vector.broadcast %cst_2 : f32 to vector<24x16xf32>
    %c0_3 = arith.constant 0 : index
    %c0_4 = arith.constant 0 : index
    %c0_5 = arith.constant 0 : index
    %4 = vector.load %arg2[%c0_3, %c0_4, %c0_5] : memref<1x42x32xbf16, #tpu.memory_space<vmem>>, vector<1x24x32xbf16>
    %5 = vector.shape_cast %4 : vector<1x24x32xbf16> to vector<24x32xbf16>
    %c0_6 = arith.constant 0 : index
    %c0_7 = arith.constant 0 : index
    %c0_8 = arith.constant 0 : index
    %c0_9 = arith.constant 0 : index
    %c0_10 = arith.constant 0 : index
    %6 = vector.load %arg3[%c0_6, %c0_7, %c0_8, %c0_9, %c0_10] : memref<4x2x2x32x16xbf16, #tpu.memory_space<vmem>>, vector<1x1x1x32x16xbf16>
    %7 = vector.shape_cast %6 : vector<1x1x1x32x16xbf16> to vector<32x16xbf16>
    %cst_11 = arith.constant dense<0.000000e+00> : vector<24x16xf32>
    %8 = tpu.matmul %5, %7, %cst_11 {dimension_numbers = #tpu.dot_dimension_numbers<[1], [0], [0], [1], [0, 0, 1, 1], [], []>} : vector<24x32xbf16>, vector<32x16xbf16>, vector<24x16xf32> -> vector<24x16xf32>
    %9 = arith.addf %3, %8 : vector<24x16xf32>
    %c0_12 = arith.constant 0 : index
    %c1 = arith.constant 1 : index
    %c0_13 = arith.constant 0 : index
    %10 = vector.load %arg2[%c0_12, %c1, %c0_13] : memref<1x42x32xbf16, #tpu.memory_space<vmem>>, vector<1x24x32xbf16>
    %11 = vector.shape_cast %10 : vector<1x24x32xbf16> to vector<24x32xbf16>
    %c0_14 = arith.constant 0 : index
    %c0_15 = arith.constant 0 : index
    %c1_16 = arith.constant 1 : index
    %c0_17 = arith.constant 0 : index
    %c0_18 = arith.constant 0 : index
    %12 = vector.load %arg3[%c0_14, %c0_15, %c1_16, %c0_17, %c0_18] : memref<4x2x2x32x16xbf16, #tpu.memory_space<vmem>>, vector<1x1x1x32x16xbf16>
    %13 = vector.shape_cast %12 : vector<1x1x1x32x16xbf16> to vector<32x16xbf16>
    %cst_19 = arith.constant dense<0.000000e+00> : vector<24x16xf32>
    %14 = tpu.matmul %11, %13, %cst_19 {dimension_numbers = #tpu.dot_dimension_numbers<[1], [0], [0], [1], [0, 0, 1, 1], [], []>} : vector<24x32xbf16>, vector<32x16xbf16>, vector<24x16xf32> -> vector<24x16xf32>
    %15 = arith.addf %9, %14 : vector<24x16xf32>
    %c0_20 = arith.constant 0 : index
    %c6 = arith.constant 6 : index
    %c0_21 = arith.constant 0 : index
    %16 = vector.load %arg2[%c0_20, %c6, %c0_21] : memref<1x42x32xbf16, #tpu.memory_space<vmem>>, vector<1x24x32xbf16>
    %17 = vector.shape_cast %16 : vector<1x24x32xbf16> to vector<24x32xbf16>
    %c0_22 = arith.constant 0 : index
    %c1_23 = arith.constant 1 : index
    %c0_24 = arith.constant 0 : index
    %c0_25 = arith.constant 0 : index
    %c0_26 = arith.constant 0 : index
    %18 = vector.load %arg3[%c0_22, %c1_23, %c0_24, %c0_25, %c0_26] : memref<4x2x2x32x16xbf16, #tpu.memory_space<vmem>>, vector<1x1x1x32x16xbf16>
    %19 = vector.shape_cast %18 : vector<1x1x1x32x16xbf16> to vector<32x16xbf16>
    %cst_27 = arith.constant dense<0.000000e+00> : vector<24x16xf32>
    %20 = tpu.matmul %17, %19, %cst_27 {dimension_numbers = #tpu.dot_dimension_numbers<[1], [0], [0], [1], [0, 0, 1, 1], [], []>} : vector<24x32xbf16>, vector<32x16xbf16>, vector<24x16xf32> -> vector<24x16xf32>
    %21 = arith.addf %15, %20 : vector<24x16xf32>
    %c0_28 = arith.constant 0 : index
    %c7 = arith.constant 7 : index
    %c0_29 = arith.constant 0 : index
    %22 = vector.load %arg2[%c0_28, %c7, %c0_29] : memref<1x42x32xbf16, #tpu.memory_space<vmem>>, vector<1x24x32xbf16>
    %23 = vector.shape_cast %22 : vector<1x24x32xbf16> to vector<24x32xbf16>
    %c0_30 = arith.constant 0 : index
    %c1_31 = arith.constant 1 : index
    %c1_32 = arith.constant 1 : index
    %c0_33 = arith.constant 0 : index
    %c0_34 = arith.constant 0 : index
    %24 = vector.load %arg3[%c0_30, %c1_31, %c1_32, %c0_33, %c0_34] : memref<4x2x2x32x16xbf16, #tpu.memory_space<vmem>>, vector<1x1x1x32x16xbf16>
    %25 = vector.shape_cast %24 : vector<1x1x1x32x16xbf16> to vector<32x16xbf16>
    %cst_35 = arith.constant dense<0.000000e+00> : vector<24x16xf32>
    %26 = tpu.matmul %23, %25, %cst_35 {dimension_numbers = #tpu.dot_dimension_numbers<[1], [0], [0], [1], [0, 0, 1, 1], [], []>} : vector<24x32xbf16>, vector<32x16xbf16>, vector<24x16xf32> -> vector<24x16xf32>
    %27 = arith.addf %21, %26 : vector<24x16xf32>
    %28 = arith.mulf %27, %0 : vector<24x16xf32>
    %29 = arith.truncf %28 : vector<24x16xf32> to vector<24x16xbf16>
    %c0_36 = arith.constant 0 : index
    %c0_37 = arith.constant 0 : index
    %c0_38 = arith.constant 0 : index
    %c0_39 = arith.constant 0 : index
    %30 = vector.load %arg5[%c0_36, %c0_37, %c0_38, %c0_39] : memref<1x4x24x16xbf16, #tpu.memory_space<vmem>>, vector<1x1x24x16xbf16>
    %31 = vector.shape_cast %30 : vector<1x1x24x16xbf16> to vector<24x16xbf16>
    %32 = vector.shape_cast %29 : vector<24x16xbf16> to vector<1x1x24x16xbf16>
    tpu.vector_store %arg5[%c0_36, %c0_37, %c0_38, %c0_39], %32 {strides = array<i32>} : memref<1x4x24x16xbf16, #tpu.memory_space<vmem>>, vector<1x1x24x16xbf16>,
    %cst_40 = arith.constant dense<0.000000e+00> : vector<16xf32>
    %33 = vector.multi_reduction <add>, %28, %cst_40 [0] : vector<24x16xf32> to vector<16xf32>
    %34 = vector.shape_cast %33 : vector<16xf32> to vector<1x16xf32>
    %35 = arith.addf %1, %34 : vector<1x16xf32>
    %36 = arith.mulf %28, %28 : vector<24x16xf32>
    %cst_41 = arith.constant dense<0.000000e+00> : vector<16xf32>
    %37 = vector.multi_reduction <add>, %36, %cst_41 [0] : vector<24x16xf32> to vector<16xf32>
    %38 = vector.shape_cast %37 : vector<16xf32> to vector<1x16xf32>
    %39 = arith.addf %2, %38 : vector<1x16xf32>
    %cst_42 = arith.constant 0.000000e+00 : f32
    %40 = vector.broadcast %cst_42 : f32 to vector<24x16xf32>
    %c0_43 = arith.constant 0 : index
    %c1_44 = arith.constant 1 : index
    %c0_45 = arith.constant 0 : index
    %41 = vector.load %arg2[%c0_43, %c1_44, %c0_45] : memref<1x42x32xbf16, #tpu.memory_space<vmem>>, vector<1x24x32xbf16>
    %42 = vector.shape_cast %41 : vector<1x24x32xbf16> to vector<24x32xbf16>
    %c1_46 = arith.constant 1 : index
    %c0_47 = arith.constant 0 : index
    %c0_48 = arith.constant 0 : index
    %c0_49 = arith.constant 0 : index
    %c0_50 = arith.constant 0 : index
    %43 = vector.load %arg3[%c1_46, %c0_47, %c0_48, %c0_49, %c0_50] : memref<4x2x2x32x16xbf16, #tpu.memory_space<vmem>>, vector<1x1x1x32x16xbf16>
    %44 = vector.shape_cast %43 : vector<1x1x1x32x16xbf16> to vector<32x16xbf16>
    %cst_51 = arith.constant dense<0.000000e+00> : vector<24x16xf32>
    %45 = tpu.matmul %42, %44, %cst_51 {dimension_numbers = #tpu.dot_dimension_numbers<[1], [0], [0], [1], [0, 0, 1, 1], [], []>} : vector<24x32xbf16>, vector<32x16xbf16>, vector<24x16xf32> -> vector<24x16xf32>
    %46 = arith.addf %40, %45 : vector<24x16xf32>
    %c0_52 = arith.constant 0 : index
    %c2 = arith.constant 2 : index
    %c0_53 = arith.constant 0 : index
    %47 = vector.load %arg2[%c0_52, %c2, %c0_53] : memref<1x42x32xbf16, #tpu.memory_space<vmem>>, vector<1x24x32xbf16>
    %48 = vector.shape_cast %47 : vector<1x24x32xbf16> to vector<24x32xbf16>
    %c1_54 = arith.constant 1 : index
    %c0_55 = arith.constant 0 : index
    %c1_56 = arith.constant 1 : index
    %c0_57 = arith.constant 0 : index
    %c0_58 = arith.constant 0 : index
    %49 = vector.load %arg3[%c1_54, %c0_55, %c1_56, %c0_57, %c0_58] : memref<4x2x2x32x16xbf16, #tpu.memory_space<vmem>>, vector<1x1x1x32x16xbf16>
    %50 = vector.shape_cast %49 : vector<1x1x1x32x16xbf16> to vector<32x16xbf16>
    %cst_59 = arith.constant dense<0.000000e+00> : vector<24x16xf32>
    %51 = tpu.matmul %48, %50, %cst_59 {dimension_numbers = #tpu.dot_dimension_numbers<[1], [0], [0], [1], [0, 0, 1, 1], [], []>} : vector<24x32xbf16>, vector<32x16xbf16>, vector<24x16xf32> -> vector<24x16xf32>
    %52 = arith.addf %46, %51 : vector<24x16xf32>
    %c0_60 = arith.constant 0 : index
    %c7_61 = arith.constant 7 : index
    %c0_62 = arith.constant 0 : index
    %53 = vector.load %arg2[%c0_60, %c7_61, %c0_62] : memref<1x42x32xbf16, #tpu.memory_space<vmem>>, vector<1x24x32xbf16>
    %54 = vector.shape_cast %53 : vector<1x24x32xbf16> to vector<24x32xbf16>
    %c1_63 = arith.constant 1 : index
    %c1_64 = arith.constant 1 : index
    %c0_65 = arith.constant 0 : index
    %c0_66 = arith.constant 0 : index
    %c0_67 = arith.constant 0 : index
    %55 = vector.load %arg3[%c1_63, %c1_64, %c0_65, %c0_66, %c0_67] : memref<4x2x2x32x16xbf16, #tpu.memory_space<vmem>>, vector<1x1x1x32x16xbf16>
    %56 = vector.shape_cast %55 : vector<1x1x1x32x16xbf16> to vector<32x16xbf16>
    %cst_68 = arith.constant dense<0.000000e+00> : vector<24x16xf32>
    %57 = tpu.matmul %54, %56, %cst_68 {dimension_numbers = #tpu.dot_dimension_numbers<[1], [0], [0], [1], [0, 0, 1, 1], [], []>} : vector<24x32xbf16>, vector<32x16xbf16>, vector<24x16xf32> -> vector<24x16xf32>
    %58 = arith.addf %52, %57 : vector<24x16xf32>
    %c0_69 = arith.constant 0 : index
    %c8 = arith.constant 8 : index
    %c0_70 = arith.constant 0 : index
    %59 = vector.load %arg2[%c0_69, %c8, %c0_70] : memref<1x42x32xbf16, #tpu.memory_space<vmem>>, vector<1x24x32xbf16>
    %60 = vector.shape_cast %59 : vector<1x24x32xbf16> to vector<24x32xbf16>
    %c1_71 = arith.constant 1 : index
    %c1_72 = arith.constant 1 : index
    %c1_73 = arith.constant 1 : index
    %c0_74 = arith.constant 0 : index
    %c0_75 = arith.constant 0 : index
    %61 = vector.load %arg3[%c1_71, %c1_72, %c1_73, %c0_74, %c0_75] : memref<4x2x2x32x16xbf16, #tpu.memory_space<vmem>>, vector<1x1x1x32x16xbf16>
    %62 = vector.shape_cast %61 : vector<1x1x1x32x16xbf16> to vector<32x16xbf16>
    %cst_76 = arith.constant dense<0.000000e+00> : vector<24x16xf32>
    %63 = tpu.matmul %60, %62, %cst_76 {dimension_numbers = #tpu.dot_dimension_numbers<[1], [0], [0], [1], [0, 0, 1, 1], [], []>} : vector<24x32xbf16>, vector<32x16xbf16>, vector<24x16xf32> -> vector<24x16xf32>
    %64 = arith.addf %58, %63 : vector<24x16xf32>
    %65 = arith.mulf %64, %0 : vector<24x16xf32>
    %66 = arith.truncf %65 : vector<24x16xf32> to vector<24x16xbf16>
    %c0_77 = arith.constant 0 : index
    %c1_78 = arith.constant 1 : index
    %c0_79 = arith.constant 0 : index
    %c0_80 = arith.constant 0 : index
    %67 = vector.load %arg5[%c0_77, %c1_78, %c0_79, %c0_80] : memref<1x4x24x16xbf16, #tpu.memory_space<vmem>>, vector<1x1x24x16xbf16>
    %68 = vector.shape_cast %67 : vector<1x1x24x16xbf16> to vector<24x16xbf16>
    %69 = vector.shape_cast %66 : vector<24x16xbf16> to vector<1x1x24x16xbf16>
    tpu.vector_store %arg5[%c0_77, %c1_78, %c0_79, %c0_80], %69 {strides = array<i32>} : memref<1x4x24x16xbf16, #tpu.memory_space<vmem>>, vector<1x1x24x16xbf16>,
    %cst_81 = arith.constant dense<0.000000e+00> : vector<16xf32>
    %70 = vector.multi_reduction <add>, %65, %cst_81 [0] : vector<24x16xf32> to vector<16xf32>
    %71 = vector.shape_cast %70 : vector<16xf32> to vector<1x16xf32>
    %72 = arith.addf %35, %71 : vector<1x16xf32>
    %73 = arith.mulf %65, %65 : vector<24x16xf32>
    %cst_82 = arith.constant dense<0.000000e+00> : vector<16xf32>
    %74 = vector.multi_reduction <add>, %73, %cst_82 [0] : vector<24x16xf32> to vector<16xf32>
    %75 = vector.shape_cast %74 : vector<16xf32> to vector<1x16xf32>
    %76 = arith.addf %39, %75 : vector<1x16xf32>
    %cst_83 = arith.constant 0.000000e+00 : f32
    %77 = vector.broadcast %cst_83 : f32 to vector<24x16xf32>
    %c0_84 = arith.constant 0 : index
    %c6_85 = arith.constant 6 : index
    %c0_86 = arith.constant 0 : index
    %78 = vector.load %arg2[%c0_84, %c6_85, %c0_86] : memref<1x42x32xbf16, #tpu.memory_space<vmem>>, vector<1x24x32xbf16>
    %79 = vector.shape_cast %78 : vector<1x24x32xbf16> to vector<24x32xbf16>
    %c2_87 = arith.constant 2 : index
    %c0_88 = arith.constant 0 : index
    %c0_89 = arith.constant 0 : index
    %c0_90 = arith.constant 0 : index
    %c0_91 = arith.constant 0 : index
    %80 = vector.load %arg3[%c2_87, %c0_88, %c0_89, %c0_90, %c0_91] : memref<4x2x2x32x16xbf16, #tpu.memory_space<vmem>>, vector<1x1x1x32x16xbf16>
    %81 = vector.shape_cast %80 : vector<1x1x1x32x16xbf16> to vector<32x16xbf16>
    %cst_92 = arith.constant dense<0.000000e+00> : vector<24x16xf32>
    %82 = tpu.matmul %79, %81, %cst_92 {dimension_numbers = #tpu.dot_dimension_numbers<[1], [0], [0], [1], [0, 0, 1, 1], [], []>} : vector<24x32xbf16>, vector<32x16xbf16>, vector<24x16xf32> -> vector<24x16xf32>
    %83 = arith.addf %77, %82 : vector<24x16xf32>
    %c0_93 = arith.constant 0 : index
    %c7_94 = arith.constant 7 : index
    %c0_95 = arith.constant 0 : index
    %84 = vector.load %arg2[%c0_93, %c7_94, %c0_95] : memref<1x42x32xbf16, #tpu.memory_space<vmem>>, vector<1x24x32xbf16>
    %85 = vector.shape_cast %84 : vector<1x24x32xbf16> to vector<24x32xbf16>
    %c2_96 = arith.constant 2 : index
    %c0_97 = arith.constant 0 : index
    %c1_98 = arith.constant 1 : index
    %c0_99 = arith.constant 0 : index
    %c0_100 = arith.constant 0 : index
    %86 = vector.load %arg3[%c2_96, %c0_97, %c1_98, %c0_99, %c0_100] : memref<4x2x2x32x16xbf16, #tpu.memory_space<vmem>>, vector<1x1x1x32x16xbf16>
    %87 = vector.shape_cast %86 : vector<1x1x1x32x16xbf16> to vector<32x16xbf16>
    %cst_101 = arith.constant dense<0.000000e+00> : vector<24x16xf32>
    %88 = tpu.matmul %85, %87, %cst_101 {dimension_numbers = #tpu.dot_dimension_numbers<[1], [0], [0], [1], [0, 0, 1, 1], [], []>} : vector<24x32xbf16>, vector<32x16xbf16>, vector<24x16xf32> -> vector<24x16xf32>
    %89 = arith.addf %83, %88 : vector<24x16xf32>
    %c0_102 = arith.constant 0 : index
    %c12 = arith.constant 12 : index
    %c0_103 = arith.constant 0 : index
    %90 = vector.load %arg2[%c0_102, %c12, %c0_103] : memref<1x42x32xbf16, #tpu.memory_space<vmem>>, vector<1x24x32xbf16>
    %91 = vector.shape_cast %90 : vector<1x24x32xbf16> to vector<24x32xbf16>
    %c2_104 = arith.constant 2 : index
    %c1_105 = arith.constant 1 : index
    %c0_106 = arith.constant 0 : index
    %c0_107 = arith.constant 0 : index
    %c0_108 = arith.constant 0 : index
    %92 = vector.load %arg3[%c2_104, %c1_105, %c0_106, %c0_107, %c0_108] : memref<4x2x2x32x16xbf16, #tpu.memory_space<vmem>>, vector<1x1x1x32x16xbf16>
    %93 = vector.shape_cast %92 : vector<1x1x1x32x16xbf16> to vector<32x16xbf16>
    %cst_109 = arith.constant dense<0.000000e+00> : vector<24x16xf32>
    %94 = tpu.matmul %91, %93, %cst_109 {dimension_numbers = #tpu.dot_dimension_numbers<[1], [0], [0], [1], [0, 0, 1, 1], [], []>} : vector<24x32xbf16>, vector<32x16xbf16>, vector<24x16xf32> -> vector<24x16xf32>
    %95 = arith.addf %89, %94 : vector<24x16xf32>
    %c0_110 = arith.constant 0 : index
    %c13 = arith.constant 13 : index
    %c0_111 = arith.constant 0 : index
    %96 = vector.load %arg2[%c0_110, %c13, %c0_111] : memref<1x42x32xbf16, #tpu.memory_space<vmem>>, vector<1x24x32xbf16>
    %97 = vector.shape_cast %96 : vector<1x24x32xbf16> to vector<24x32xbf16>
    %c2_112 = arith.constant 2 : index
    %c1_113 = arith.constant 1 : index
    %c1_114 = arith.constant 1 : index
    %c0_115 = arith.constant 0 : index
    %c0_116 = arith.constant 0 : index
    %98 = vector.load %arg3[%c2_112, %c1_113, %c1_114, %c0_115, %c0_116] : memref<4x2x2x32x16xbf16, #tpu.memory_space<vmem>>, vector<1x1x1x32x16xbf16>
    %99 = vector.shape_cast %98 : vector<1x1x1x32x16xbf16> to vector<32x16xbf16>
    %cst_117 = arith.constant dense<0.000000e+00> : vector<24x16xf32>
    %100 = tpu.matmul %97, %99, %cst_117 {dimension_numbers = #tpu.dot_dimension_numbers<[1], [0], [0], [1], [0, 0, 1, 1], [], []>} : vector<24x32xbf16>, vector<32x16xbf16>, vector<24x16xf32> -> vector<24x16xf32>
    %101 = arith.addf %95, %100 : vector<24x16xf32>
    %102 = arith.mulf %101, %0 : vector<24x16xf32>
    %103 = arith.truncf %102 : vector<24x16xf32> to vector<24x16xbf16>
    %c0_118 = arith.constant 0 : index
    %c2_119 = arith.constant 2 : index
    %c0_120 = arith.constant 0 : index
    %c0_121 = arith.constant 0 : index
    %104 = vector.load %arg5[%c0_118, %c2_119, %c0_120, %c0_121] : memref<1x4x24x16xbf16, #tpu.memory_space<vmem>>, vector<1x1x24x16xbf16>
    %105 = vector.shape_cast %104 : vector<1x1x24x16xbf16> to vector<24x16xbf16>
    %106 = vector.shape_cast %103 : vector<24x16xbf16> to vector<1x1x24x16xbf16>
    tpu.vector_store %arg5[%c0_118, %c2_119, %c0_120, %c0_121], %106 {strides = array<i32>} : memref<1x4x24x16xbf16, #tpu.memory_space<vmem>>, vector<1x1x24x16xbf16>,
    %cst_122 = arith.constant dense<0.000000e+00> : vector<16xf32>
    %107 = vector.multi_reduction <add>, %102, %cst_122 [0] : vector<24x16xf32> to vector<16xf32>
    %108 = vector.shape_cast %107 : vector<16xf32> to vector<1x16xf32>
    %109 = arith.addf %72, %108 : vector<1x16xf32>
    %110 = arith.mulf %102, %102 : vector<24x16xf32>
    %cst_123 = arith.constant dense<0.000000e+00> : vector<16xf32>
    %111 = vector.multi_reduction <add>, %110, %cst_123 [0] : vector<24x16xf32> to vector<16xf32>
    %112 = vector.shape_cast %111 : vector<16xf32> to vector<1x16xf32>
    %113 = arith.addf %76, %112 : vector<1x16xf32>
    %cst_124 = arith.constant 0.000000e+00 : f32
    %114 = vector.broadcast %cst_124 : f32 to vector<24x16xf32>
    %c0_125 = arith.constant 0 : index
    %c7_126 = arith.constant 7 : index
    %c0_127 = arith.constant 0 : index
    %115 = vector.load %arg2[%c0_125, %c7_126, %c0_127] : memref<1x42x32xbf16, #tpu.memory_space<vmem>>, vector<1x24x32xbf16>
    %116 = vector.shape_cast %115 : vector<1x24x32xbf16> to vector<24x32xbf16>
    %c3 = arith.constant 3 : index
    %c0_128 = arith.constant 0 : index
    %c0_129 = arith.constant 0 : index
    %c0_130 = arith.constant 0 : index
    %c0_131 = arith.constant 0 : index
    %117 = vector.load %arg3[%c3, %c0_128, %c0_129, %c0_130, %c0_131] : memref<4x2x2x32x16xbf16, #tpu.memory_space<vmem>>, vector<1x1x1x32x16xbf16>
    %118 = vector.shape_cast %117 : vector<1x1x1x32x16xbf16> to vector<32x16xbf16>
    %cst_132 = arith.constant dense<0.000000e+00> : vector<24x16xf32>
    %119 = tpu.matmul %116, %118, %cst_132 {dimension_numbers = #tpu.dot_dimension_numbers<[1], [0], [0], [1], [0, 0, 1, 1], [], []>} : vector<24x32xbf16>, vector<32x16xbf16>, vector<24x16xf32> -> vector<24x16xf32>
    %120 = arith.addf %114, %119 : vector<24x16xf32>
    %c0_133 = arith.constant 0 : index
    %c8_134 = arith.constant 8 : index
    %c0_135 = arith.constant 0 : index
    %121 = vector.load %arg2[%c0_133, %c8_134, %c0_135] : memref<1x42x32xbf16, #tpu.memory_space<vmem>>, vector<1x24x32xbf16>
    %122 = vector.shape_cast %121 : vector<1x24x32xbf16> to vector<24x32xbf16>
    %c3_136 = arith.constant 3 : index
    %c0_137 = arith.constant 0 : index
    %c1_138 = arith.constant 1 : index
    %c0_139 = arith.constant 0 : index
    %c0_140 = arith.constant 0 : index
    %123 = vector.load %arg3[%c3_136, %c0_137, %c1_138, %c0_139, %c0_140] : memref<4x2x2x32x16xbf16, #tpu.memory_space<vmem>>, vector<1x1x1x32x16xbf16>
    %124 = vector.shape_cast %123 : vector<1x1x1x32x16xbf16> to vector<32x16xbf16>
    %cst_141 = arith.constant dense<0.000000e+00> : vector<24x16xf32>
    %125 = tpu.matmul %122, %124, %cst_141 {dimension_numbers = #tpu.dot_dimension_numbers<[1], [0], [0], [1], [0, 0, 1, 1], [], []>} : vector<24x32xbf16>, vector<32x16xbf16>, vector<24x16xf32> -> vector<24x16xf32>
    %126 = arith.addf %120, %125 : vector<24x16xf32>
    %c0_142 = arith.constant 0 : index
    %c13_143 = arith.constant 13 : index
    %c0_144 = arith.constant 0 : index
    %127 = vector.load %arg2[%c0_142, %c13_143, %c0_144] : memref<1x42x32xbf16, #tpu.memory_space<vmem>>, vector<1x24x32xbf16>
    %128 = vector.shape_cast %127 : vector<1x24x32xbf16> to vector<24x32xbf16>
    %c3_145 = arith.constant 3 : index
    %c1_146 = arith.constant 1 : index
    %c0_147 = arith.constant 0 : index
    %c0_148 = arith.constant 0 : index
    %c0_149 = arith.constant 0 : index
    %129 = vector.load %arg3[%c3_145, %c1_146, %c0_147, %c0_148, %c0_149] : memref<4x2x2x32x16xbf16, #tpu.memory_space<vmem>>, vector<1x1x1x32x16xbf16>
    %130 = vector.shape_cast %129 : vector<1x1x1x32x16xbf16> to vector<32x16xbf16>
    %cst_150 = arith.constant dense<0.000000e+00> : vector<24x16xf32>
    %131 = tpu.matmul %128, %130, %cst_150 {dimension_numbers = #tpu.dot_dimension_numbers<[1], [0], [0], [1], [0, 0, 1, 1], [], []>} : vector<24x32xbf16>, vector<32x16xbf16>, vector<24x16xf32> -> vector<24x16xf32>
    %132 = arith.addf %126, %131 : vector<24x16xf32>
    %c0_151 = arith.constant 0 : index
    %c14 = arith.constant 14 : index
    %c0_152 = arith.constant 0 : index
    %133 = vector.load %arg2[%c0_151, %c14, %c0_152] : memref<1x42x32xbf16, #tpu.memory_space<vmem>>, vector<1x24x32xbf16>
    %134 = vector.shape_cast %133 : vector<1x24x32xbf16> to vector<24x32xbf16>
    %c3_153 = arith.constant 3 : index
    %c1_154 = arith.constant 1 : index
    %c1_155 = arith.constant 1 : index
    %c0_156 = arith.constant 0 : index
    %c0_157 = arith.constant 0 : index
    %135 = vector.load %arg3[%c3_153, %c1_154, %c1_155, %c0_156, %c0_157] : memref<4x2x2x32x16xbf16, #tpu.memory_space<vmem>>, vector<1x1x1x32x16xbf16>
    %136 = vector.shape_cast %135 : vector<1x1x1x32x16xbf16> to vector<32x16xbf16>
    %cst_158 = arith.constant dense<0.000000e+00> : vector<24x16xf32>
    %137 = tpu.matmul %134, %136, %cst_158 {dimension_numbers = #tpu.dot_dimension_numbers<[1], [0], [0], [1], [0, 0, 1, 1], [], []>} : vector<24x32xbf16>, vector<32x16xbf16>, vector<24x16xf32> -> vector<24x16xf32>
    %138 = arith.addf %132, %137 : vector<24x16xf32>
    %139 = arith.mulf %138, %0 : vector<24x16xf32>
    %140 = arith.truncf %139 : vector<24x16xf32> to vector<24x16xbf16>
    %c0_159 = arith.constant 0 : index
    %c3_160 = arith.constant 3 : index
    %c0_161 = arith.constant 0 : index
    %c0_162 = arith.constant 0 : index
    %141 = vector.load %arg5[%c0_159, %c3_160, %c0_161, %c0_162] : memref<1x4x24x16xbf16, #tpu.memory_space<vmem>>, vector<1x1x24x16xbf16>
    %142 = vector.shape_cast %141 : vector<1x1x24x16xbf16> to vector<24x16xbf16>
    %143 = vector.shape_cast %140 : vector<24x16xbf16> to vector<1x1x24x16xbf16>
    tpu.vector_store %arg5[%c0_159, %c3_160, %c0_161, %c0_162], %143 {strides = array<i32>} : memref<1x4x24x16xbf16, #tpu.memory_space<vmem>>, vector<1x1x24x16xbf16>,
    %cst_163 = arith.constant dense<0.000000e+00> : vector<16xf32>
    %144 = vector.multi_reduction <add>, %139, %cst_163 [0] : vector<24x16xf32> to vector<16xf32>
    %145 = vector.shape_cast %144 : vector<16xf32> to vector<1x16xf32>
    %146 = arith.addf %109, %145 : vector<1x16xf32>
    %147 = arith.mulf %139, %139 : vector<24x16xf32>
    %cst_164 = arith.constant dense<0.000000e+00> : vector<16xf32>
    %148 = vector.multi_reduction <add>, %147, %cst_164 [0] : vector<24x16xf32> to vector<16xf32>
    %149 = vector.shape_cast %148 : vector<16xf32> to vector<1x16xf32>
    %150 = arith.addf %113, %149 : vector<1x16xf32>
    %c0_165 = arith.constant 0 : index
    %c0_166 = arith.constant 0 : index
    %c0_167 = arith.constant 0 : index
    %151 = vector.load %arg6[%c0_165, %c0_166, %c0_167] : memref<1x1x16xf32, #tpu.memory_space<vmem>>, vector<1x1x16xf32>
    %152 = vector.shape_cast %151 : vector<1x1x16xf32> to vector<1x16xf32>
    %153 = vector.shape_cast %146 : vector<1x16xf32> to vector<1x1x16xf32>
    tpu.vector_store %arg6[%c0_165, %c0_166, %c0_167], %153 {strides = array<i32>} : memref<1x1x16xf32, #tpu.memory_space<vmem>>, vector<1x1x16xf32>,
    %c0_168 = arith.constant 0 : index
    %c0_169 = arith.constant 0 : index
    %c0_170 = arith.constant 0 : index
    %154 = vector.load %arg7[%c0_168, %c0_169, %c0_170] : memref<1x1x16xf32, #tpu.memory_space<vmem>>, vector<1x1x16xf32>
    %155 = vector.shape_cast %154 : vector<1x1x16xf32> to vector<1x16xf32>
    %156 = vector.shape_cast %150 : vector<1x16xf32> to vector<1x1x16xf32>
    tpu.vector_store %arg7[%c0_168, %c0_169, %c0_170], %156 {strides = array<i32>} : memref<1x1x16xf32, #tpu.memory_space<vmem>>, vector<1x1x16xf32>,
    return
  }
  func.func @transform_0(%arg0: i32, %arg1: i32) -> (i32, i32, i32) {
    %c0_i32 = arith.constant 0 : i32
    %c0_i32_0 = arith.constant 0 : i32
    %c0_i32_1 = arith.constant 0 : i32
    return %arg1, %c0_i32, %c0_i32_0 : i32, i32, i32
  }
  func.func @transform_1(%arg0: i32, %arg1: i32) -> (i32, i32, i32, i32, i32) {
    %c0_i32 = arith.constant 0 : i32
    %c0_i32_0 = arith.constant 0 : i32
    %c0_i32_1 = arith.constant 0 : i32
    %c0_i32_2 = arith.constant 0 : i32
    %c0_i32_3 = arith.constant 0 : i32
    return %c0_i32, %c0_i32_0, %c0_i32_1, %c0_i32_2, %arg0 : i32, i32, i32, i32, i32
  }
  func.func @transform_2(%arg0: i32, %arg1: i32) -> (i32, i32) {
    %c0_i32 = arith.constant 0 : i32
    %c0_i32_0 = arith.constant 0 : i32
    return %c0_i32, %arg0 : i32, i32
  }
  func.func @transform_3(%arg0: i32, %arg1: i32) -> (i32, i32, i32, i32) {
    %c0_i32 = arith.constant 0 : i32
    %c0_i32_0 = arith.constant 0 : i32
    %c0_i32_1 = arith.constant 0 : i32
    return %arg1, %c0_i32, %c0_i32_0, %arg0 : i32, i32, i32, i32
  }
  func.func @transform_4(%arg0: i32, %arg1: i32) -> (i32, i32, i32) {
    %c0_i32 = arith.constant 0 : i32
    %c0_i32_0 = arith.constant 0 : i32
    return %arg1, %c0_i32, %arg0 : i32, i32, i32
  }
  func.func @transform_5(%arg0: i32, %arg1: i32) -> (i32, i32, i32) {
    %c0_i32 = arith.constant 0 : i32
    %c0_i32_0 = arith.constant 0 : i32
    return %arg1, %c0_i32, %arg0 : i32, i32, i32
  }
}

module attributes {stable_mosaic.version = 11 : i64} {
  func.func @kernel(%arg0: i32, %arg1: i32, %arg2: memref<1x110x16xbf16, #tpu.memory_space<vmem>>, %arg3: memref<4x2x2x16x3xbf16, #tpu.memory_space<vmem>>, %arg4: memref<80x3xf32, #tpu.memory_space<vmem>>, %arg5: memref<1x4x80x3xbf16, #tpu.memory_space<vmem>>, %arg6: memref<1x1x3xf32, #tpu.memory_space<vmem>>, %arg7: memref<1x1x3xf32, #tpu.memory_space<vmem>>) attributes {dimension_semantics = [#tpu.dimension_semantics<parallel>, #tpu.dimension_semantics<parallel>], iteration_bounds = array<i64: 1, 2>, scalar_prefetch = 0 : i64, scratch_operands = 0 : i64, tpu.core_type = #tpu.core_type<tc>, window_params = [{transform_indices = @transform_0, window_bounds = array<i64: 1, 110, 16>}, {transform_indices = @transform_1, window_bounds = array<i64: 4, 2, 2, 16, 3>}, {transform_indices = @transform_2, window_bounds = array<i64: 80, 3>}, {transform_indices = @transform_3, window_bounds = array<i64: 1, 4, 80, 3>}, {transform_indices = @transform_4, window_bounds = array<i64: 1, 1, 3>}, {transform_indices = @transform_5, window_bounds = array<i64: 1, 1, 3>}]} {
    %c0 = arith.constant 0 : index
    %c0_0 = arith.constant 0 : index
    %0 = vector.load %arg4[%c0, %c0_0] : memref<80x3xf32, #tpu.memory_space<vmem>>, vector<80x3xf32>
    %cst = arith.constant 0.000000e+00 : f32
    %1 = vector.broadcast %cst : f32 to vector<1x3xf32>
    %cst_1 = arith.constant 0.000000e+00 : f32
    %2 = vector.broadcast %cst_1 : f32 to vector<1x3xf32>
    %cst_2 = arith.constant 0.000000e+00 : f32
    %3 = vector.broadcast %cst_2 : f32 to vector<80x3xf32>
    %c0_3 = arith.constant 0 : index
    %c0_4 = arith.constant 0 : index
    %c0_5 = arith.constant 0 : index
    %4 = vector.load %arg2[%c0_3, %c0_4, %c0_5] : memref<1x110x16xbf16, #tpu.memory_space<vmem>>, vector<1x80x16xbf16>
    %5 = vector.shape_cast %4 : vector<1x80x16xbf16> to vector<80x16xbf16>
    %c0_6 = arith.constant 0 : index
    %c0_7 = arith.constant 0 : index
    %c0_8 = arith.constant 0 : index
    %c0_9 = arith.constant 0 : index
    %c0_10 = arith.constant 0 : index
    %6 = vector.load %arg3[%c0_6, %c0_7, %c0_8, %c0_9, %c0_10] : memref<4x2x2x16x3xbf16, #tpu.memory_space<vmem>>, vector<1x1x1x16x3xbf16>
    %7 = vector.shape_cast %6 : vector<1x1x1x16x3xbf16> to vector<16x3xbf16>
    %cst_11 = arith.constant dense<0.000000e+00> : vector<80x3xf32>
    %8 = tpu.matmul %5, %7, %cst_11 {dimension_numbers = #tpu.dot_dimension_numbers<[1], [0], [0], [1], [0, 0, 1, 1], [], []>} : vector<80x16xbf16>, vector<16x3xbf16>, vector<80x3xf32> -> vector<80x3xf32>
    %9 = arith.addf %3, %8 : vector<80x3xf32>
    %c0_12 = arith.constant 0 : index
    %c1 = arith.constant 1 : index
    %c0_13 = arith.constant 0 : index
    %10 = vector.load %arg2[%c0_12, %c1, %c0_13] : memref<1x110x16xbf16, #tpu.memory_space<vmem>>, vector<1x80x16xbf16>
    %11 = vector.shape_cast %10 : vector<1x80x16xbf16> to vector<80x16xbf16>
    %c0_14 = arith.constant 0 : index
    %c0_15 = arith.constant 0 : index
    %c1_16 = arith.constant 1 : index
    %c0_17 = arith.constant 0 : index
    %c0_18 = arith.constant 0 : index
    %12 = vector.load %arg3[%c0_14, %c0_15, %c1_16, %c0_17, %c0_18] : memref<4x2x2x16x3xbf16, #tpu.memory_space<vmem>>, vector<1x1x1x16x3xbf16>
    %13 = vector.shape_cast %12 : vector<1x1x1x16x3xbf16> to vector<16x3xbf16>
    %cst_19 = arith.constant dense<0.000000e+00> : vector<80x3xf32>
    %14 = tpu.matmul %11, %13, %cst_19 {dimension_numbers = #tpu.dot_dimension_numbers<[1], [0], [0], [1], [0, 0, 1, 1], [], []>} : vector<80x16xbf16>, vector<16x3xbf16>, vector<80x3xf32> -> vector<80x3xf32>
    %15 = arith.addf %9, %14 : vector<80x3xf32>
    %c0_20 = arith.constant 0 : index
    %c10 = arith.constant 10 : index
    %c0_21 = arith.constant 0 : index
    %16 = vector.load %arg2[%c0_20, %c10, %c0_21] : memref<1x110x16xbf16, #tpu.memory_space<vmem>>, vector<1x80x16xbf16>
    %17 = vector.shape_cast %16 : vector<1x80x16xbf16> to vector<80x16xbf16>
    %c0_22 = arith.constant 0 : index
    %c1_23 = arith.constant 1 : index
    %c0_24 = arith.constant 0 : index
    %c0_25 = arith.constant 0 : index
    %c0_26 = arith.constant 0 : index
    %18 = vector.load %arg3[%c0_22, %c1_23, %c0_24, %c0_25, %c0_26] : memref<4x2x2x16x3xbf16, #tpu.memory_space<vmem>>, vector<1x1x1x16x3xbf16>
    %19 = vector.shape_cast %18 : vector<1x1x1x16x3xbf16> to vector<16x3xbf16>
    %cst_27 = arith.constant dense<0.000000e+00> : vector<80x3xf32>
    %20 = tpu.matmul %17, %19, %cst_27 {dimension_numbers = #tpu.dot_dimension_numbers<[1], [0], [0], [1], [0, 0, 1, 1], [], []>} : vector<80x16xbf16>, vector<16x3xbf16>, vector<80x3xf32> -> vector<80x3xf32>
    %21 = arith.addf %15, %20 : vector<80x3xf32>
    %c0_28 = arith.constant 0 : index
    %c11 = arith.constant 11 : index
    %c0_29 = arith.constant 0 : index
    %22 = vector.load %arg2[%c0_28, %c11, %c0_29] : memref<1x110x16xbf16, #tpu.memory_space<vmem>>, vector<1x80x16xbf16>
    %23 = vector.shape_cast %22 : vector<1x80x16xbf16> to vector<80x16xbf16>
    %c0_30 = arith.constant 0 : index
    %c1_31 = arith.constant 1 : index
    %c1_32 = arith.constant 1 : index
    %c0_33 = arith.constant 0 : index
    %c0_34 = arith.constant 0 : index
    %24 = vector.load %arg3[%c0_30, %c1_31, %c1_32, %c0_33, %c0_34] : memref<4x2x2x16x3xbf16, #tpu.memory_space<vmem>>, vector<1x1x1x16x3xbf16>
    %25 = vector.shape_cast %24 : vector<1x1x1x16x3xbf16> to vector<16x3xbf16>
    %cst_35 = arith.constant dense<0.000000e+00> : vector<80x3xf32>
    %26 = tpu.matmul %23, %25, %cst_35 {dimension_numbers = #tpu.dot_dimension_numbers<[1], [0], [0], [1], [0, 0, 1, 1], [], []>} : vector<80x16xbf16>, vector<16x3xbf16>, vector<80x3xf32> -> vector<80x3xf32>
    %27 = arith.addf %21, %26 : vector<80x3xf32>
    %28 = arith.mulf %27, %0 : vector<80x3xf32>
    %29 = arith.truncf %28 : vector<80x3xf32> to vector<80x3xbf16>
    %c0_36 = arith.constant 0 : index
    %c0_37 = arith.constant 0 : index
    %c0_38 = arith.constant 0 : index
    %c0_39 = arith.constant 0 : index
    %30 = vector.load %arg5[%c0_36, %c0_37, %c0_38, %c0_39] : memref<1x4x80x3xbf16, #tpu.memory_space<vmem>>, vector<1x1x80x3xbf16>
    %31 = vector.shape_cast %30 : vector<1x1x80x3xbf16> to vector<80x3xbf16>
    %32 = vector.shape_cast %29 : vector<80x3xbf16> to vector<1x1x80x3xbf16>
    tpu.vector_store %arg5[%c0_36, %c0_37, %c0_38, %c0_39], %32 {strides = array<i32>} : memref<1x4x80x3xbf16, #tpu.memory_space<vmem>>, vector<1x1x80x3xbf16>,
    %cst_40 = arith.constant dense<0.000000e+00> : vector<3xf32>
    %33 = vector.multi_reduction <add>, %28, %cst_40 [0] : vector<80x3xf32> to vector<3xf32>
    %34 = vector.shape_cast %33 : vector<3xf32> to vector<1x3xf32>
    %35 = arith.addf %1, %34 : vector<1x3xf32>
    %36 = arith.mulf %28, %28 : vector<80x3xf32>
    %cst_41 = arith.constant dense<0.000000e+00> : vector<3xf32>
    %37 = vector.multi_reduction <add>, %36, %cst_41 [0] : vector<80x3xf32> to vector<3xf32>
    %38 = vector.shape_cast %37 : vector<3xf32> to vector<1x3xf32>
    %39 = arith.addf %2, %38 : vector<1x3xf32>
    %cst_42 = arith.constant 0.000000e+00 : f32
    %40 = vector.broadcast %cst_42 : f32 to vector<80x3xf32>
    %c0_43 = arith.constant 0 : index
    %c1_44 = arith.constant 1 : index
    %c0_45 = arith.constant 0 : index
    %41 = vector.load %arg2[%c0_43, %c1_44, %c0_45] : memref<1x110x16xbf16, #tpu.memory_space<vmem>>, vector<1x80x16xbf16>
    %42 = vector.shape_cast %41 : vector<1x80x16xbf16> to vector<80x16xbf16>
    %c1_46 = arith.constant 1 : index
    %c0_47 = arith.constant 0 : index
    %c0_48 = arith.constant 0 : index
    %c0_49 = arith.constant 0 : index
    %c0_50 = arith.constant 0 : index
    %43 = vector.load %arg3[%c1_46, %c0_47, %c0_48, %c0_49, %c0_50] : memref<4x2x2x16x3xbf16, #tpu.memory_space<vmem>>, vector<1x1x1x16x3xbf16>
    %44 = vector.shape_cast %43 : vector<1x1x1x16x3xbf16> to vector<16x3xbf16>
    %cst_51 = arith.constant dense<0.000000e+00> : vector<80x3xf32>
    %45 = tpu.matmul %42, %44, %cst_51 {dimension_numbers = #tpu.dot_dimension_numbers<[1], [0], [0], [1], [0, 0, 1, 1], [], []>} : vector<80x16xbf16>, vector<16x3xbf16>, vector<80x3xf32> -> vector<80x3xf32>
    %46 = arith.addf %40, %45 : vector<80x3xf32>
    %c0_52 = arith.constant 0 : index
    %c2 = arith.constant 2 : index
    %c0_53 = arith.constant 0 : index
    %47 = vector.load %arg2[%c0_52, %c2, %c0_53] : memref<1x110x16xbf16, #tpu.memory_space<vmem>>, vector<1x80x16xbf16>
    %48 = vector.shape_cast %47 : vector<1x80x16xbf16> to vector<80x16xbf16>
    %c1_54 = arith.constant 1 : index
    %c0_55 = arith.constant 0 : index
    %c1_56 = arith.constant 1 : index
    %c0_57 = arith.constant 0 : index
    %c0_58 = arith.constant 0 : index
    %49 = vector.load %arg3[%c1_54, %c0_55, %c1_56, %c0_57, %c0_58] : memref<4x2x2x16x3xbf16, #tpu.memory_space<vmem>>, vector<1x1x1x16x3xbf16>
    %50 = vector.shape_cast %49 : vector<1x1x1x16x3xbf16> to vector<16x3xbf16>
    %cst_59 = arith.constant dense<0.000000e+00> : vector<80x3xf32>
    %51 = tpu.matmul %48, %50, %cst_59 {dimension_numbers = #tpu.dot_dimension_numbers<[1], [0], [0], [1], [0, 0, 1, 1], [], []>} : vector<80x16xbf16>, vector<16x3xbf16>, vector<80x3xf32> -> vector<80x3xf32>
    %52 = arith.addf %46, %51 : vector<80x3xf32>
    %c0_60 = arith.constant 0 : index
    %c11_61 = arith.constant 11 : index
    %c0_62 = arith.constant 0 : index
    %53 = vector.load %arg2[%c0_60, %c11_61, %c0_62] : memref<1x110x16xbf16, #tpu.memory_space<vmem>>, vector<1x80x16xbf16>
    %54 = vector.shape_cast %53 : vector<1x80x16xbf16> to vector<80x16xbf16>
    %c1_63 = arith.constant 1 : index
    %c1_64 = arith.constant 1 : index
    %c0_65 = arith.constant 0 : index
    %c0_66 = arith.constant 0 : index
    %c0_67 = arith.constant 0 : index
    %55 = vector.load %arg3[%c1_63, %c1_64, %c0_65, %c0_66, %c0_67] : memref<4x2x2x16x3xbf16, #tpu.memory_space<vmem>>, vector<1x1x1x16x3xbf16>
    %56 = vector.shape_cast %55 : vector<1x1x1x16x3xbf16> to vector<16x3xbf16>
    %cst_68 = arith.constant dense<0.000000e+00> : vector<80x3xf32>
    %57 = tpu.matmul %54, %56, %cst_68 {dimension_numbers = #tpu.dot_dimension_numbers<[1], [0], [0], [1], [0, 0, 1, 1], [], []>} : vector<80x16xbf16>, vector<16x3xbf16>, vector<80x3xf32> -> vector<80x3xf32>
    %58 = arith.addf %52, %57 : vector<80x3xf32>
    %c0_69 = arith.constant 0 : index
    %c12 = arith.constant 12 : index
    %c0_70 = arith.constant 0 : index
    %59 = vector.load %arg2[%c0_69, %c12, %c0_70] : memref<1x110x16xbf16, #tpu.memory_space<vmem>>, vector<1x80x16xbf16>
    %60 = vector.shape_cast %59 : vector<1x80x16xbf16> to vector<80x16xbf16>
    %c1_71 = arith.constant 1 : index
    %c1_72 = arith.constant 1 : index
    %c1_73 = arith.constant 1 : index
    %c0_74 = arith.constant 0 : index
    %c0_75 = arith.constant 0 : index
    %61 = vector.load %arg3[%c1_71, %c1_72, %c1_73, %c0_74, %c0_75] : memref<4x2x2x16x3xbf16, #tpu.memory_space<vmem>>, vector<1x1x1x16x3xbf16>
    %62 = vector.shape_cast %61 : vector<1x1x1x16x3xbf16> to vector<16x3xbf16>
    %cst_76 = arith.constant dense<0.000000e+00> : vector<80x3xf32>
    %63 = tpu.matmul %60, %62, %cst_76 {dimension_numbers = #tpu.dot_dimension_numbers<[1], [0], [0], [1], [0, 0, 1, 1], [], []>} : vector<80x16xbf16>, vector<16x3xbf16>, vector<80x3xf32> -> vector<80x3xf32>
    %64 = arith.addf %58, %63 : vector<80x3xf32>
    %65 = arith.mulf %64, %0 : vector<80x3xf32>
    %66 = arith.truncf %65 : vector<80x3xf32> to vector<80x3xbf16>
    %c0_77 = arith.constant 0 : index
    %c1_78 = arith.constant 1 : index
    %c0_79 = arith.constant 0 : index
    %c0_80 = arith.constant 0 : index
    %67 = vector.load %arg5[%c0_77, %c1_78, %c0_79, %c0_80] : memref<1x4x80x3xbf16, #tpu.memory_space<vmem>>, vector<1x1x80x3xbf16>
    %68 = vector.shape_cast %67 : vector<1x1x80x3xbf16> to vector<80x3xbf16>
    %69 = vector.shape_cast %66 : vector<80x3xbf16> to vector<1x1x80x3xbf16>
    tpu.vector_store %arg5[%c0_77, %c1_78, %c0_79, %c0_80], %69 {strides = array<i32>} : memref<1x4x80x3xbf16, #tpu.memory_space<vmem>>, vector<1x1x80x3xbf16>,
    %cst_81 = arith.constant dense<0.000000e+00> : vector<3xf32>
    %70 = vector.multi_reduction <add>, %65, %cst_81 [0] : vector<80x3xf32> to vector<3xf32>
    %71 = vector.shape_cast %70 : vector<3xf32> to vector<1x3xf32>
    %72 = arith.addf %35, %71 : vector<1x3xf32>
    %73 = arith.mulf %65, %65 : vector<80x3xf32>
    %cst_82 = arith.constant dense<0.000000e+00> : vector<3xf32>
    %74 = vector.multi_reduction <add>, %73, %cst_82 [0] : vector<80x3xf32> to vector<3xf32>
    %75 = vector.shape_cast %74 : vector<3xf32> to vector<1x3xf32>
    %76 = arith.addf %39, %75 : vector<1x3xf32>
    %cst_83 = arith.constant 0.000000e+00 : f32
    %77 = vector.broadcast %cst_83 : f32 to vector<80x3xf32>
    %c0_84 = arith.constant 0 : index
    %c10_85 = arith.constant 10 : index
    %c0_86 = arith.constant 0 : index
    %78 = vector.load %arg2[%c0_84, %c10_85, %c0_86] : memref<1x110x16xbf16, #tpu.memory_space<vmem>>, vector<1x80x16xbf16>
    %79 = vector.shape_cast %78 : vector<1x80x16xbf16> to vector<80x16xbf16>
    %c2_87 = arith.constant 2 : index
    %c0_88 = arith.constant 0 : index
    %c0_89 = arith.constant 0 : index
    %c0_90 = arith.constant 0 : index
    %c0_91 = arith.constant 0 : index
    %80 = vector.load %arg3[%c2_87, %c0_88, %c0_89, %c0_90, %c0_91] : memref<4x2x2x16x3xbf16, #tpu.memory_space<vmem>>, vector<1x1x1x16x3xbf16>
    %81 = vector.shape_cast %80 : vector<1x1x1x16x3xbf16> to vector<16x3xbf16>
    %cst_92 = arith.constant dense<0.000000e+00> : vector<80x3xf32>
    %82 = tpu.matmul %79, %81, %cst_92 {dimension_numbers = #tpu.dot_dimension_numbers<[1], [0], [0], [1], [0, 0, 1, 1], [], []>} : vector<80x16xbf16>, vector<16x3xbf16>, vector<80x3xf32> -> vector<80x3xf32>
    %83 = arith.addf %77, %82 : vector<80x3xf32>
    %c0_93 = arith.constant 0 : index
    %c11_94 = arith.constant 11 : index
    %c0_95 = arith.constant 0 : index
    %84 = vector.load %arg2[%c0_93, %c11_94, %c0_95] : memref<1x110x16xbf16, #tpu.memory_space<vmem>>, vector<1x80x16xbf16>
    %85 = vector.shape_cast %84 : vector<1x80x16xbf16> to vector<80x16xbf16>
    %c2_96 = arith.constant 2 : index
    %c0_97 = arith.constant 0 : index
    %c1_98 = arith.constant 1 : index
    %c0_99 = arith.constant 0 : index
    %c0_100 = arith.constant 0 : index
    %86 = vector.load %arg3[%c2_96, %c0_97, %c1_98, %c0_99, %c0_100] : memref<4x2x2x16x3xbf16, #tpu.memory_space<vmem>>, vector<1x1x1x16x3xbf16>
    %87 = vector.shape_cast %86 : vector<1x1x1x16x3xbf16> to vector<16x3xbf16>
    %cst_101 = arith.constant dense<0.000000e+00> : vector<80x3xf32>
    %88 = tpu.matmul %85, %87, %cst_101 {dimension_numbers = #tpu.dot_dimension_numbers<[1], [0], [0], [1], [0, 0, 1, 1], [], []>} : vector<80x16xbf16>, vector<16x3xbf16>, vector<80x3xf32> -> vector<80x3xf32>
    %89 = arith.addf %83, %88 : vector<80x3xf32>
    %c0_102 = arith.constant 0 : index
    %c20 = arith.constant 20 : index
    %c0_103 = arith.constant 0 : index
    %90 = vector.load %arg2[%c0_102, %c20, %c0_103] : memref<1x110x16xbf16, #tpu.memory_space<vmem>>, vector<1x80x16xbf16>
    %91 = vector.shape_cast %90 : vector<1x80x16xbf16> to vector<80x16xbf16>
    %c2_104 = arith.constant 2 : index
    %c1_105 = arith.constant 1 : index
    %c0_106 = arith.constant 0 : index
    %c0_107 = arith.constant 0 : index
    %c0_108 = arith.constant 0 : index
    %92 = vector.load %arg3[%c2_104, %c1_105, %c0_106, %c0_107, %c0_108] : memref<4x2x2x16x3xbf16, #tpu.memory_space<vmem>>, vector<1x1x1x16x3xbf16>
    %93 = vector.shape_cast %92 : vector<1x1x1x16x3xbf16> to vector<16x3xbf16>
    %cst_109 = arith.constant dense<0.000000e+00> : vector<80x3xf32>
    %94 = tpu.matmul %91, %93, %cst_109 {dimension_numbers = #tpu.dot_dimension_numbers<[1], [0], [0], [1], [0, 0, 1, 1], [], []>} : vector<80x16xbf16>, vector<16x3xbf16>, vector<80x3xf32> -> vector<80x3xf32>
    %95 = arith.addf %89, %94 : vector<80x3xf32>
    %c0_110 = arith.constant 0 : index
    %c21 = arith.constant 21 : index
    %c0_111 = arith.constant 0 : index
    %96 = vector.load %arg2[%c0_110, %c21, %c0_111] : memref<1x110x16xbf16, #tpu.memory_space<vmem>>, vector<1x80x16xbf16>
    %97 = vector.shape_cast %96 : vector<1x80x16xbf16> to vector<80x16xbf16>
    %c2_112 = arith.constant 2 : index
    %c1_113 = arith.constant 1 : index
    %c1_114 = arith.constant 1 : index
    %c0_115 = arith.constant 0 : index
    %c0_116 = arith.constant 0 : index
    %98 = vector.load %arg3[%c2_112, %c1_113, %c1_114, %c0_115, %c0_116] : memref<4x2x2x16x3xbf16, #tpu.memory_space<vmem>>, vector<1x1x1x16x3xbf16>
    %99 = vector.shape_cast %98 : vector<1x1x1x16x3xbf16> to vector<16x3xbf16>
    %cst_117 = arith.constant dense<0.000000e+00> : vector<80x3xf32>
    %100 = tpu.matmul %97, %99, %cst_117 {dimension_numbers = #tpu.dot_dimension_numbers<[1], [0], [0], [1], [0, 0, 1, 1], [], []>} : vector<80x16xbf16>, vector<16x3xbf16>, vector<80x3xf32> -> vector<80x3xf32>
    %101 = arith.addf %95, %100 : vector<80x3xf32>
    %102 = arith.mulf %101, %0 : vector<80x3xf32>
    %103 = arith.truncf %102 : vector<80x3xf32> to vector<80x3xbf16>
    %c0_118 = arith.constant 0 : index
    %c2_119 = arith.constant 2 : index
    %c0_120 = arith.constant 0 : index
    %c0_121 = arith.constant 0 : index
    %104 = vector.load %arg5[%c0_118, %c2_119, %c0_120, %c0_121] : memref<1x4x80x3xbf16, #tpu.memory_space<vmem>>, vector<1x1x80x3xbf16>
    %105 = vector.shape_cast %104 : vector<1x1x80x3xbf16> to vector<80x3xbf16>
    %106 = vector.shape_cast %103 : vector<80x3xbf16> to vector<1x1x80x3xbf16>
    tpu.vector_store %arg5[%c0_118, %c2_119, %c0_120, %c0_121], %106 {strides = array<i32>} : memref<1x4x80x3xbf16, #tpu.memory_space<vmem>>, vector<1x1x80x3xbf16>,
    %cst_122 = arith.constant dense<0.000000e+00> : vector<3xf32>
    %107 = vector.multi_reduction <add>, %102, %cst_122 [0] : vector<80x3xf32> to vector<3xf32>
    %108 = vector.shape_cast %107 : vector<3xf32> to vector<1x3xf32>
    %109 = arith.addf %72, %108 : vector<1x3xf32>
    %110 = arith.mulf %102, %102 : vector<80x3xf32>
    %cst_123 = arith.constant dense<0.000000e+00> : vector<3xf32>
    %111 = vector.multi_reduction <add>, %110, %cst_123 [0] : vector<80x3xf32> to vector<3xf32>
    %112 = vector.shape_cast %111 : vector<3xf32> to vector<1x3xf32>
    %113 = arith.addf %76, %112 : vector<1x3xf32>
    %cst_124 = arith.constant 0.000000e+00 : f32
    %114 = vector.broadcast %cst_124 : f32 to vector<80x3xf32>
    %c0_125 = arith.constant 0 : index
    %c11_126 = arith.constant 11 : index
    %c0_127 = arith.constant 0 : index
    %115 = vector.load %arg2[%c0_125, %c11_126, %c0_127] : memref<1x110x16xbf16, #tpu.memory_space<vmem>>, vector<1x80x16xbf16>
    %116 = vector.shape_cast %115 : vector<1x80x16xbf16> to vector<80x16xbf16>
    %c3 = arith.constant 3 : index
    %c0_128 = arith.constant 0 : index
    %c0_129 = arith.constant 0 : index
    %c0_130 = arith.constant 0 : index
    %c0_131 = arith.constant 0 : index
    %117 = vector.load %arg3[%c3, %c0_128, %c0_129, %c0_130, %c0_131] : memref<4x2x2x16x3xbf16, #tpu.memory_space<vmem>>, vector<1x1x1x16x3xbf16>
    %118 = vector.shape_cast %117 : vector<1x1x1x16x3xbf16> to vector<16x3xbf16>
    %cst_132 = arith.constant dense<0.000000e+00> : vector<80x3xf32>
    %119 = tpu.matmul %116, %118, %cst_132 {dimension_numbers = #tpu.dot_dimension_numbers<[1], [0], [0], [1], [0, 0, 1, 1], [], []>} : vector<80x16xbf16>, vector<16x3xbf16>, vector<80x3xf32> -> vector<80x3xf32>
    %120 = arith.addf %114, %119 : vector<80x3xf32>
    %c0_133 = arith.constant 0 : index
    %c12_134 = arith.constant 12 : index
    %c0_135 = arith.constant 0 : index
    %121 = vector.load %arg2[%c0_133, %c12_134, %c0_135] : memref<1x110x16xbf16, #tpu.memory_space<vmem>>, vector<1x80x16xbf16>
    %122 = vector.shape_cast %121 : vector<1x80x16xbf16> to vector<80x16xbf16>
    %c3_136 = arith.constant 3 : index
    %c0_137 = arith.constant 0 : index
    %c1_138 = arith.constant 1 : index
    %c0_139 = arith.constant 0 : index
    %c0_140 = arith.constant 0 : index
    %123 = vector.load %arg3[%c3_136, %c0_137, %c1_138, %c0_139, %c0_140] : memref<4x2x2x16x3xbf16, #tpu.memory_space<vmem>>, vector<1x1x1x16x3xbf16>
    %124 = vector.shape_cast %123 : vector<1x1x1x16x3xbf16> to vector<16x3xbf16>
    %cst_141 = arith.constant dense<0.000000e+00> : vector<80x3xf32>
    %125 = tpu.matmul %122, %124, %cst_141 {dimension_numbers = #tpu.dot_dimension_numbers<[1], [0], [0], [1], [0, 0, 1, 1], [], []>} : vector<80x16xbf16>, vector<16x3xbf16>, vector<80x3xf32> -> vector<80x3xf32>
    %126 = arith.addf %120, %125 : vector<80x3xf32>
    %c0_142 = arith.constant 0 : index
    %c21_143 = arith.constant 21 : index
    %c0_144 = arith.constant 0 : index
    %127 = vector.load %arg2[%c0_142, %c21_143, %c0_144] : memref<1x110x16xbf16, #tpu.memory_space<vmem>>, vector<1x80x16xbf16>
    %128 = vector.shape_cast %127 : vector<1x80x16xbf16> to vector<80x16xbf16>
    %c3_145 = arith.constant 3 : index
    %c1_146 = arith.constant 1 : index
    %c0_147 = arith.constant 0 : index
    %c0_148 = arith.constant 0 : index
    %c0_149 = arith.constant 0 : index
    %129 = vector.load %arg3[%c3_145, %c1_146, %c0_147, %c0_148, %c0_149] : memref<4x2x2x16x3xbf16, #tpu.memory_space<vmem>>, vector<1x1x1x16x3xbf16>
    %130 = vector.shape_cast %129 : vector<1x1x1x16x3xbf16> to vector<16x3xbf16>
    %cst_150 = arith.constant dense<0.000000e+00> : vector<80x3xf32>
    %131 = tpu.matmul %128, %130, %cst_150 {dimension_numbers = #tpu.dot_dimension_numbers<[1], [0], [0], [1], [0, 0, 1, 1], [], []>} : vector<80x16xbf16>, vector<16x3xbf16>, vector<80x3xf32> -> vector<80x3xf32>
    %132 = arith.addf %126, %131 : vector<80x3xf32>
    %c0_151 = arith.constant 0 : index
    %c22 = arith.constant 22 : index
    %c0_152 = arith.constant 0 : index
    %133 = vector.load %arg2[%c0_151, %c22, %c0_152] : memref<1x110x16xbf16, #tpu.memory_space<vmem>>, vector<1x80x16xbf16>
    %134 = vector.shape_cast %133 : vector<1x80x16xbf16> to vector<80x16xbf16>
    %c3_153 = arith.constant 3 : index
    %c1_154 = arith.constant 1 : index
    %c1_155 = arith.constant 1 : index
    %c0_156 = arith.constant 0 : index
    %c0_157 = arith.constant 0 : index
    %135 = vector.load %arg3[%c3_153, %c1_154, %c1_155, %c0_156, %c0_157] : memref<4x2x2x16x3xbf16, #tpu.memory_space<vmem>>, vector<1x1x1x16x3xbf16>
    %136 = vector.shape_cast %135 : vector<1x1x1x16x3xbf16> to vector<16x3xbf16>
    %cst_158 = arith.constant dense<0.000000e+00> : vector<80x3xf32>
    %137 = tpu.matmul %134, %136, %cst_158 {dimension_numbers = #tpu.dot_dimension_numbers<[1], [0], [0], [1], [0, 0, 1, 1], [], []>} : vector<80x16xbf16>, vector<16x3xbf16>, vector<80x3xf32> -> vector<80x3xf32>
    %138 = arith.addf %132, %137 : vector<80x3xf32>
    %139 = arith.mulf %138, %0 : vector<80x3xf32>
    %140 = arith.truncf %139 : vector<80x3xf32> to vector<80x3xbf16>
    %c0_159 = arith.constant 0 : index
    %c3_160 = arith.constant 3 : index
    %c0_161 = arith.constant 0 : index
    %c0_162 = arith.constant 0 : index
    %141 = vector.load %arg5[%c0_159, %c3_160, %c0_161, %c0_162] : memref<1x4x80x3xbf16, #tpu.memory_space<vmem>>, vector<1x1x80x3xbf16>
    %142 = vector.shape_cast %141 : vector<1x1x80x3xbf16> to vector<80x3xbf16>
    %143 = vector.shape_cast %140 : vector<80x3xbf16> to vector<1x1x80x3xbf16>
    tpu.vector_store %arg5[%c0_159, %c3_160, %c0_161, %c0_162], %143 {strides = array<i32>} : memref<1x4x80x3xbf16, #tpu.memory_space<vmem>>, vector<1x1x80x3xbf16>,
    %cst_163 = arith.constant dense<0.000000e+00> : vector<3xf32>
    %144 = vector.multi_reduction <add>, %139, %cst_163 [0] : vector<80x3xf32> to vector<3xf32>
    %145 = vector.shape_cast %144 : vector<3xf32> to vector<1x3xf32>
    %146 = arith.addf %109, %145 : vector<1x3xf32>
    %147 = arith.mulf %139, %139 : vector<80x3xf32>
    %cst_164 = arith.constant dense<0.000000e+00> : vector<3xf32>
    %148 = vector.multi_reduction <add>, %147, %cst_164 [0] : vector<80x3xf32> to vector<3xf32>
    %149 = vector.shape_cast %148 : vector<3xf32> to vector<1x3xf32>
    %150 = arith.addf %113, %149 : vector<1x3xf32>
    %c0_165 = arith.constant 0 : index
    %c0_166 = arith.constant 0 : index
    %c0_167 = arith.constant 0 : index
    %151 = vector.load %arg6[%c0_165, %c0_166, %c0_167] : memref<1x1x3xf32, #tpu.memory_space<vmem>>, vector<1x1x3xf32>
    %152 = vector.shape_cast %151 : vector<1x1x3xf32> to vector<1x3xf32>
    %153 = vector.shape_cast %146 : vector<1x3xf32> to vector<1x1x3xf32>
    tpu.vector_store %arg6[%c0_165, %c0_166, %c0_167], %153 {strides = array<i32>} : memref<1x1x3xf32, #tpu.memory_space<vmem>>, vector<1x1x3xf32>,
    %c0_168 = arith.constant 0 : index
    %c0_169 = arith.constant 0 : index
    %c0_170 = arith.constant 0 : index
    %154 = vector.load %arg7[%c0_168, %c0_169, %c0_170] : memref<1x1x3xf32, #tpu.memory_space<vmem>>, vector<1x1x3xf32>
    %155 = vector.shape_cast %154 : vector<1x1x3xf32> to vector<1x3xf32>
    %156 = vector.shape_cast %150 : vector<1x3xf32> to vector<1x1x3xf32>
    tpu.vector_store %arg7[%c0_168, %c0_169, %c0_170], %156 {strides = array<i32>} : memref<1x1x3xf32, #tpu.memory_space<vmem>>, vector<1x1x3xf32>,
    return
  }
  func.func @transform_0(%arg0: i32, %arg1: i32) -> (i32, i32, i32) {
    %c0_i32 = arith.constant 0 : i32
    %c0_i32_0 = arith.constant 0 : i32
    %c0_i32_1 = arith.constant 0 : i32
    return %arg1, %c0_i32, %c0_i32_0 : i32, i32, i32
  }
  func.func @transform_1(%arg0: i32, %arg1: i32) -> (i32, i32, i32, i32, i32) {
    %c0_i32 = arith.constant 0 : i32
    %c0_i32_0 = arith.constant 0 : i32
    %c0_i32_1 = arith.constant 0 : i32
    %c0_i32_2 = arith.constant 0 : i32
    %c0_i32_3 = arith.constant 0 : i32
    return %c0_i32, %c0_i32_0, %c0_i32_1, %c0_i32_2, %arg0 : i32, i32, i32, i32, i32
  }
  func.func @transform_2(%arg0: i32, %arg1: i32) -> (i32, i32) {
    %c0_i32 = arith.constant 0 : i32
    %c0_i32_0 = arith.constant 0 : i32
    return %c0_i32, %arg0 : i32, i32
  }
  func.func @transform_3(%arg0: i32, %arg1: i32) -> (i32, i32, i32, i32) {
    %c0_i32 = arith.constant 0 : i32
    %c0_i32_0 = arith.constant 0 : i32
    %c0_i32_1 = arith.constant 0 : i32
    return %arg1, %c0_i32, %c0_i32_0, %arg0 : i32, i32, i32, i32
  }
  func.func @transform_4(%arg0: i32, %arg1: i32) -> (i32, i32, i32) {
    %c0_i32 = arith.constant 0 : i32
    %c0_i32_0 = arith.constant 0 : i32
    return %arg1, %c0_i32, %arg0 : i32, i32, i32
  }
  func.func @transform_5(%arg0: i32, %arg1: i32) -> (i32, i32, i32) {
    %c0_i32 = arith.constant 0 : i32
    %c0_i32_0 = arith.constant 0 : i32
    return %arg1, %c0_i32, %arg0 : i32, i32, i32
  }
}

</mosaic_0001>

<bundles_post_ra>
// kernel: dc_decoder_forward.6
= control target key start
LH: loop header
LB: loop body
LE: loop exit
PB: predicated region body
PF: predicated region fallthrough
CT: control target
= control target key end

     0   :  { %s73_s0 = inlined_call_operand.vmem [shape: bf16[8,128], index: 0, kind: input, shape index: {}]   ;;  %s74_s1 = inlined_call_operand.vmem [shape: f32[1,128], index: 1, kind: input, shape index: {}]   ;;  %s75_s2 = inlined_call_operand.vmem [shape: f32[1,128], index: 2, kind: input, shape index: {}]   ;;  %s76_s3 = inlined_call_operand.vmem [shape: bf16[8,128], index: 3, kind: output, shape index: {}]  }
   0x1   :  { %v14_v0 = vld [vmem:[%s73_s0] sm:$0xf] }
   0x2   :  { %v39_v1 = vld [vmem:[%s74_s1] ss:$0 sm:$0xff]  ;;  %v15_v2 = vunpack.c.l.bf16 %v14_v0 }
   0x3   :  { %v40_v3 = vld [vmem:[%s75_s2] ss:$0 sm:$0xff] }
   0x4   :  { %v23_v4 = vmul.f32 %v39_v1, %v15_v2 }
   0x6   :  { %v31_v5 = vadd.f32 %v40_v3, %v23_v4 }
   0x8   :  { %v32_v6 = vmax.f32 %v31_v5, 0.0 }
   0xa   :  { %v33_v7 = vpack.c.bf16 %v32_v6, %v32_v6 }
   0xc   :  { %34 = vst [vmem:[%s76_s3] sm:$0xf] %v33_v7 }

// kernel: dc_decoder_forward.5
= control target key start
LH: loop header
LB: loop body
LE: loop exit
PB: predicated region body
PF: predicated region fallthrough
CT: control target
= control target key end

     0   :  { %s585_s15 = smov 0   ;;  %s587_s16 = smov 0   ;;  %s636_s0 = inlined_call_operand.vmem [shape: bf16[2,32], index: 0, kind: input, shape index: {}]   ;;  %s637_s1 = inlined_call_operand.vmem [shape: bf16[16,32,32], index: 1, kind: input, shape index: {}]   ;;  %s638_s2 = inlined_call_operand.vmem [shape: bf16[16,2,32], index: 2, kind: output, shape index: {0}]   ;;  %s639_s3 = inlined_call_operand.vmem [shape: f32[16,1,32], index: 3, kind: output, shape index: {1}]   ;;  %s640_s4 = inlined_call_operand.vmem [shape: f32[16,1,32], index: 4, kind: output, shape index: {2}]  }
   0x1   :  { %s589_s17 = smov 0  }
   0x2 LB: > { %s27_s18 = sadd.s32 1, %s552_s16  ;;  %p486_p0 = scmp.ge.s32.totalorder %s556_s17, 1  ;;  %s556_s17 = sphi %s589_s17, %s15_s17   ;;  %s552_s16 = sphi %s587_s16, %s642_s16   ;;  %s548_s15 = sphi %s585_s15, %s641_s15  }
   0x3   : > { %p29_p1 = scmp.ge.s32.totalorder %s27_s18, 16  ;;  %p190_p2 = scmp.lt.s32.totalorder %s556_s17, 17 }
   0x5   : > { %s644_s18 = smov (%p29_p1, %s27_s18), 0  ;;  %p191_p3 = pnand %p486_p0, %p190_p2 }
   0x6   : > { %p232_p4 = scmp.lt.s32.totalorder (!%p191_p3), %s548_s15, 15 }
   0x7   : > { %194 = sbr.rel (%p191_p3) target bundleno = 232 (0xe8), region = 28 }
   0xc   : > { %v558_v0 = vmov 0.0   ;;  %vm559_vm0 = vmmov 0   ;;  %s646_s15 = smov (!%p232_p4, %s548_s15), 15  ;;  %v259_v3 = vld [vmem:[%s636_s0] sm:$0x1]  ;;  %vm276_vm1 = vcmask 261120  }
   0xd   : > { %498 = vmatprep.subr.bf16.mxu0 %v558_v0  ;;  %502 = vmatprep.mubr.msk.bf16.mxu0 %vm559_vm0, %v558_v0  ;;  %s494_s19 = sshll.u32 %s646_s15, 4  ;;  %vm323_vm2 = vcmask 254976   ;;  %s245_s27 = scalar_lea.vmem %s638_s2, %s646_s15  ;;  %vm321_vm3 = vcmask 253952  }
   0xe   : > { %s239_s22 = scalar_lea.vmem %s637_s1, %s494_s19  ;;  %s251_s30 = scalar_lea.vmem %s639_s3, %s646_s15 }
   0xf   : > { %v532_v1 = vld [vmem:[%s239_s22 + $0x8] sm:$0xff]   ;;  %v533_v2 = vld [vmem:[%s239_s22] sm:$0xff]   ;;  %s257_s7 = scalar_lea.vmem %s640_s4, %s646_s15 }
  0x10   : > { %499 = vmatpush3.bf16.msra.mxu0 %v532_v1 }
  0x11   : > { %500 = vmatprep.subr.bf16.mxu0 %v558_v0 }
  0x14   : > { %501 = vmatpush3.bf16.msra.mxu0 %v533_v2 }
  0x17   : > { %503 = vmatmul.mubr.msk.bf16.vlgmr.msra.gmra.mxu0 %vm276_vm1, %v259_v3 }
  0xd7   : > { %v314_v4 = vpop.f32.mrf.mxu0 }
  0xd8   : > { %v320_v5 = vpack.c.bf16 %v314_v4, %v314_v4  ;;  %v324_v6 = vsel %vm323_vm2, %v314_v4, 0.0  ;;  %v332_v7 = vmul.f32 %v314_v4, %v314_v4 }
  0xd9   : > { %v325_v8 = vrot.slane %v324_v6, 4  ;;  %v504_v9 = vpop.f32.mrf.mxu0 }
  0xda   : > { %322 = vst.msk [vmem:[%s245_s27] sm:$0x1] %vm321_vm3, %v320_v5  ;;  %v333_v10 = vsel %vm323_vm2, %v332_v7, 0.0 }
  0xdb   : > { %v326_v11 = vadd.f32 %v325_v8, %v324_v6  ;;  %v334_v12 = vrot.slane %v333_v10, 4  ;;  %v317_v13 = vpop.f32.mrf.mxu0 }
  0xdd   : > { %v327_v14 = vrot.slane %v326_v11, 2  ;;  %v335_v15 = vadd.f32 %v334_v12, %v333_v10  ;;  %v505_v16 = vpop.f32.mrf.mxu0 }
  0xdf   : > { %v328_v17 = vadd.f32 %v327_v14, %v326_v11  ;;  %v336_v18 = vrot.slane %v335_v15, 2 }
  0xe1   : > { %v329_v19 = vrot.slane %v328_v17, 1  ;;  %v337_v20 = vadd.f32 %v336_v18, %v335_v15 }
  0xe3   : > { %v330_v21 = vadd.f32 %v329_v19, %v328_v17  ;;  %v338_v22 = vrot.slane %v337_v20, 1 }
  0xe5   : > { %331 = vst.msk [vmem:[%s251_s30] sm:$0x1] %vm321_vm3, %v330_v21  ;;  %v339_v23 = vadd.f32 %v338_v22, %v337_v20 }
  0xe7   : > { %340 = vst.msk [vmem:[%s257_s7] sm:$0x1] %vm321_vm3, %v339_v23 }
  0xe8 PF: > { %s15_s17 = sadd.s32 1, %s556_s17   ;;  %s641_s15 = smov %s552_s16 }
  0xe9   : > { %p12_p5 = scmp.ge.s32.totalorder %s15_s17, 18   ;;  %s642_s16 = smov %s644_s18 }
  0xeb   :  { %14 = sbr.rel (!%p12_p5) target bundleno = 2 (0x2), region = 82 }

// kernel: dc_decoder_forward.8
= control target key start
LH: loop header
LB: loop body
LE: loop exit
PB: predicated region body
PF: predicated region fallthrough
CT: control target
= control target key end

     0   :  { %s118_s0 = inlined_call_operand.vmem [shape: bf16[24,128], index: 0, kind: input, shape index: {}]   ;;  %s119_s1 = inlined_call_operand.vmem [shape: f32[1,128], index: 1, kind: input, shape index: {}]   ;;  %s120_s2 = inlined_call_operand.vmem [shape: f32[1,128], index: 2, kind: input, shape index: {}]   ;;  %s121_s3 = inlined_call_operand.vmem [shape: bf16[24,128], index: 3, kind: output, shape index: {}]  }
   0x1   :  { %v72_v0 = vld [vmem:[%s118_s0] sm:$0xff]   ;;  %v16_v4 = vld [vmem:[%s118_s0 + $0x8] sm:$0xf] }
   0x2   :  { %v63_v1 = vld [vmem:[%s119_s1] ss:$0 sm:$0xff]  ;;  %v73_v2 = vunpack.c.l.bf16 %v72_v0  ;;  %v74_v3 = vunpack.c.h.bf16 %v72_v0  ;;  %v19_v6 = vunpack.c.l.bf16 %v16_v4 }
   0x3   :  { %v64_v5 = vld [vmem:[%s120_s2] ss:$0 sm:$0xff] }
   0x4   :  { %v27_v7 = vmul.f32 %v73_v2, %v63_v1  ;;  %v28_v8 = vmul.f32 %v74_v3, %v63_v1  ;;  %v29_v9 = vmul.f32 %v63_v1, %v19_v6 }
   0x6   :  { %v37_v10 = vadd.f32 %v64_v5, %v27_v7  ;;  %v38_v11 = vadd.f32 %v64_v5, %v28_v8  ;;  %v39_v12 = vadd.f32 %v64_v5, %v29_v9 }
   0x8   :  { %v40_v13 = vmax.f32 %v37_v10, 0.0  ;;  %v41_v14 = vmax.f32 %v38_v11, 0.0  ;;  %v42_v15 = vmax.f32 %v39_v12, 0.0 }
   0xa   :  { %v78_v16 = vpack.c.bf16 %v41_v14, %v40_v13  ;;  %v70_v17 = vpack.c.bf16 %v42_v15, %v42_v15 }
   0xc   :  { %79 = vst [vmem:[%s121_s3] sm:$0xff] %v78_v16   ;;  %58 = vst [vmem:[%s121_s3 + $0x8] sm:$0xf] %v70_v17 }

// kernel: dc_decoder_forward.7
= control target key start
LH: loop header
LB: loop body
LE: loop exit
PB: predicated region body
PF: predicated region fallthrough
CT: control target
= control target key end

     0   :  { %s2647_s18 = smov 0   ;;  %s2649_s19 = smov 0   ;;  %s2996_s0 = inlined_call_operand.vmem [shape: bf16[2,42,32], index: 0, kind: input, shape index: {}]   ;;  %s2997_s1 = inlined_call_operand.vmem [shape: bf16[4,2,2,32,16], index: 1, kind: input, shape index: {}]   ;;  %s2998_s2 = inlined_call_operand.vmem [shape: f32[24,16], index: 2, kind: input, shape index: {}]   ;;  %s2999_s3 = inlined_call_operand.vmem [shape: bf16[2,4,24,16], index: 3, kind: output, shape index: {0}]   ;;  %s3000_s4 = inlined_call_operand.vmem [shape: f32[2,1,16], index: 4, kind: output, shape index: {1}]   ;;  %s3001_s5 = inlined_call_operand.vmem [shape: f32[2,1,16], index: 5, kind: output, shape index: {2}]  }
   0x1   :  { %s2651_s20 = smov 0  }
   0x2 LB: > { %s25_s21 = sadd.s32 1, %s2611_s19  ;;  %p2129_p0 = scmp.ge.s32.totalorder %s2615_s20, 1  ;;  %s2615_s20 = sphi %s2651_s20, %s16_s20   ;;  %s2611_s19 = sphi %s2649_s19, %s3003_s19   ;;  %s2607_s18 = sphi %s2647_s18, %s3002_s18  }
   0x3   : > { %p26_p1 = scmp.ge.s32.totalorder %s25_s21, 2  ;;  %p228_p2 = scmp.lt.s32.totalorder %s2615_s20, 3 }
   0x5   : > { %s3005_s21 = smov (%p26_p1, %s25_s21), 0  ;;  %p229_p3 = pnand %p2129_p0, %p228_p2 }
   0x6   : > { %p279_p4 = scmp.lt.s32.totalorder (!%p229_p3), %s2607_s18, 1 }
   0x7   : > { %232 = sbr.rel (%p229_p3) target bundleno = 310 (0x136), region = 32 }
   0xc   : > { %v2535_v0 = vld [vmem:[%s2997_s1 + $0x8] sm:$0xff]   ;;  %v2536_v1 = vld [vmem:[%s2997_s1 + $0x18] sm:$0xff]   ;;  %v2537_v2 = vld [vmem:[%s2997_s1] sm:$0xff]   ;;  %s3007_s18 = smov (!%p279_p4, %s2607_s18), 1  ;;  %vm367_vm0 = vcmask 261120   ;;  %vm501_vm2 = vcmask 1044480  }
   0xd   : > { %2389 = vmatprep.subr.bf16.mxu1 %v2535_v0  ;;  %2381 = vmatprep.subr.bf16.mxu0 %v2536_v1  ;;  %v2538_v3 = vld [vmem:[%s2997_s1 + $0x10] sm:$0xff]   ;;  %s2509_s30 = smul.u32 24, %s3007_s18  ;;  %v2542_v4 = vld [vmem:[%s2997_s1 + $0x38] sm:$0xff]   ;;  %v2544_v5 = vld [vmem:[%s2997_s1 + $0x28] sm:$0xff]   ;;  %vm339_vm1 = vsmask.f32 7424  ;;  %s305_s16 = scalar_lea.vmem %s3000_s4, %s3007_s18 }
   0xe   : > { %2390 = vmatpush3.bf16.msra.mxu1 %v2535_v0  ;;  %2382 = vmatpush3.bf16.msra.mxu0 %v2536_v1  ;;  %v2545_v15 = vld [vmem:[%s2997_s1 + $0x30] sm:$0xff]   ;;  %vm583_vm3 = vsmask.f32 4352  ;;  %v2548_v23 = vld [vmem:[%s2997_s1 + $0x48] sm:$0xff]   ;;  %v2546_v39 = vld [vmem:[%s2997_s1 + $0x20] sm:$0xff]   ;;  %vm743_vm4 = vcmask 1046528   ;;  %s311_s22 = scalar_lea.vmem %s3001_s5, %s3007_s18 }
   0xf   : > { %2391 = vmatprep.subr.bf16.mxu1 %v2537_v2  ;;  %2383 = vmatprep.subr.bf16.mxu0 %v2538_v3  ;;  %s2686_s10 = scalar_lea.vmem %s2996_s0, %s2509_s30  ;;  %v2551_v50 = vld [vmem:[%s2997_s1 + $0x40] sm:$0xff]   ;;  %v2550_v53 = vld [vmem:[%s2997_s1 + $0x58] sm:$0xff]   ;;  %v2552_v60 = vld [vmem:[%s2997_s1 + $0x50] sm:$0xff]   ;;  %vm1400_vm5 = vsmask.f32 5376  ;;  %vm1318_vm6 = vcmask 1045504  }
  0x10   : > { %v316_v6 = vld [vmem:[%s2686_s10] sm:$0xf]  ;;  %v317_v7 = vld [vmem:[%s2686_s10 + $0x4] sm:$0xf]  ;;  %v318_v11 = vld [vmem:[%s2686_s10 + $0x8] sm:$0xf] }
  0x11   : > { %v488_v8 = vld [vmem:[%s2686_s10] sm:$0x8]  ;;  %v2136_v9 = vcombine.low %v316_v6, %v317_v7  ;;  %v323_v12 = vld [vmem:[%s2686_s10 + $0xc] sm:$0x1]  ;;  %v2142_v13 = vcombine.low %v318_v11, %v318_v11  ;;  %v719_v44 = vld [vmem:[%s2686_s10 + $0x4] sm:$0xf] }
  0x12   : > { %2392 = vmatpush3.bf16.msra.mxu1 %v2537_v2  ;;  %v2151_v10 = vcombine.low %v488_v8, %v317_v7  ;;  %2384 = vmatpush3.bf16.msra.mxu0 %v2538_v3  ;;  %v2137_v14 = vcombine.low %v318_v11, %v323_v12  ;;  %v574_v18 = vld [vmem:[%s2686_s10 + $0xc] sm:$0xf]  ;;  %v718_v43 = vld [vmem:[%s2686_s10] sm:$0xf]  ;;  %v720_v45 = vld [vmem:[%s2686_s10 + $0x8] sm:$0xf] }
  0x13   : > { %2405 = vmatprep.subr.bf16.mxu1 %v2542_v4  ;;  %2397 = vmatprep.subr.bf16.mxu0 %v2544_v5  ;;  %v341_v16 = vshrl.u32 %v2136_v9, 16  ;;  %v343_v17 = vshll.u32 %v2136_v9, 16  ;;  %v2161_v21 = vcombine.low %v318_v11, %v574_v18  ;;  %v489_v26 = vld [vmem:[%s2686_s10 + $0xc] sm:$0x7]  ;;  %v2183_v48 = vcombine.low %v718_v43, %v719_v44  ;;  %v727_v52 = vld [vmem:[%s2686_s10] sm:$0xe] }
  0x14   : > { %2393 = vmatprep.mubr.msk.bf16.mxu1 %vm367_vm0, %v2136_v9  ;;  %v348_v19 = vshll.u32 %v2137_v14, 16  ;;  %v352_v20 = vshrl.u32 %v2137_v14, 16  ;;  %v585_v22 = vshrl.u32 %v2151_v10, 16  ;;  %v588_v25 = vshll.u32 %v2151_v10, 16  ;;  %v721_v47 = vld [vmem:[%s2686_s10 + $0xc] sm:$0x1] }
  0x15   : > { %2394 = vmatmul.mubr.msk.bf16.vlgmr.msra.gmra.mxu1 %vm367_vm0, %v2142_v13  ;;  %v345_v24 = vrot.slane %v343_v17, 1  ;;  %v593_v29 = vshrl.u32 %v2161_v21, 16  ;;  %v596_v30 = vshll.u32 %v2161_v21, 16  ;;  %v2152_v33 = vcombine.low %v318_v11, %v489_v26  ;;  %v2555_v0 = vld [vmem:[%s2997_s1 + $0x78] sm:$0xff]   ;;  %v2740_v1 = vld [vmem:[%s2686_s10 + $0xc] sm:$0xf] }
  0x16   : > { %2406 = vmatpush3.bf16.msra.mxu1 %v2542_v4  ;;  %v350_v27 = vrot.slane %v348_v19, 1  ;;  %v587_v28 = vrot.slane %v585_v22, 3  ;;  %v590_v32 = vrot.slane %v588_v25, 4  ;;  %v502_v34 = vrot.slane %v2151_v10, 3  ;;  %v897_v3 = vld [vmem:[%s2686_s10] sm:$0x8] }
  0x17   : > { %2407 = vmatprep.subr.bf16.mxu1 %v2545_v15  ;;  %v346_v31 = vor.u32 %v345_v24, %v341_v16  ;;  %v595_v36 = vrot.slane %v593_v29, 3  ;;  %v598_v37 = vrot.slane %v596_v30, 4  ;;  %v503_v41 = vrot.slane %v2152_v33, 3  ;;  %v2557_v12 = vld [vmem:[%s2997_s1 + $0x68] sm:$0xff]   ;;  %v2558_v13 = vld [vmem:[%s2997_s1 + $0x70] sm:$0xff]   ;;  %v2559_v29 = vld [vmem:[%s2997_s1 + $0x60] sm:$0xff]  }
  0x18   : > { %v354_v35 = vor.u32 %v352_v20, %v350_v27  ;;  %v591_v40 = vor.u32 %v590_v32, %v587_v28  ;;  %v2722_v51 = vcombine.low %v720_v45, %v721_v47  ;;  %v817_v54 = vshrl.u32 %v2183_v48, 16  ;;  %v1121_v20 = vld [vmem:[%s2686_s10 + $0x8] sm:$0xf]  ;;  %v1122_v22 = vld [vmem:[%s2686_s10 + $0xc] sm:$0x7]  ;;  %s2510_s28 = smul.u32 48, %s3007_s18 }
  0x19   : > { %v351_v38 = vsel %vm339_vm1, %v346_v31, %v350_v27  ;;  %v599_v42 = vor.u32 %v598_v37, %v595_v36  ;;  %v504_v46 = vsel %vm501_vm2, %v502_v34, %v503_v41  ;;  %v819_v55 = vshll.u32 %v2183_v48, 16  ;;  %v2568_v24 = vld [vmem:[%s2686_s10] sm:$0xf8]   ;;  %v2562_v25 = vld [vmem:[%s2997_s1 + $0x88] sm:$0xff]  }
  0x1a   : > { %2408 = vmatpush3.bf16.msra.mxu1 %v2545_v15  ;;  %2385 = vmatprep.mubr.msk.bf16.mxu0 %vm367_vm0, %v351_v38  ;;  %v2177_v56 = vcombine.low %v727_v52, %v719_v44  ;;  %v824_v57 = vshll.u32 %v2722_v51, 16  ;;  %v828_v58 = vshrl.u32 %v2722_v51, 16  ;;  %v745_v59 = vrot.slane %v2722_v51, 1  ;;  %v1301_v47 = vld [vmem:[%s2686_s10 + $0xc] sm:$0xf]  ;;  %v2567_v51 = vld [vmem:[%s2997_s1 + $0x90] sm:$0xff]   ;;  %s2887_s11 = scalar_lea.vmem %s2999_s3, %s2510_s28 }
  0x1b   : > { %2421 = vmatprep.subr.bf16.mxu1 %v2548_v23  ;;  %2386 = vmatmul.mubr.msk.bf16.vlgmr.msra.gmra.mxu0 %vm367_vm0, %v354_v35  ;;  %v600_v49 = vsel %vm583_vm3, %v591_v40, %v599_v42  ;;  %v821_v61 = vrot.slane %v819_v55, 1  ;;  %v2193_v4 = vcombine.low %v720_v45, %v2740_v1  ;;  %v2202_v6 = vcombine.low %v719_v44, %v720_v45  ;;  %v2566_v35 = vld [vmem:[%s2997_s1 + $0x80] sm:$0xff]   ;;  %v2571_v52 = vld [vmem:[%s2997_s1 + $0xb8] sm:$0xff]   ;;  %v1302_v55 = vld [vmem:[%s2686_s10 + $0x10] sm:$0x3] }
  0x1c   : > { %2398 = vmatpush3.bf16.msra.mxu0 %v2544_v5  ;;  %2401 = vmatprep.mubr.msk.bf16.mxu0 %vm367_vm0, %v504_v46  ;;  %v744_v62 = vrot.slane %v2177_v56, 1  ;;  %v826_v63 = vrot.slane %v824_v57, 1  ;;  %v2192_v7 = vcombine.low %v897_v3, %v719_v44  ;;  %v2228_v28 = vcombine.low %v1121_v20, %v1122_v22  ;;  %v2565_v44 = vld [vmem:[%s2997_s1 + $0x98] sm:$0xff]   ;;  %v2575_v48 = vld [vmem:[%s2686_s10 + $0x4] sm:$0xfc]  }
  0x1d   : > { %2399 = vmatprep.subr.bf16.mxu0 %v2546_v39  ;;  %2409 = vmatprep.mubr.msk.bf16.mxu1 %vm367_vm0, %v600_v49  ;;  %v822_v2 = vor.u32 %v821_v61, %v817_v54  ;;  %v919_v10 = vshrl.u32 %v2193_v4, 16  ;;  %v922_v11 = vshll.u32 %v2193_v4, 16  ;;  %v2203_v30 = vcombine.low %v2740_v1, %v2740_v1  ;;  %v1391_v49 = vld [vmem:[%s2686_s10 + $0x10] sm:$0x7] }
  0x1e   : > { %2410 = vmatmul.mubr.msk.bf16.vlgmr.msra.gmra.mxu1 %vm367_vm0, %v599_v42  ;;  %v830_v5 = vor.u32 %v828_v58, %v826_v63  ;;  %v746_v9 = vsel %vm743_vm4, %v744_v62, %v745_v59  ;;  %v911_v14 = vshrl.u32 %v2192_v7, 16  ;;  %v914_v15 = vshll.u32 %v2192_v7, 16  ;;  %v2804_v7 = vld [vmem:[%s2686_s10 + $0x4] sm:$0xf] }
  0x1f   : > { %2422 = vmatpush3.bf16.msra.mxu1 %v2548_v23  ;;  %v827_v8 = vsel %vm339_vm1, %v822_v2, %v826_v63  ;;  %v921_v16 = vrot.slane %v919_v10, 3  ;;  %v924_v17 = vrot.slane %v922_v11, 4  ;;  %v1128_v23 = vld [vmem:[%s2686_s10 + $0xc] sm:$0xf]  ;;  %v1230_v31 = vrot.slane %v2568_v24, 3 }
  0x20   : > { %2400 = vmatpush3.bf16.msra.mxu0 %v2546_v39  ;;  %2423 = vmatprep.subr.bf16.mxu1 %v2551_v50  ;;  %v913_v18 = vrot.slane %v911_v14, 3  ;;  %v916_v19 = vrot.slane %v914_v15, 4  ;;  %v2223_v27 = vcombine.low %v1121_v20, %v1128_v23  ;;  %v1145_v32 = vshrl.u32 %v2568_v24, 16  ;;  %v2572_v63 = vld [vmem:[%s2997_s1 + $0xa8] sm:$0xff]  }
  0x21   : > { %2413 = vmatprep.subr.bf16.mxu0 %v2550_v53  ;;  %2425 = vmatprep.mubr.msk.bf16.mxu1 %vm367_vm0, %v827_v8  ;;  %v925_v21 = vor.u32 %v924_v17, %v921_v16  ;;  %v1148_v33 = vshll.u32 %v2568_v24, 16  ;;  %v1231_v36 = vrot.slane %v2228_v28, 3  ;;  %v1405_v54 = vshll.u32 %v2575_v48, 16  ;;  %v2807_v8 = vld [vmem:[%s2686_s10 + $0x8] sm:$0xf]  ;;  %v2580_v24 = vld [vmem:[%s2997_s1 + $0xc0] sm:$0xff]  }
  0x22   : > { %v917_v26 = vor.u32 %v916_v19, %v913_v18  ;;  %v1153_v37 = vshrl.u32 %v2223_v27, 16  ;;  %v1156_v38 = vshll.u32 %v2223_v27, 16  ;;  %v1147_v39 = vrot.slane %v1145_v32, 3  ;;  %v2574_v18 = vld [vmem:[%s2997_s1 + $0xa0] sm:$0xff]  }
  0x23   : > { %2402 = vmatmul.mubr.msk.bf16.vlgmr.msra.gmra.mxu0 %vm367_vm0, %v503_v41  ;;  %2424 = vmatpush3.bf16.msra.mxu1 %v2551_v50  ;;  %v1150_v40 = vrot.slane %v1148_v33, 4  ;;  %v1232_v41 = vsel %vm501_vm2, %v1230_v31, %v1231_v36  ;;  %v2247_v50 = vcombine.low %v1301_v47, %v1391_v49  ;;  %v2238_v58 = vcombine.low %v1301_v47, %v1302_v55  ;;  %v2579_v31 = vld [vmem:[%s2997_s1 + $0xd8] sm:$0xff]   ;;  %v1814_v32 = vld [vmem:[%s2686_s10 + $0x4] sm:$0x8] }
  0x24   : > { %2414 = vmatpush3.bf16.msra.mxu0 %v2550_v53  ;;  %2437 = vmatprep.subr.bf16.mxu1 %v2555_v0  ;;  %v926_v34 = vsel %vm583_vm3, %v917_v26, %v925_v21  ;;  %v1155_v42 = vrot.slane %v1153_v37, 3  ;;  %v1158_v43 = vrot.slane %v1156_v38, 4  ;;  %v1402_v53 = vshrl.u32 %v2575_v48, 16  ;;  %v1710_v26 = vld [vmem:[%s2686_s10 + $0x8] sm:$0xf] }
  0x25   : > { %2415 = vmatprep.subr.bf16.mxu0 %v2552_v60  ;;  %2417 = vmatprep.mubr.msk.bf16.mxu0 %vm367_vm0, %v746_v9  ;;  %v1151_v45 = vor.u32 %v1150_v40, %v1147_v39  ;;  %v1410_v56 = vshrl.u32 %v2247_v50, 16  ;;  %v1413_v57 = vshll.u32 %v2247_v50, 16  ;;  %v1407_v62 = vrot.slane %v1405_v54, 3  ;;  %v2810_v9 = vld [vmem:[%s2686_s10 + $0xc] sm:$0xf]  ;;  %v2584_v39 = vld [vmem:[%s2997_s1 + $0xf8] sm:$0xff]  }
  0x26   : > { %2426 = vmatmul.mubr.msk.bf16.vlgmr.msra.gmra.mxu1 %vm367_vm0, %v830_v5  ;;  %v1159_v46 = vor.u32 %v1158_v43, %v1155_v42  ;;  %v1404_v61 = vrot.slane %v1402_v53, 2  ;;  %v1319_v2 = vrot.slane %v2575_v48, 2  ;;  %v2799_v3 = vrot.slane %v2238_v58, 2  ;;  %v1534_v5 = vld [vmem:[%s2686_s10] sm:$0x8]  ;;  %v2581_v43 = vld [vmem:[%s2997_s1 + $0xd0] sm:$0xff]  }
  0x27   : > { %2438 = vmatpush3.bf16.msra.mxu1 %v2555_v0  ;;  %2441 = vmatprep.mubr.msk.bf16.mxu1 %vm367_vm0, %v2202_v6  ;;  %v1412_v0 = vrot.slane %v1410_v56, 2  ;;  %v1415_v1 = vrot.slane %v1413_v57, 3  ;;  %v2272_v10 = vcombine.low %v1534_v5, %v2804_v7  ;;  %v2273_v11 = vcombine.low %v2807_v8, %v2810_v9  ;;  %v2588_v48 = vld [vmem:[%s2997_s1 + $0xf0] sm:$0xff]   ;;  %v2586_v50 = vld [vmem:[%s2997_s1 + $0xe8] sm:$0xff]   ;;  %v2589_v54 = vld [vmem:[%s2997_s1 + $0xe0] sm:$0xff]  }
  0x28   : > { %2416 = vmatpush3.bf16.msra.mxu0 %v2552_v60  ;;  %2439 = vmatprep.subr.bf16.mxu1 %v2558_v13  ;;  %v2573_v60 = vld [vmem:[%s2997_s1 + $0xb0] sm:$0xff]   ;;  %v1408_v4 = vor.u32 %v1407_v62, %v1404_v61  ;;  %v1321_v19 = vsel %vm1318_vm6, %v1319_v2, %v2799_v3  ;;  %v2266_v40 = vcombine.low %v2804_v7, %v2807_v8  ;;  %vm686_vm7 = vcmask 125952  }
  0x29   : > { %2429 = vmatprep.subr.bf16.mxu0 %v2557_v12  ;;  %v1416_v6 = vor.u32 %v1415_v1, %v1412_v0  ;;  %v1627_v14 = vshrl.u32 %v2272_v10, 16  ;;  %v1630_v15 = vshll.u32 %v2272_v10, 16  ;;  %v1635_v16 = vshrl.u32 %v2273_v11, 16  ;;  %v2874_v8 = vld [vmem:[%s2998_s2 + $0x10] sm:$0xff] }
  0x2a   : > { %v1638_v17 = vshll.u32 %v2273_v11, 16  ;;  %v2267_v53 = vcombine.low %v2810_v9, %v2810_v9  ;;  %vm690_vm8 = vcmask 130048   ;;  %vm1942_vm9 = vcmask 122880  }
  0x2b   : > { %2418 = vmatmul.mubr.msk.bf16.vlgmr.msra.gmra.mxu0 %vm367_vm0, %v745_v59  ;;  %2440 = vmatpush3.bf16.msra.mxu1 %v2558_v13  ;;  %v1160_v59 = vsel %vm583_vm3, %v1151_v45, %v1159_v46  ;;  %v2577_v13 = vld [vmem:[%s2997_s1 + $0xc8] sm:$0xff]   ;;  %v1629_v20 = vrot.slane %v1627_v14, 3  ;;  %v1637_v22 = vrot.slane %v1635_v16, 3 }
  0x2c   : > { %2430 = vmatpush3.bf16.msra.mxu0 %v2557_v12  ;;  %2453 = vmatprep.subr.bf16.mxu1 %v2562_v25  ;;  %v1417_v12 = vsel %vm1400_vm5, %v1408_v4, %v1416_v6  ;;  %v1640_v23 = vrot.slane %v1638_v17, 4 }
  0x2d   : > { %2431 = vmatprep.subr.bf16.mxu0 %v2559_v29  ;;  %2433 = vmatprep.mubr.msk.bf16.mxu0 %vm367_vm0, %v926_v34  ;;  %v2292_v34 = vcombine.low %v1814_v32, %v1710_v26 }
  0x2e   : > { %2442 = vmatmul.mubr.msk.bf16.vlgmr.msra.gmra.mxu1 %vm367_vm0, %v2203_v30  ;;  %v1641_v28 = vor.u32 %v1640_v23, %v1637_v22  ;;  %v2591_v30 = vld [vmem:[%s2686_s10 + $0xc] sm:$0x7f]  }
  0x2f   : > { %2454 = vmatpush3.bf16.msra.mxu1 %v2562_v25  ;;  %2457 = vmatprep.mubr.msk.bf16.mxu1 %vm367_vm0, %v1232_v41  ;;  %v1709_v25 = vld [vmem:[%s2686_s10 + $0x4] sm:$0xc]  ;;  %v1737_v37 = vshrl.u32 %v2591_v30, 16  ;;  %v1740_v38 = vshll.u32 %v2591_v30, 16  ;;  %v1823_v41 = vrot.slane %v2292_v34, 3  ;;  %v1824_v42 = vrot.slane %v2591_v30, 3 }
  0x30   : > { %2432 = vmatpush3.bf16.msra.mxu0 %v2559_v29  ;;  %2455 = vmatprep.subr.bf16.mxu1 %v2566_v35  ;;  %v2282_v29 = vcombine.low %v1709_v25, %v1710_v26  ;;  %v2901_v26 = vld [vmem:[%s2998_s2 + $0x8] sm:$0xff] }
  0x31   : > { %2445 = vmatprep.subr.bf16.mxu0 %v2565_v44  ;;  %v1742_v47 = vrot.slane %v1740_v38, 3  ;;  %v1825_v49 = vsel %vm501_vm2, %v1823_v41, %v1824_v42 }
  0x33   : > { %2434 = vmatmul.mubr.msk.bf16.vlgmr.msra.gmra.mxu0 %vm367_vm0, %v925_v21  ;;  %2456 = vmatpush3.bf16.msra.mxu1 %v2566_v35  ;;  %v1632_v21 = vrot.slane %v1630_v15, 4  ;;  %v1729_v35 = vshrl.u32 %v2282_v29, 16 }
  0x34   : > { %2446 = vmatpush3.bf16.msra.mxu0 %v2565_v44  ;;  %2469 = vmatprep.subr.bf16.mxu1 %v2571_v52 }
  0x35   : > { %2447 = vmatprep.subr.bf16.mxu0 %v2567_v51  ;;  %2449 = vmatprep.mubr.msk.bf16.mxu0 %vm367_vm0, %v1160_v59  ;;  %v1633_v27 = vor.u32 %v1632_v21, %v1629_v20  ;;  %v1731_v44 = vrot.slane %v1729_v35, 2 }
  0x36   : > { %2458 = vmatmul.mubr.msk.bf16.vlgmr.msra.gmra.mxu1 %vm367_vm0, %v1231_v36  ;;  %v1732_v36 = vshll.u32 %v2282_v29, 16 }
  0x37   : > { %2470 = vmatpush3.bf16.msra.mxu1 %v2571_v52  ;;  %2473 = vmatprep.mubr.msk.bf16.mxu1 %vm367_vm0, %v1417_v12  ;;  %v1642_v33 = vsel %vm583_vm3, %v1633_v27, %v1641_v28 }
  0x38   : > { %2448 = vmatpush3.bf16.msra.mxu0 %v2567_v51  ;;  %2471 = vmatprep.subr.bf16.mxu1 %v2573_v60  ;;  %v1734_v45 = vrot.slane %v1732_v36, 3 }
  0x39   : > { %2461 = vmatprep.subr.bf16.mxu0 %v2572_v63 }
  0x3a   : > { %v1735_v51 = vor.u32 %v1734_v45, %v1731_v44 }
  0x3b   : > { %2450 = vmatmul.mubr.msk.bf16.vlgmr.msra.gmra.mxu0 %vm367_vm0, %v1159_v46  ;;  %2472 = vmatpush3.bf16.msra.mxu1 %v2573_v60  ;;  %v1739_v46 = vrot.slane %v1737_v37, 2 }
  0x3c   : > { %2462 = vmatpush3.bf16.msra.mxu0 %v2572_v63  ;;  %2485 = vmatprep.subr.bf16.mxu1 %v2577_v13 }
  0x3d   : > { %2463 = vmatprep.subr.bf16.mxu0 %v2574_v18  ;;  %2465 = vmatprep.mubr.msk.bf16.mxu0 %vm367_vm0, %v1321_v19  ;;  %v1743_v52 = vor.u32 %v1742_v47, %v1739_v46 }
  0x3e   : > { %2474 = vmatmul.mubr.msk.bf16.vlgmr.msra.gmra.mxu1 %vm367_vm0, %v1416_v6 }
  0x3f   : > { %2486 = vmatpush3.bf16.msra.mxu1 %v2577_v13  ;;  %2489 = vmatprep.mubr.msk.bf16.mxu1 %vm367_vm0, %v1642_v33  ;;  %v1744_v55 = vsel %vm1400_vm5, %v1735_v51, %v1743_v52  ;;  %v2879_v13 = vld [vmem:[%s2998_s2] sm:$0xff] }
  0x40   : > { %2464 = vmatpush3.bf16.msra.mxu0 %v2574_v18  ;;  %2487 = vmatprep.subr.bf16.mxu1 %v2580_v24 }
  0x41   : > { %2477 = vmatprep.subr.bf16.mxu0 %v2579_v31 }
  0x43   : > { %2466 = vmatmul.mubr.msk.bf16.vlgmr.msra.gmra.mxu0 %vm367_vm0, %v2799_v3  ;;  %2488 = vmatpush3.bf16.msra.mxu1 %v2580_v24 }
  0x44   : > { %2478 = vmatpush3.bf16.msra.mxu0 %v2579_v31  ;;  %2501 = vmatprep.subr.bf16.mxu1 %v2584_v39 }
  0x45   : > { %2479 = vmatprep.subr.bf16.mxu0 %v2581_v43  ;;  %2481 = vmatprep.mubr.msk.bf16.mxu0 %vm367_vm0, %v2266_v40 }
  0x46   : > { %2490 = vmatmul.mubr.msk.bf16.vlgmr.msra.gmra.mxu1 %vm367_vm0, %v1641_v28 }
  0x47   : > { %2502 = vmatpush3.bf16.msra.mxu1 %v2584_v39  ;;  %2505 = vmatprep.mubr.msk.bf16.mxu1 %vm367_vm0, %v1825_v49 }
  0x48   : > { %2480 = vmatpush3.bf16.msra.mxu0 %v2581_v43  ;;  %2503 = vmatprep.subr.bf16.mxu1 %v2588_v48 }
  0x49   : > { %2493 = vmatprep.subr.bf16.mxu0 %v2586_v50 }
  0x4b   : > { %2482 = vmatmul.mubr.msk.bf16.vlgmr.msra.gmra.mxu0 %vm367_vm0, %v2267_v53  ;;  %2504 = vmatpush3.bf16.msra.mxu1 %v2588_v48 }
  0x4c   : > { %2494 = vmatpush3.bf16.msra.mxu0 %v2586_v50  ;;  %2497 = vmatprep.mubr.msk.bf16.mxu0 %vm367_vm0, %v1744_v55 }
  0x4d   : > { %2495 = vmatprep.subr.bf16.mxu0 %v2589_v54 }
  0x4e   : > { %2506 = vmatmul.mubr.msk.bf16.vlgmr.msra.gmra.mxu1 %vm367_vm0, %v1824_v42 }
  0x50   : > { %2496 = vmatpush3.bf16.msra.mxu0 %v2589_v54 }
  0x53   : > { %2498 = vmatmul.mubr.msk.bf16.vlgmr.msra.gmra.mxu0 %vm367_vm0, %v1743_v52 }
  0xd5   : > { %v2395_v56 = vpop.f32.mrf.mxu1 }
  0xd7   : > { %v474_v57 = vpop.f32.mrf.mxu1 }
  0xd9   : > { %v2396_v58 = vpop.f32.mrf.mxu1 }
  0xdb   : > { %v477_v59 = vpop.f32.mrf.mxu1  ;;  %v2387_v60 = vpop.f32.mrf.mxu0 }
  0xdc   : > { %v483_v2 = vadd.f32 %v2395_v56, %v2387_v60 }
  0xdd   : > { %v408_v61 = vpop.f32.mrf.mxu0 }
  0xde   : > { %v2411_v62 = vpop.f32.mrf.mxu1  ;;  %v475_v5 = vadd.f32 %v474_v57, %v408_v61 }
  0xdf   : > { %v2388_v63 = vpop.f32.mrf.mxu0 }
  0xe0   : > { %v653_v0 = vpop.f32.mrf.mxu1 }
  0xe1   : > { %v411_v1 = vpop.f32.mrf.mxu0 }
  0xe2   : > { %v2412_v3 = vpop.f32.mrf.mxu1  ;;  %v478_v18 = vadd.f32 %v477_v59, %v411_v1 }
  0xe3   : > { %v2403_v4 = vpop.f32.mrf.mxu0 }
  0xe4   : > { %v573_v6 = vadd.f32 %v2403_v4, %v483_v2  ;;  %v656_v7 = vpop.f32.mrf.mxu1 }
  0xe5   : > { %v557_v9 = vpop.f32.mrf.mxu0 }
  0xe6   : > { %v669_v10 = vadd.f32 %v2411_v62, %v573_v6  ;;  %v571_v11 = vadd.f32 %v557_v9, %v475_v5  ;;  %v2427_v12 = vpop.f32.mrf.mxu1 }
  0xe7   : > { %v2404_v14 = vpop.f32.mrf.mxu0 }
  0xe8   : > { %v2882_v15 = vmul.f32 %v669_v10, %v2874_v8  ;;  %v667_v16 = vadd.f32 %v653_v0, %v571_v11  ;;  %v883_v17 = vpop.f32.mrf.mxu1 }
  0xe9   : > { %v560_v19 = vpop.f32.mrf.mxu0 }
  0xea   : > { %v2307_v20 = vpack.c.bf16 %v2882_v15, %v2882_v15  ;;  %v2892_v21 = vmul.f32 %v667_v16, %v2879_v13  ;;  %v2428_v22 = vpop.f32.mrf.mxu1  ;;  %v572_v23 = vadd.f32 %v560_v19, %v478_v18 }
  0xeb   : > { %v2419_v24 = vpop.f32.mrf.mxu0 }
  0xec   : > { %689 = vst.msk [vmem:[%s2887_s11 + $0x8] sm:$0xf] %vm686_vm7, %v2307_v20  ;;  %v2305_v25 = vpack.c.bf16 %v2892_v21, %v2892_v21  ;;  %v886_v27 = vpop.f32.mrf.mxu1  ;;  %v668_v28 = vadd.f32 %v656_v7, %v572_v23  ;;  %v892_v36 = vadd.f32 %v2427_v12, %v2419_v24  ;;  %v705_v20 = vmul.f32 %v2882_v15, %v2882_v15 }
  0xed   : > { %v799_v29 = vpop.f32.mrf.mxu0 }
  0xee   : > { %687 = vst.msk [vmem:[%s2887_s11] sm:$0xf] %vm686_vm7, %v2305_v25  ;;  %v2443_v30 = vpop.f32.mrf.mxu1  ;;  %v2906_v31 = vmul.f32 %v668_v28, %v2901_v26  ;;  %v884_v39 = vadd.f32 %v883_v17, %v799_v29  ;;  %v703_v25 = vmul.f32 %v2892_v21, %v2892_v21 }
  0xef   : > { %v2420_v32 = vpop.f32.mrf.mxu0 }
  0xf0   : > { %v1055_v33 = vpop.f32.mrf.mxu1  ;;  %v2306_v34 = vpack.c.bf16 %v2906_v31, %v2906_v31  ;;  %v704_v22 = vmul.f32 %v2906_v31, %v2906_v31 }
  0xf1   : > { %v802_v35 = vpop.f32.mrf.mxu0 }
  0xf2   : > { %v2444_v37 = vpop.f32.mrf.mxu1  ;;  %688 = vst.msk [vmem:[%s2887_s11 + $0x4] sm:$0xf] %vm686_vm7, %v2306_v34  ;;  %v887_v50 = vadd.f32 %v886_v27, %v802_v35  ;;  %v692_v34 = vsel %vm690_vm8, %v2906_v31, 0.0  ;;  %v706_v31 = vsel %vm690_vm8, %v703_v25, 0.0 }
  0xf3   : > { %v2435_v38 = vpop.f32.mrf.mxu0 }
  0xf4   : > { %v995_v40 = vadd.f32 %v2435_v38, %v892_v36  ;;  %v1058_v41 = vpop.f32.mrf.mxu1 }
  0xf5   : > { %v979_v42 = vpop.f32.mrf.mxu0 }
  0xf6   : > { %v1071_v43 = vadd.f32 %v2443_v30, %v995_v40  ;;  %v993_v44 = vadd.f32 %v979_v42, %v884_v39  ;;  %v2459_v45 = vpop.f32.mrf.mxu1  ;;  %v694_v39 = vsel %vm690_vm8, %v2882_v15, 0.0  ;;  %v709_v40 = vsel %vm690_vm8, %v705_v20, 0.0 }
  0xf7   : > { %v2436_v46 = vpop.f32.mrf.mxu0 }
  0xf8   : > { %v2913_v47 = vmul.f32 %v1071_v43, %v2874_v8  ;;  %v1069_v48 = vadd.f32 %v1055_v33, %v993_v44  ;;  %v1285_v49 = vpop.f32.mrf.mxu1  ;;  %v691_v44 = vsel %vm690_vm8, %v2892_v21, 0.0 }
  0xf9   : > { %v982_v51 = vpop.f32.mrf.mxu0 }
  0xfa   : > { %v2310_v52 = vpack.c.bf16 %v2913_v47, %v2913_v47  ;;  %v2460_v53 = vpop.f32.mrf.mxu1  ;;  %v1072_v54 = vmul.f32 %v1069_v48, %v2879_v13  ;;  %v994_v55 = vadd.f32 %v982_v51, %v887_v50  ;;  %v1106_v15 = vmul.f32 %v2913_v47, %v2913_v47 }
  0xfb   : > { %v2451_v56 = vpop.f32.mrf.mxu0  ;;  %v1095_v21 = vsel %vm690_vm8, %v2913_v47, 0.0 }
  0xfc   : > { %2213 = vst.msk [vmem:[%s2887_s11 + $0x14] sm:$0xf] %vm686_vm7, %v2310_v52  ;;  %v1288_v57 = vpop.f32.mrf.mxu1  ;;  %v2308_v58 = vpack.c.bf16 %v1072_v54, %v1072_v54  ;;  %v1070_v60 = vadd.f32 %v1058_v41, %v994_v55  ;;  %v1294_v3 = vadd.f32 %v2459_v45, %v2451_v56  ;;  %v1104_v35 = vmul.f32 %v1072_v54, %v1072_v54 }
  0xfd   : > { %v1213_v59 = vpop.f32.mrf.mxu0  ;;  %v707_v41 = vsel %vm690_vm8, %v704_v22, 0.0  ;;  %v1092_v45 = vsel %vm690_vm8, %v1072_v54, 0.0  ;;  %v1110_v47 = vsel %vm690_vm8, %v1106_v15, 0.0 }
  0xfe   : > { %v2475_v61 = vpop.f32.mrf.mxu1  ;;  %2211 = vst.msk [vmem:[%s2887_s11 + $0xc] sm:$0xf] %vm686_vm7, %v2308_v58  ;;  %v1073_v63 = vmul.f32 %v1070_v60, %v2901_v26  ;;  %v1286_v6 = vadd.f32 %v1285_v49, %v1213_v59  ;;  %v693_v49 = vadd.f32 %v692_v34, %v691_v44  ;;  %v708_v53 = vadd.f32 %v707_v41, %v706_v31 }
  0xff   : > { %v2452_v62 = vpop.f32.mrf.mxu0  ;;  %v1107_v55 = vsel %vm690_vm8, %v1104_v35, 0.0 }
 0x100   : > { %v1470_v0 = vpop.f32.mrf.mxu1  ;;  %v2309_v2 = vpack.c.bf16 %v1073_v63, %v1073_v63  ;;  %v1105_v27 = vmul.f32 %v1073_v63, %v1073_v63  ;;  %v1093_v36 = vsel %vm690_vm8, %v1073_v63, 0.0 }
 0x101   : > { %v1216_v1 = vpop.f32.mrf.mxu0  ;;  %v1094_v50 = vadd.f32 %v1093_v36, %v1092_v45 }
 0x102   : > { %v2476_v4 = vpop.f32.mrf.mxu1  ;;  %2212 = vst.msk [vmem:[%s2887_s11 + $0x10] sm:$0xf] %vm686_vm7, %v2309_v2  ;;  %v1289_v23 = vadd.f32 %v1288_v57, %v1216_v1  ;;  %v1108_v46 = vsel %vm690_vm8, %v1105_v27, 0.0 }
 0x103   : > { %v2467_v5 = vpop.f32.mrf.mxu0  ;;  %v1109_v57 = vadd.f32 %v1108_v46, %v1107_v55  ;;  %v1096_v4 = vadd.f32 %v1095_v21, %v1094_v50 }
 0x104   : > { %v1390_v7 = vadd.f32 %v2467_v5, %v1294_v3  ;;  %v1473_v9 = vpop.f32.mrf.mxu1  ;;  %v695_v3 = vadd.f32 %v694_v39, %v693_v49 }
 0x105   : > { %v1374_v10 = vpop.f32.mrf.mxu0  ;;  %v1097_v25 = vrot.slane %v1096_v4, 4 }
 0x106   : > { %v1486_v11 = vadd.f32 %v2475_v61, %v1390_v7  ;;  %v1388_v12 = vadd.f32 %v1374_v10, %v1286_v6  ;;  %v2491_v14 = vpop.f32.mrf.mxu1 }
 0x107   : > { %v2468_v16 = vpop.f32.mrf.mxu0 }
 0x108   : > { %v1489_v17 = vmul.f32 %v1486_v11, %v2874_v8  ;;  %v1484_v18 = vadd.f32 %v1470_v0, %v1388_v12  ;;  %v1695_v19 = vpop.f32.mrf.mxu1  ;;  %v710_v12 = vadd.f32 %v709_v40, %v708_v53  ;;  %v1111_v16 = vadd.f32 %v1110_v47, %v1109_v57 }
 0x109   : > { %v1377_v24 = vpop.f32.mrf.mxu0 }
 0x10a   : > { %v2313_v28 = vpack.c.bf16 %v1489_v17, %v1489_v17  ;;  %v1487_v29 = vmul.f32 %v1484_v18, %v2879_v13  ;;  %v2492_v30 = vpop.f32.mrf.mxu1  ;;  %v1389_v32 = vadd.f32 %v1377_v24, %v1289_v23  ;;  %v1521_v62 = vmul.f32 %v1489_v17, %v1489_v17 }
 0x10b   : > { %v2483_v33 = vpop.f32.mrf.mxu0  ;;  %v1510_v5 = vsel %vm690_vm8, %v1489_v17, 0.0 }
 0x10c   : > { %2257 = vst.msk [vmem:[%s2887_s11 + $0x20] sm:$0xf] %vm686_vm7, %v2313_v28  ;;  %v2311_v37 = vpack.c.bf16 %v1487_v29, %v1487_v29  ;;  %v1698_v38 = vpop.f32.mrf.mxu1  ;;  %v1485_v42 = vadd.f32 %v1473_v9, %v1389_v32  ;;  %v1519_v54 = vmul.f32 %v1487_v29, %v1487_v29  ;;  %v1507_v58 = vsel %vm690_vm8, %v1487_v29, 0.0 }
 0x10d   : > { %v1608_v43 = vpop.f32.mrf.mxu0  ;;  %v1704_v1 = vadd.f32 %v2491_v14, %v2483_v33  ;;  %v1525_v22 = vsel %vm690_vm8, %v1521_v62, 0.0  ;;  %v696_v28 = vrot.slane %v695_v3, 4  ;;  %v711_v32 = vrot.slane %v710_v12, 4 }
 0x10e   : > { %2255 = vst.msk [vmem:[%s2887_s11 + $0x18] sm:$0xf] %vm686_vm7, %v2311_v37  ;;  %v2507_v48 = vpop.f32.mrf.mxu1  ;;  %v1488_v51 = vmul.f32 %v1485_v42, %v2901_v26  ;;  %v1522_v7 = vsel %vm690_vm8, %v1519_v54, 0.0  ;;  %v1696_v10 = vadd.f32 %v1695_v19, %v1608_v43  ;;  %v1112_v19 = vrot.slane %v1111_v16, 4 }
 0x10f   : > { %v2484_v52 = vpop.f32.mrf.mxu0  ;;  %v1098_v37 = vadd.f32 %v1097_v25, %v1096_v4  ;;  %v697_v42 = vadd.f32 %v696_v28, %v695_v3  ;;  %v712_v43 = vadd.f32 %v711_v32, %v710_v12 }
 0x110   : > { %v1878_v56 = vpop.f32.mrf.mxu1  ;;  %v2312_v59 = vpack.c.bf16 %v1488_v51, %v1488_v51  ;;  %v1508_v60 = vsel %vm690_vm8, %v1488_v51, 0.0  ;;  %v1520_v0 = vmul.f32 %v1488_v51, %v1488_v51  ;;  %v1113_v44 = vadd.f32 %v1112_v19, %v1111_v16 }
 0x111   : > { %v1611_v61 = vpop.f32.mrf.mxu0  ;;  %v1509_v63 = vadd.f32 %v1508_v60, %v1507_v58 }
 0x112   : > { %v2508_v2 = vpop.f32.mrf.mxu1  ;;  %2256 = vst.msk [vmem:[%s2887_s11 + $0x1c] sm:$0xf] %vm686_vm7, %v2312_v59  ;;  %v1523_v9 = vsel %vm690_vm8, %v1520_v0, 0.0  ;;  %v1699_v34 = vadd.f32 %v1698_v38, %v1611_v61  ;;  %v698_v38 = vrot.slane %v697_v42, 2  ;;  %v1114_v51 = vrot.slane %v1113_v44, 2 }
 0x113   : > { %v2499_v6 = vpop.f32.mrf.mxu0  ;;  %v1511_v18 = vadd.f32 %v1510_v5, %v1509_v63  ;;  %v1524_v14 = vadd.f32 %v1523_v9, %v1522_v7 }
 0x114   : > { %v1813_v11 = vadd.f32 %v2499_v6, %v1704_v1  ;;  %v1881_v45 = vpop.f32.mrf.mxu1  ;;  %v699_v60 = vadd.f32 %v698_v38, %v697_v42  ;;  %v1115_v63 = vadd.f32 %v1114_v51, %v1113_v44 }
 0x115   : > { %v1797_v20 = vpop.f32.mrf.mxu0  ;;  %v1526_v17 = vadd.f32 %v1525_v22, %v1524_v14  ;;  %v1512_v33 = vrot.slane %v1511_v18, 4 }
 0x116   : > { %v1894_v23 = vadd.f32 %v2507_v48, %v1813_v11  ;;  %v1811_v24 = vadd.f32 %v1797_v20, %v1696_v10  ;;  %v1099_v48 = vrot.slane %v1098_v37, 2  ;;  %v700_v9 = vrot.slane %v699_v60, 1 }
 0x117   : > { %v2500_v27 = vpop.f32.mrf.mxu0  ;;  %v1527_v39 = vrot.slane %v1526_v17, 4  ;;  %v1513_v31 = vadd.f32 %v1512_v33, %v1511_v18  ;;  %v1116_v10 = vrot.slane %v1115_v63, 1 }
 0x118   : > { %v1897_v29 = vmul.f32 %v1894_v23, %v2874_v8  ;;  %v1892_v30 = vadd.f32 %v1878_v56, %v1811_v24  ;;  %v1100_v57 = vadd.f32 %v1099_v48, %v1098_v37  ;;  %v701_v24 = vadd.f32 %v700_v9, %v699_v60 }
 0x119   : > { %v1800_v35 = vpop.f32.mrf.mxu0  ;;  %v1528_v49 = vadd.f32 %v1527_v39, %v1526_v17  ;;  %v1514_v52 = vrot.slane %v1513_v31, 2  ;;  %v1117_v25 = vadd.f32 %v1116_v10, %v1115_v63 }
 0x11a   : > { %v2316_v36 = vpack.c.bf16 %v1897_v29, %v1897_v29  ;;  %v1895_v40 = vmul.f32 %v1892_v30, %v2879_v13  ;;  %v1812_v41 = vadd.f32 %v1800_v35, %v1699_v34  ;;  %v713_v13 = vrot.slane %v712_v43, 2 }
 0x11b   : > { %v1929_v53 = vmul.f32 %v1897_v29, %v1897_v29  ;;  %v1529_v58 = vrot.slane %v1528_v49, 2  ;;  %v1918_v61 = vsel %vm690_vm8, %v1897_v29, 0.0  ;;  %v1515_v0 = vadd.f32 %v1514_v52, %v1513_v31 }
 0x11c   : > { %2302 = vst.msk [vmem:[%s2887_s11 + $0x2c] sm:$0xf] %vm686_vm7, %v2316_v36  ;;  %v2314_v8 = vpack.c.bf16 %v1895_v40, %v1895_v40  ;;  %v1893_v46 = vadd.f32 %v1881_v45, %v1812_v41  ;;  %v1927_v15 = vmul.f32 %v1895_v40, %v1895_v40  ;;  %v1915_v21 = vsel %vm690_vm8, %v1895_v40, 0.0 }
 0x11d   : > { %v714_v3 = vadd.f32 %v713_v13, %v712_v43  ;;  %v1933_v47 = vsel %vm690_vm8, %v1929_v53, 0.0  ;;  %v1101_v4 = vrot.slane %v1100_v57, 1  ;;  %v1530_v5 = vadd.f32 %v1529_v58, %v1528_v49 }
 0x11e   : > { %2300 = vst.msk [vmem:[%s2887_s11 + $0x24] sm:$0xf] %vm686_vm7, %v2314_v8  ;;  %v1896_v50 = vmul.f32 %v1893_v46, %v2901_v26  ;;  %v1930_v62 = vsel %vm690_vm8, %v1927_v15, 0.0  ;;  %v1516_v11 = vrot.slane %v1515_v0, 1 }
 0x11f   : > { %v715_v18 = vrot.slane %v714_v3, 1  ;;  %v1102_v14 = vadd.f32 %v1101_v4, %v1100_v57  ;;  %v1531_v20 = vrot.slane %v1530_v5, 1 }
 0x120   : > { %v2315_v55 = vpack.c.bf16 %v1896_v50, %v1896_v50  ;;  %v1916_v54 = vsel %vm690_vm8, %v1896_v50, 0.0  ;;  %v1928_v56 = vmul.f32 %v1896_v50, %v1896_v50  ;;  %v1517_v17 = vadd.f32 %v1516_v11, %v1515_v0 }
 0x121   : > { %v1917_v59 = vadd.f32 %v1916_v54, %v1915_v21  ;;  %v716_v29 = vadd.f32 %v715_v18, %v714_v3  ;;  %v1103_v30 = vadd.f32 %v1102_v14, %v701_v24  ;;  %v1532_v32 = vadd.f32 %v1531_v20, %v1530_v5 }
 0x122   : > { %2301 = vst.msk [vmem:[%s2887_s11 + $0x28] sm:$0xf] %vm686_vm7, %v2315_v55  ;;  %v1931_v26 = vsel %vm690_vm8, %v1928_v56, 0.0 }
 0x123   : > { %v1919_v1 = vadd.f32 %v1918_v61, %v1917_v59  ;;  %v1932_v2 = vadd.f32 %v1931_v26, %v1930_v62  ;;  %v1118_v34 = vadd.f32 %v1117_v25, %v716_v29  ;;  %v1518_v35 = vadd.f32 %v1517_v17, %v1103_v30 }
 0x125   : > { %v1920_v6 = vrot.slane %v1919_v1, 4  ;;  %v1934_v7 = vadd.f32 %v1933_v47, %v1932_v2  ;;  %v1533_v39 = vadd.f32 %v1532_v32, %v1118_v34 }
 0x127   : > { %v1921_v12 = vadd.f32 %v1920_v6, %v1919_v1  ;;  %v1935_v16 = vrot.slane %v1934_v7, 4 }
 0x129   : > { %v1922_v22 = vrot.slane %v1921_v12, 2  ;;  %v1936_v23 = vadd.f32 %v1935_v16, %v1934_v7 }
 0x12b   : > { %v1923_v27 = vadd.f32 %v1922_v22, %v1921_v12  ;;  %v1937_v28 = vrot.slane %v1936_v23, 2 }
 0x12d   : > { %v1924_v19 = vrot.slane %v1923_v27, 1  ;;  %v1938_v33 = vadd.f32 %v1937_v28, %v1936_v23 }
 0x12f   : > { %v1925_v36 = vadd.f32 %v1924_v19, %v1923_v27  ;;  %v1939_v37 = vrot.slane %v1938_v33, 1 }
 0x131   : > { %v1926_v40 = vadd.f32 %v1925_v36, %v1518_v35  ;;  %v1940_v41 = vadd.f32 %v1939_v37, %v1938_v33 }
 0x133   : > { %v1941_v42 = vadd.f32 %v1940_v41, %v1533_v39  ;;  %1943 = vst.msk [vmem:[%s305_s16] sm:$0x1] %vm1942_vm9, %v1926_v40 }
 0x135   : > { %1944 = vst.msk [vmem:[%s311_s22] sm:$0x1] %vm1942_vm9, %v1941_v42 }
 0x136 PF: > { %s16_s20 = sadd.s32 1, %s2615_s20   ;;  %s3002_s18 = smov %s2611_s19 }
 0x137   : > { %p13_p5 = scmp.ge.s32.totalorder %s16_s20, 4   ;;  %s3003_s19 = smov %s3005_s21 }
 0x139   :  { %15 = sbr.rel (!%p13_p5) target bundleno = 2 (0x2), region = 110 }

// kernel: dc_decoder_forward.9
= control target key start
LH: loop header
LB: loop body
LE: loop exit
PB: predicated region body
PF: predicated region fallthrough
CT: control target
= control target key end

     0   :  { %11 = vsyncpa [#allocation3], 0  ;;  %s5719_s0 = inlined_call_operand.vmem [shape: bf16[2,110,16], index: 0, kind: input, shape index: {}]   ;;  %s5720_s1 = inlined_call_operand.vmem [shape: bf16[4,2,2,16,3], index: 1, kind: input, shape index: {}]   ;;  %s5721_s2 = inlined_call_operand.vmem [shape: f32[80,3], index: 2, kind: input, shape index: {}]   ;;  %s5722_s3 = inlined_call_operand.vmem [shape: bf16[2,4,80,3], index: 3, kind: output, shape index: {0}]   ;;  %s5723_s4 = inlined_call_operand.hbm [shape: f32[2,1,3], index: 4, kind: output, shape index: {1}]   ;;  %s5724_s5 = inlined_call_operand.hbm [shape: f32[2,1,3], index: 5, kind: output, shape index: {2}]  }
   0x1   :  { %13 = vsyncpa [#allocation3 + $0x1], 0 }
   0x2   :  { %14 = vsyncpa [#allocation5], 0 }
   0x3   :  { %16 = vsyncpa [#allocation5 + $0x1], 0  ;;  %s4505_s18 = smov 0   ;;  %s4507_s19 = smov 0  }
   0x4   :  { %s4509_s20 = smov 0   ;;  %s4511_s21 = smov 0  }
   0x5   :  { %s4513_s22 = smov 0   ;;  %s4515_s23 = smov 0  }
   0x6 LB: > { %s3467_s24 = sadd.s32 4294967295, %s4469_s23   ;;  %s3468_s25 = sadd.s32 4294967294, %s4469_s23   ;;  %s4469_s23 = sphi %s4515_s23, %s22_s23   ;;  %s4465_s22 = sphi %s4513_s22, %s5731_s22   ;;  %s4461_s21 = sphi %s4511_s21, %s5730_s21   ;;  %s4457_s20 = sphi %s4509_s20, %s5729_s20   ;;  %s4453_s19 = sphi %s4507_s19, %s5728_s19   ;;  %s4449_s18 = sphi %s4505_s18, %s5727_s18  }
   0x7   : > { %s31_s26 = sadd.s32 1, %s4465_s22  ;;  %s149_s27 = sadd.s32 1, %s4457_s20 }
   0x8   : > { %p32_p0 = scmp.ge.s32.totalorder %s31_s26, 2  ;;  %p159_p1 = scmp.ne.s32.totalorder %s4457_s20, %s4453_s19 }
   0x9   : > { %p160_p2 = scmp.eq.s32.totalorder %s3467_s24, 1  ;;  %p165_p3 = scmp.ne.s32.totalorder %s4453_s19, %s4449_s18 }
   0xa   : > { %s5733_s26 = smov (%p32_p0, %s31_s26), 0  ;;  %p166_p5 = scmp.eq.s32.totalorder %s3468_s25, 1 }
   0xb   : > { %p4545_p4 = por %p160_p2, %p159_p1  ;;  %s144_s29 = ssub.s32 %s4465_s22, %s5733_s26 }
   0xc   : > { %p3473_p6 = scmp.ge.s32.totalorder %s4469_s23, 1  ;;  %p147_p7 = scmp.eq.s32.totalorder %s144_s29, 0 }
   0xd   : > { %p4552_p8 = por %p166_p5, %p165_p3  ;;  %p234_p9 = scmp.lt.s32.totalorder %s4469_s23, 3 }
   0xe   : > { %s4558_s6 = scalar_select %p147_p7, %s4457_s20, %s149_s27  }
   0xf   : > { %p235_p10 = pnand %p3473_p6, %p234_p9 }
  0x10   : > { %p281_p11 = scmp.lt.s32.totalorder (!%p235_p10), %s4461_s21, 1  ;;  %s5628_s25 = sand.u32 (!%p235_p10), 1, %s4453_s19  }
  0x11   : > { %238 = sbr.rel (%p235_p10) target bundleno = 602 (0x25a), region = 32  ;;  %s3727_s27 = sshll.u32 (!%p235_p10), %s4461_s21, 4 }
  0x12   : > { %s280_s8 = scalar_lea.vmem (!%p235_p10), [#allocation4], %s5628_s25  ;;  %s5639_s13 = scalar_lea.hbm (!%p235_p10), %s5723_s4, %s3727_s27 }
  0x13   : > { %s3308_s9 = sshll.u32 (!%p235_p10), %s280_s8, 4  ;;  %s5648_s14 = scalar_lea.hbm (!%p235_p10), %s5724_s5, %s3727_s27  ;;  %s5650_s9 = int_to_ptr.vmem [resolvable:$true] %s3308_s9 }
  0x14   : > { %s4473_s24 = smov (!%p235_p10), [#allocation2]  }
  0x16   : > { %v4283_v0 = vld [vmem:[%s5720_s1] sm:$0xff]   ;;  %v4471_v1 = vmov 0.0   ;;  %v4284_v2 = vld [vmem:[%s5720_s1 + $0x8] sm:$0xff]   ;;  %vm4472_vm0 = vmmov 0   ;;  %s4574_s11 = scalar_select %p281_p11, %s4461_s21, 1  ;;  %vm408_vm1 = vcmask 130048  }
  0x17   : > { %3889 = vmatprep.subr.bf16.mxu1 %v4471_v1  ;;  %3867 = vmatprep.subr.bf16.mxu0 %v4471_v1  ;;  %v4288_v3 = vld [vmem:[%s5720_s1 + $0x18] sm:$0xff]   ;;  %vm357_vm2 = vsmask.f32 7424  ;;  %v4287_v13 = vld [vmem:[%s5720_s1 + $0x10] sm:$0xff]   ;;  %vm751_vm3 = vsmask.f32 6400 }
  0x18   : > { %3890 = vmatpush3.bf16.msra.mxu1 %v4283_v0  ;;  %3891 = vmatprep.mubr.msk.bf16.mxu1 %vm4472_vm0, %v4471_v1  ;;  %s4219_s12 = smul.u32 56, %s4574_s11  ;;  %v4296_v54 = vld [vmem:[%s5720_s1 + $0x20] sm:$0xff]   ;;  %vm628_vm4 = vcmask 1046528   ;;  %vm1531_vm5 = vcmask 1045504   ;;  %vm2235_vm6 = vsmask.f32 5376 }
  0x19   : > { %3868 = vmatpush3.bf16.msra.mxu0 %v4284_v2  ;;  %3869 = vmatprep.mubr.msk.bf16.mxu0 %vm4472_vm0, %v4471_v1  ;;  %v4295_v2 = vld [vmem:[%s5720_s1 + $0x28] sm:$0xff]   ;;  %s4220_s16 = smul.u32 160, %s4574_s11  ;;  %vm959_vm7 = vcmask 19456   ;;  %vm970_vm8 = vcmask 23552   ;;  %vm3023_vm9 = vcmask 1044480   ;;  %vm3262_vm10 = vcmask 16384  }
  0x1a   : > { %3911 = vmatprep.subr.bf16.mxu0 %v4471_v1  ;;  %3933 = vmatprep.subr.bf16.mxu1 %v4471_v1  ;;  %s4582_s15 = scalar_lea.vmem %s5719_s0, %s4219_s12  ;;  %s4367_s11 = sshll.u32 %s4473_s24, 4  ;;  %s4368_s11 = int_to_ptr.vmem [resolvable:$false] %s4367_s11 }
  0x1b   : > { %v4285_v4 = vld [vmem:[%s4582_s15] sm:$0xff]   ;;  %v4286_v5 = vld [vmem:[%s4582_s15 + $0x8] sm:$0xff]   ;;  %v4289_v9 = vld [vmem:[%s4582_s15 + $0x10] sm:$0xff]   ;;  %s5028_s7 = scalar_lea.vmem %s5722_s3, %s4220_s16  ;;  %s3274_s16 = scalar_lea.sflag [#allocation3], %s5628_s25 }
  0x1c   : > { %3892 = vmatmul.mubr.msk.bf16.vlgmr.msra.gmra.mxu1 %vm408_vm1, %v4285_v4  ;;  %v359_v6 = vshrl.u32 %v4285_v4, 16  ;;  %v361_v7 = vshll.u32 %v4285_v4, 16  ;;  %v366_v8 = vshll.u32 %v4286_v5, 16  ;;  %v370_v14 = vshrl.u32 %v4286_v5, 16  ;;  %v4290_v19 = vld [vmem:[%s4582_s15 + $0x18] sm:$0xff]   ;;  %v4291_v23 = vld [vmem:[%s4582_s15 + $0x20] sm:$0xff]  }
  0x1d   : > { %3934 = vmatpush3.bf16.msra.mxu1 %v4288_v3  ;;  %3895 = vmatprep.mubr.msk.bf16.mxu1 %vm4472_vm0, %v4471_v1  ;;  %v374_v15 = vshll.u32 %v4289_v9, 16  ;;  %v378_v21 = vshrl.u32 %v4289_v9, 16  ;;  %v382_v22 = vshll.u32 %v4290_v19, 16  ;;  %v390_v26 = vshll.u32 %v4291_v23, 16  ;;  %v4616_v29 = vld [vmem:[%s4582_s15 + $0xc] sm:$0xff]   ;;  %v4630_v43 = vld [vmem:[%s4582_s15 + $0x14] sm:$0xff]  }
  0x1e   : > { %v363_v10 = vrot.slane %v361_v7, 1  ;;  %3977 = vmatprep.subr.bf16.mxu1 %v4471_v1  ;;  %v368_v11 = vrot.slane %v366_v8, 1  ;;  %v386_v28 = vshrl.u32 %v4290_v19, 16  ;;  %v4293_v30 = vld [vmem:[%s4582_s15 + $0x4] sm:$0xfe]   ;;  %v761_v34 = vshrl.u32 %v4616_v29, 16 }
  0x1f   : > { %v376_v18 = vrot.slane %v374_v15, 1  ;;  %v384_v25 = vrot.slane %v382_v22, 1  ;;  %v392_v31 = vrot.slane %v390_v26, 1  ;;  %v4292_v32 = vld [vmem:[%s4582_s15 + $0x28] ss:$0 sps:$4 sm:$0x11]  }
  0x20   : > { %v364_v12 = vor.u32 %v363_v10, %v359_v6  ;;  %v372_v17 = vor.u32 %v370_v14, %v368_v11  ;;  %v764_v35 = vshll.u32 %v4616_v29, 16  ;;  %v753_v36 = vshrl.u32 %v4293_v30, 16  ;;  %v4298_v57 = vld [vmem:[%s4582_s15 + $0x1c] sm:$0xff]   ;;  %v4299_v63 = vld [vmem:[%s4582_s15 + $0x24] sm:$0xff]   ;;  %s4369_s10 = scalar_lea.vmem %s4368_s11, 32 }
  0x21   : > { %v380_v24 = vor.u32 %v378_v21, %v376_v18  ;;  %v388_v33 = vor.u32 %v386_v28, %v384_v25  ;;  %v756_v37 = vshll.u32 %v4293_v30, 16  ;;  %v394_v38 = vshrl.u32 %v4291_v23, 16  ;;  %v4302_v28 = vld [vmem:[%s4582_s15 + $0x8] sm:$0xff]  }
  0x22   : > { %v369_v16 = vsel %vm357_vm2, %v364_v12, %v368_v11  ;;  %v377_v20 = vsel %vm357_vm2, %v372_v17, %v376_v18  ;;  %v398_v40 = vshll.u32 %v4292_v32, 16  ;;  %v763_v41 = vrot.slane %v761_v34, 1  ;;  %v1033_v18 = vld [vmem:[%s4582_s15] sm:$0xf] }
  0x23   : > { %3870 = vmatmul.mubr.msk.bf16.vlgmr.msra.gmra.mxu0 %vm408_vm1, %v369_v16  ;;  %v385_v27 = vsel %vm357_vm2, %v380_v24, %v384_v25  ;;  %v393_v39 = vsel %vm357_vm2, %v388_v33, %v392_v31  ;;  %v766_v42 = vrot.slane %v764_v35, 2  ;;  %v755_v44 = vrot.slane %v753_v36, 1 }
  0x24   : > { %3912 = vmatpush3.bf16.msra.mxu0 %v4287_v13  ;;  %3896 = vmatmul.mubr.msk.bf16.gmra.mxu1 %vm408_vm1, %v4286_v5  ;;  %v758_v45 = vrot.slane %v756_v37, 2  ;;  %v396_v46 = vor.u32 %v394_v38, %v392_v31  ;;  %v400_v47 = vrot.slane %v398_v40, 1  ;;  %v770_v50 = vshrl.u32 %v4630_v43, 16  ;;  %v4301_v31 = vld [vmem:[%s4582_s15 + $0x2c] ss:$0 sps:$4 sm:$0x11]  }
  0x25   : > { %3873 = vmatprep.mubr.msk.bf16.mxu0 %vm4472_vm0, %v4471_v1  ;;  %3899 = vmatprep.mubr.msk.bf16.mxu1 %vm4472_vm0, %v4471_v1  ;;  %v767_v49 = vor.u32 %v766_v42, %v763_v41  ;;  %v773_v51 = vshll.u32 %v4630_v43, 16  ;;  %v629_v58 = vrot.slane %v4293_v30, 1  ;;  %v630_v59 = vrot.slane %v4616_v29, 1  ;;  %v4307_v40 = vld [vmem:[%s4582_s15 + $0x10] sm:$0xff]  }
  0x26   : > { %3955 = vmatprep.subr.bf16.mxu0 %v4471_v1  ;;  %v759_v48 = vor.u32 %v758_v45, %v755_v44  ;;  %v401_v52 = vsel %vm357_vm2, %v396_v46, %v400_v47  ;;  %v772_v55 = vrot.slane %v770_v50, 1  ;;  %v779_v61 = vshrl.u32 %v4298_v57, 16  ;;  %v4306_v44 = vld [vmem:[%s5720_s1 + $0x38] sm:$0xff]  }
  0x27   : > { %v775_v56 = vrot.slane %v773_v51, 2  ;;  %v782_v62 = vshll.u32 %v4298_v57, 16  ;;  %v631_v0 = vsel %vm628_vm4, %v629_v58, %v630_v59  ;;  %v788_v6 = vshrl.u32 %v4299_v63, 16  ;;  %v4308_v51 = vld [vmem:[%s4582_s15 + $0x18] sm:$0xff]  }
  0x28   : > { %v768_v53 = vsel %vm751_vm3, %v759_v48, %v767_v49  ;;  %v781_v4 = vrot.slane %v779_v61, 1  ;;  %v791_v7 = vshll.u32 %v4299_v63, 16  ;;  %v632_v8 = vrot.slane %v4630_v43, 1 }
  0x29   : > { %v776_v60 = vor.u32 %v775_v56, %v772_v55  ;;  %v784_v5 = vrot.slane %v782_v62, 2  ;;  %v634_v11 = vrot.slane %v4298_v57, 1  ;;  %v790_v12 = vrot.slane %v788_v6, 1 }
  0x2a   : > { %v793_v13 = vrot.slane %v791_v7, 2  ;;  %v633_v14 = vsel %vm628_vm4, %v630_v59, %v632_v8  ;;  %v636_v26 = vrot.slane %v4299_v63, 1  ;;  %v1195_v35 = vshll.u32 %v4302_v28, 16 }
  0x2b   : > { %3874 = vmatmul.mubr.msk.bf16.gmra.mxu0 %vm408_vm1, %v377_v20  ;;  %v777_v3 = vsel %vm751_vm3, %v767_v49, %v776_v60  ;;  %v785_v10 = vor.u32 %v784_v5, %v781_v4  ;;  %v638_v36 = vrot.slane %v4301_v31, 1  ;;  %v1199_v45 = vshrl.u32 %v4302_v28, 16  ;;  %v4310_v5 = vld [vmem:[%s4582_s15 + $0x28] ss:$0 sps:$4 sm:$0x11]  }
  0x2c   : > { %3900 = vmatmul.mubr.msk.bf16.gmra.mxu1 %vm408_vm1, %v4289_v9  ;;  %3877 = vmatprep.mubr.msk.bf16.mxu0 %vm4472_vm0, %v4471_v1  ;;  %v4300_v9 = vld [vmem:[%s4582_s15 + $0x2c] ss:$0 sps:$4 sm:$0x33]   ;;  %v794_v20 = vor.u32 %v793_v13, %v790_v12  ;;  %v637_v30 = vsel %vm628_vm4, %v634_v11, %v636_v26  ;;  %v1197_v38 = vrot.slane %v1195_v35, 1  ;;  %v1203_v46 = vshll.u32 %v4307_v40, 16  ;;  %v4315_v35 = vld [vmem:[%s5720_s1 + $0x40] sm:$0xff]  }
  0x2d   : > { %3903 = vmatprep.mubr.msk.bf16.mxu1 %vm4472_vm0, %v4471_v1  ;;  %v786_v15 = vsel %vm751_vm3, %v776_v60, %v785_v10  ;;  %v797_v16 = vshrl.u32 %v4300_v9, 16  ;;  %v800_v17 = vshll.u32 %v4300_v9, 16  ;;  %v639_v41 = vsel %vm628_vm4, %v636_v26, %v638_v36  ;;  %v4309_v60 = vld [vmem:[%s4582_s15 + $0x20] sm:$0xff]  }
  0x2e   : > { %v795_v24 = vsel %vm751_vm3, %v785_v10, %v794_v20  ;;  %v1080_v48 = vrot.slane %v4302_v28, 1  ;;  %v1201_v49 = vor.u32 %v1199_v45, %v1197_v38  ;;  %v1205_v50 = vrot.slane %v1203_v46, 1  ;;  %v1325_v13 = vld [vmem:[%s4582_s15 + $0x4] sm:$0xe]  ;;  %v4317_v45 = vld [vmem:[%s4582_s15 + $0x1c] sm:$0xff]  }
  0x2f   : > { %v799_v21 = vrot.slane %v797_v16, 1  ;;  %v802_v22 = vrot.slane %v800_v17, 2  ;;  %v1207_v55 = vshrl.u32 %v4307_v40, 16  ;;  %v1211_v56 = vshll.u32 %v4308_v51, 16 }
  0x30   : > { %v1082_v57 = vrot.slane %v4307_v40, 1  ;;  %v1215_v63 = vshrl.u32 %v4308_v51, 16  ;;  %v1227_v9 = vshll.u32 %v4310_v5, 16  ;;  %v1086_v10 = vrot.slane %v4309_v60, 1 }
  0x31   : > { %v1209_v58 = vor.u32 %v1207_v55, %v1205_v50  ;;  %v1213_v59 = vrot.slane %v1211_v56, 1 }
  0x32   : > { %v1083_v61 = vsel %vm628_vm4, %v1080_v48, %v1082_v57  ;;  %v1229_v12 = vrot.slane %v1227_v9, 1 }
  0x33   : > { %3878 = vmatmul.mubr.msk.bf16.gmra.mxu0 %vm408_vm1, %v385_v27  ;;  %v803_v27 = vor.u32 %v802_v22, %v799_v21  ;;  %v1214_v62 = vsel %vm357_vm2, %v1209_v58, %v1213_v59  ;;  %v1088_v21 = vrot.slane %v4310_v5, 1 }
  0x34   : > { %3904 = vmatmul.mubr.msk.bf16.gmra.mxu1 %vm408_vm1, %v4290_v19  ;;  %3881 = vmatprep.mubr.msk.bf16.mxu0 %vm4472_vm0, %v4471_v1  ;;  %v1034_v19 = vld [vmem:[%s4582_s15 + $0x4] sm:$0xf] }
  0x35   : > { %3907 = vmatprep.mubr.msk.bf16.mxu1 %vm4472_vm0, %v4471_v1  ;;  %v3545_v25 = vcombine.low %v1033_v18, %v1034_v19  ;;  %v804_v32 = vsel %vm751_vm3, %v794_v20, %v803_v27  ;;  %v4312_v18 = vld [vmem:[%s4582_s15 + $0xc] sm:$0xff]   ;;  %v1089_v28 = vsel %vm628_vm4, %v1086_v10, %v1088_v21 }
  0x36   : > { %v1533_v27 = vrot.slane %v4312_v18, 2 }
  0x37   : > { %v1190_v29 = vshll.u32 %v3545_v25, 16  ;;  %v1188_v33 = vshrl.u32 %v3545_v25, 16  ;;  %v1379_v25 = vshll.u32 %v4312_v18, 16 }
  0x39   : > { %v1192_v34 = vrot.slane %v1190_v29, 1 }
  0x3b   : > { %3882 = vmatmul.mubr.msk.bf16.gmra.mxu0 %vm408_vm1, %v393_v39  ;;  %v1193_v37 = vor.u32 %v1192_v34, %v1188_v33  ;;  %v1047_v39 = vld [vmem:[%s4582_s15] sm:$0xe]  ;;  %v4316_v33 = vld [vmem:[%s4582_s15 + $0x14] sm:$0xff]  }
  0x3c   : > { %3908 = vmatmul.mubr.msk.bf16.gmra.mxu1 %vm408_vm1, %v4291_v23  ;;  %3885 = vmatprep.mubr.msk.bf16.mxu0 %vm4472_vm0, %v4471_v1  ;;  %v635_v23 = vsel %vm628_vm4, %v632_v8, %v634_v11  ;;  %v3533_v42 = vcombine.low %v1047_v39, %v1034_v19  ;;  %v1223_v8 = vshrl.u32 %v4309_v60, 16  ;;  %v1388_v39 = vshll.u32 %v4316_v33, 16 }
  0x3d   : > { %3935 = vmatprep.mubr.msk.bf16.mxu1 %vm4472_vm0, %v4471_v1  ;;  %v1198_v43 = vsel %vm357_vm2, %v1193_v37, %v1197_v38  ;;  %v1385_v38 = vshrl.u32 %v4316_v33, 16  ;;  %v1535_v40 = vrot.slane %v4316_v33, 2  ;;  %v4322_v33 = vld [vmem:[%s5720_s1 + $0x50] sm:$0xff]  }
  0x3e   : > { %v1079_v47 = vrot.slane %v3533_v42, 1  ;;  %v4314_v42 = vld [vmem:[%s5720_s1 + $0x48] sm:$0xff]  }
  0x3f   : > { %v1536_v46 = vsel %vm1531_vm5, %v1533_v27, %v1535_v40 }
  0x43   : > { %3886 = vmatmul.mubr.msk.bf16.gmra.mxu0 %vm408_vm1, %v401_v52  ;;  %v1081_v52 = vsel %vm628_vm4, %v1079_v47, %v1080_v48  ;;  %v1394_v48 = vshrl.u32 %v4317_v45, 16 }
  0x44   : > { %3936 = vmatmul.mubr.msk.bf16.vlgmr.msra.gmra.mxu1 %vm408_vm1, %v768_v53  ;;  %3913 = vmatprep.mubr.msk.bf16.mxu0 %vm4472_vm0, %v4471_v1  ;;  %v4305_v53 = vld [vmem:[%s5720_s1 + $0x30] sm:$0xff]  }
  0x45   : > { %3978 = vmatpush3.bf16.msra.mxu1 %v4296_v54  ;;  %3939 = vmatprep.mubr.msk.bf16.mxu1 %vm4472_vm0, %v4471_v1  ;;  %v1206_v54 = vsel %vm357_vm2, %v1201_v49, %v1205_v50  ;;  %v1397_v49 = vshll.u32 %v4317_v45, 16  ;;  %v1537_v50 = vrot.slane %v4317_v45, 2 }
  0x46   : > { %4021 = vmatprep.subr.bf16.mxu1 %v4471_v1 }
  0x47   : > { %v1538_v55 = vsel %vm1531_vm5, %v1535_v40, %v1537_v50 }
  0x4b   : > { %3914 = vmatmul.mubr.msk.bf16.vlgmr.msra.gmra.mxu0 %vm408_vm1, %v631_v0  ;;  %v1219_v0 = vshll.u32 %v4309_v60, 16 }
  0x4c   : > { %3956 = vmatpush3.bf16.msra.mxu0 %v4295_v2  ;;  %3940 = vmatmul.mubr.msk.bf16.gmra.mxu1 %vm408_vm1, %v777_v3  ;;  %v1084_v2 = vrot.slane %v4308_v51, 1  ;;  %v1217_v3 = vor.u32 %v1215_v63, %v1213_v59  ;;  %v4319_v63 = vld [vmem:[%s4582_s15 + $0x2c] ss:$0 sps:$4 sm:$0x33]  }
  0x4d   : > { %3917 = vmatprep.mubr.msk.bf16.mxu0 %vm4472_vm0, %v4471_v1  ;;  %3943 = vmatprep.mubr.msk.bf16.mxu1 %vm4472_vm0, %v4471_v1  ;;  %v1221_v4 = vrot.slane %v1219_v0, 1  ;;  %v1541_v5 = vrot.slane %v4319_v63, 2 }
  0x4e   : > { %3999 = vmatprep.subr.bf16.mxu0 %v4471_v1  ;;  %v1085_v6 = vsel %vm628_vm4, %v1082_v57, %v1084_v2  ;;  %v1087_v16 = vsel %vm628_vm4, %v1084_v2, %v1086_v10  ;;  %v4320_v10 = vld [vmem:[%s4582_s15 + $0x4] sm:$0xfe]  }
  0x4f   : > { %v1222_v7 = vsel %vm357_vm2, %v1217_v3, %v1221_v4  ;;  %v1225_v11 = vor.u32 %v1223_v8, %v1221_v4  ;;  %v1412_v3 = vshrl.u32 %v4319_v63, 16  ;;  %v1415_v4 = vshll.u32 %v4319_v63, 16 }
  0x51   : > { %v1230_v19 = vsel %vm357_vm2, %v1225_v11, %v1229_v12  ;;  %v1414_v8 = vrot.slane %v1412_v3, 1  ;;  %v1417_v9 = vrot.slane %v1415_v4, 2 }
  0x53   : > { %3918 = vmatmul.mubr.msk.bf16.gmra.mxu0 %vm408_vm1, %v633_v14  ;;  %v1326_v14 = vld [vmem:[%s4582_s15 + $0x8] sm:$0xf] }
  0x54   : > { %3944 = vmatmul.mubr.msk.bf16.gmra.mxu1 %vm408_vm1, %v786_v15  ;;  %3921 = vmatprep.mubr.msk.bf16.mxu0 %vm4472_vm0, %v4471_v1  ;;  %v1524_v15 = vld [vmem:[%s4582_s15 + $0x4] sm:$0xc]  ;;  %v3554_v17 = vcombine.low %v1325_v13, %v1326_v14  ;;  %v1418_v13 = vor.u32 %v1417_v9, %v1414_v8 }
  0x55   : > { %3947 = vmatprep.mubr.msk.bf16.mxu1 %vm4472_vm0, %v4471_v1  ;;  %v3568_v20 = vcombine.low %v1524_v15, %v1326_v14  ;;  %v1817_v14 = vshrl.u32 %v4320_v10, 16  ;;  %v1820_v15 = vshll.u32 %v4320_v10, 16 }
  0x56   : > { %v1368_v22 = vshrl.u32 %v3554_v17, 16 }
  0x57   : > { %v1532_v26 = vrot.slane %v3568_v20, 2  ;;  %v1819_v21 = vrot.slane %v1817_v14, 1 }
  0x58   : > { %v1370_v29 = vrot.slane %v1368_v22, 1  ;;  %v1822_v22 = vrot.slane %v1820_v15, 2 }
  0x59   : > { %v1534_v34 = vsel %vm1531_vm5, %v1532_v26, %v1533_v27  ;;  %v4323_v26 = vld [vmem:[%s5720_s1 + $0x58] sm:$0xff]  }
  0x5a   : > { %v1823_v27 = vor.u32 %v1822_v22, %v1819_v21 }
  0x5b   : > { %3922 = vmatmul.mubr.msk.bf16.gmra.mxu0 %vm408_vm1, %v635_v23  ;;  %v1371_v23 = vshll.u32 %v3554_v17, 16  ;;  %v1966_v17 = vrot.slane %v4320_v10, 1 }
  0x5c   : > { %3948 = vmatmul.mubr.msk.bf16.gmra.mxu1 %vm408_vm1, %v795_v24  ;;  %3925 = vmatprep.mubr.msk.bf16.mxu0 %vm4472_vm0, %v4471_v1  ;;  %v1376_v24 = vshrl.u32 %v4312_v18, 16 }
  0x5d   : > { %3951 = vmatprep.mubr.msk.bf16.mxu1 %vm4472_vm0, %v4471_v1 }
  0x5e   : > { %v1378_v31 = vrot.slane %v1376_v24, 1  ;;  %v4324_v24 = vld [vmem:[%s4582_s15 + $0x14] sm:$0xff]  }
  0x63   : > { %3926 = vmatmul.mubr.msk.bf16.gmra.mxu0 %vm408_vm1, %v637_v30  ;;  %v1373_v30 = vrot.slane %v1371_v23, 2 }
  0x64   : > { %3952 = vmatmul.mubr.msk.bf16.gmra.mxu1 %vm408_vm1, %v804_v32  ;;  %3929 = vmatprep.mubr.msk.bf16.mxu0 %vm4472_vm0, %v4471_v1  ;;  %v1381_v32 = vrot.slane %v1379_v25, 2 }
  0x65   : > { %3979 = vmatprep.mubr.msk.bf16.mxu1 %vm4472_vm0, %v4471_v1  ;;  %v1374_v36 = vor.u32 %v1373_v30, %v1370_v29  ;;  %v1834_v29 = vshrl.u32 %v4324_v24, 16  ;;  %v1837_v30 = vshll.u32 %v4324_v24, 16 }
  0x66   : > { %v1382_v37 = vor.u32 %v1381_v32, %v1378_v31  ;;  %v1969_v31 = vrot.slane %v4324_v24, 1 }
  0x6b   : > { %3930 = vmatmul.mubr.msk.bf16.gmra.mxu0 %vm408_vm1, %v639_v41  ;;  %v1383_v41 = vsel %vm751_vm3, %v1374_v36, %v1382_v37  ;;  %v4325_v36 = vld [vmem:[%s4582_s15 + $0x1c] sm:$0xff]  }
  0x6c   : > { %3980 = vmatmul.mubr.msk.bf16.vlgmr.msra.gmra.mxu1 %vm408_vm1, %v1198_v43  ;;  %3957 = vmatprep.mubr.msk.bf16.mxu0 %vm4472_vm0, %v4471_v1  ;;  %v1387_v43 = vrot.slane %v1385_v38, 1  ;;  %v1846_v40 = vshll.u32 %v4325_v36, 16 }
  0x6d   : > { %4022 = vmatpush3.bf16.msra.mxu1 %v4306_v44  ;;  %3983 = vmatprep.mubr.msk.bf16.mxu1 %vm4472_vm0, %v4471_v1  ;;  %v1390_v44 = vrot.slane %v1388_v39, 2  ;;  %v1843_v39 = vshrl.u32 %v4325_v36, 16 }
  0x6e   : > { %4065 = vmatprep.subr.bf16.mxu1 %v4471_v1  ;;  %v1848_v45 = vrot.slane %v1846_v40, 2  ;;  %v4331_v40 = vld [vmem:[%s5720_s1 + $0x68] sm:$0xff]  }
  0x6f   : > { %v1391_v47 = vor.u32 %v1390_v44, %v1387_v43  ;;  %v1845_v44 = vrot.slane %v1843_v39, 1 }
  0x71   : > { %v1392_v51 = vsel %vm751_vm3, %v1382_v37, %v1391_v47 }
  0x73   : > { %3958 = vmatmul.mubr.msk.bf16.vlgmr.msra.gmra.mxu0 %vm408_vm1, %v1081_v52  ;;  %v1396_v52 = vrot.slane %v1394_v48, 1 }
  0x74   : > { %4000 = vmatpush3.bf16.msra.mxu0 %v4305_v53  ;;  %3984 = vmatmul.mubr.msk.bf16.gmra.mxu1 %vm408_vm1, %v1206_v54  ;;  %v1399_v53 = vrot.slane %v1397_v49, 2  ;;  %v4318_v54 = vld [vmem:[%s4582_s15 + $0x24] sm:$0xff]   ;;  %v1849_v49 = vor.u32 %v1848_v45, %v1845_v44 }
  0x75   : > { %3961 = vmatprep.mubr.msk.bf16.mxu0 %vm4472_vm0, %v4471_v1  ;;  %3987 = vmatprep.mubr.msk.bf16.mxu1 %vm4472_vm0, %v4471_v1  ;;  %v1403_v57 = vshrl.u32 %v4318_v54, 16  ;;  %v1406_v58 = vshll.u32 %v4318_v54, 16  ;;  %v1539_v59 = vrot.slane %v4318_v54, 2  ;;  %v4327_v54 = vld [vmem:[%s4582_s15 + $0x2c] ss:$0 sps:$4 sm:$0x11]  }
  0x76   : > { %4043 = vmatprep.subr.bf16.mxu0 %v4471_v1  ;;  %v1400_v56 = vor.u32 %v1399_v53, %v1396_v52  ;;  %v4908_v45 = vld [vmem:[%s4582_s15 + $0x28] sm:$0xff]  }
  0x77   : > { %v1540_v0 = vsel %vm1531_vm5, %v1537_v50, %v1539_v59  ;;  %v1542_v11 = vsel %vm1531_vm5, %v1539_v59, %v1541_v5 }
  0x78   : > { %v1401_v60 = vsel %vm751_vm3, %v1391_v47, %v1400_v56 }
  0x7b   : > { %3962 = vmatmul.mubr.msk.bf16.gmra.mxu0 %vm408_vm1, %v1083_v61  ;;  %v1405_v61 = vrot.slane %v1403_v57, 1  ;;  %v4329_v57 = vld [vmem:[%s4582_s15 + $0x8] sm:$0xfc]  }
  0x7c   : > { %3988 = vmatmul.mubr.msk.bf16.gmra.mxu1 %vm408_vm1, %v1214_v62  ;;  %3965 = vmatprep.mubr.msk.bf16.mxu0 %vm4472_vm0, %v4471_v1  ;;  %v1408_v62 = vrot.slane %v1406_v58, 2  ;;  %v4849_v58 = vld [vmem:[%s4582_s15 + $0x10] sm:$0xff]   ;;  %v2237_v63 = vshrl.u32 %v4329_v57, 16 }
  0x7d   : > { %3991 = vmatprep.mubr.msk.bf16.mxu1 %vm4472_vm0, %v4471_v1  ;;  %v2248_v3 = vshll.u32 %v4849_v58, 16 }
  0x7e   : > { %v1409_v2 = vor.u32 %v1408_v62, %v1405_v61  ;;  %v2239_v8 = vrot.slane %v2237_v63, 2 }
  0x80   : > { %v1419_v20 = vsel %vm751_vm3, %v1409_v2, %v1418_v13 }
  0x83   : > { %3966 = vmatmul.mubr.msk.bf16.gmra.mxu0 %vm408_vm1, %v1085_v6  ;;  %v4321_v6 = vld [vmem:[%s4582_s15 + $0xc] sm:$0xff]  }
  0x84   : > { %3992 = vmatmul.mubr.msk.bf16.gmra.mxu1 %vm408_vm1, %v1222_v7  ;;  %3969 = vmatprep.mubr.msk.bf16.mxu0 %vm4472_vm0, %v4471_v1  ;;  %v1410_v7 = vsel %vm751_vm3, %v1400_v56, %v1409_v2  ;;  %v1825_v12 = vshrl.u32 %v4321_v6, 16  ;;  %v1967_v18 = vrot.slane %v4321_v6, 1  ;;  %v2245_v2 = vshrl.u32 %v4849_v58, 16 }
  0x85   : > { %3995 = vmatprep.mubr.msk.bf16.mxu1 %vm4472_vm0, %v4471_v1 }
  0x86   : > { %v1968_v25 = vsel %vm628_vm4, %v1966_v17, %v1967_v18  ;;  %v1970_v37 = vsel %vm628_vm4, %v1967_v18, %v1969_v31  ;;  %v2247_v10 = vrot.slane %v2245_v2, 2 }
  0x8b   : > { %3970 = vmatmul.mubr.msk.bf16.gmra.mxu0 %vm408_vm1, %v1087_v16  ;;  %v1828_v16 = vshll.u32 %v4321_v6, 16 }
  0x8c   : > { %3996 = vmatmul.mubr.msk.bf16.gmra.mxu1 %vm408_vm1, %v1230_v19  ;;  %3973 = vmatprep.mubr.msk.bf16.mxu0 %vm4472_vm0, %v4471_v1  ;;  %v1827_v19 = vrot.slane %v1825_v12, 1  ;;  %v4862_v12 = vld [vmem:[%s4582_s15 + $0x18] sm:$0xff]  }
  0x8d   : > { %4023 = vmatprep.mubr.msk.bf16.mxu1 %vm4472_vm0, %v4471_v1  ;;  %v1830_v23 = vrot.slane %v1828_v16, 2  ;;  %v2254_v17 = vshrl.u32 %v4862_v12, 16  ;;  %v2257_v18 = vshll.u32 %v4862_v12, 16 }
  0x8f   : > { %v2256_v24 = vrot.slane %v2254_v17, 2 }
  0x93   : > { %3974 = vmatmul.mubr.msk.bf16.gmra.mxu0 %vm408_vm1, %v1089_v28  ;;  %v1831_v28 = vor.u32 %v1830_v23, %v1827_v19  ;;  %v4332_v23 = vld [vmem:[%s5720_s1 + $0x60] sm:$0xff]  }
  0x94   : > { %4024 = vmatmul.mubr.msk.bf16.vlgmr.msra.gmra.mxu1 %vm408_vm1, %v1534_v34  ;;  %4001 = vmatprep.mubr.msk.bf16.mxu0 %vm4472_vm0, %v4471_v1  ;;  %v1836_v34 = vrot.slane %v1834_v29, 1 }
  0x95   : > { %4066 = vmatpush3.bf16.msra.mxu1 %v4315_v35  ;;  %4027 = vmatprep.mubr.msk.bf16.mxu1 %vm4472_vm0, %v4471_v1  ;;  %v1832_v32 = vsel %vm751_vm3, %v1823_v27, %v1831_v28  ;;  %v1839_v35 = vrot.slane %v1837_v30, 2  ;;  %v2113_v30 = vrot.slane %v4329_v57, 2 }
  0x96   : > { %4109 = vmatprep.subr.bf16.mxu1 %v4471_v1 }
  0x97   : > { %v1840_v38 = vor.u32 %v1839_v35, %v1836_v34 }
  0x99   : > { %v1841_v43 = vsel %vm751_vm3, %v1831_v28, %v1840_v38  ;;  %v1850_v53 = vsel %vm751_vm3, %v1840_v38, %v1849_v49 }
  0x9b   : > { %4002 = vmatmul.mubr.msk.bf16.vlgmr.msra.gmra.mxu0 %vm408_vm1, %v1383_v41  ;;  %v1971_v41 = vrot.slane %v4325_v36, 1 }
  0x9c   : > { %4044 = vmatpush3.bf16.msra.mxu0 %v4314_v42  ;;  %4028 = vmatmul.mubr.msk.bf16.gmra.mxu1 %vm408_vm1, %v1536_v46  ;;  %v4326_v42 = vld [vmem:[%s4582_s15 + $0x24] sm:$0xff]  }
  0x9d   : > { %4005 = vmatprep.mubr.msk.bf16.mxu0 %vm4472_vm0, %v4471_v1  ;;  %4031 = vmatprep.mubr.msk.bf16.mxu1 %vm4472_vm0, %v4471_v1  ;;  %v1972_v46 = vsel %vm628_vm4, %v1969_v31, %v1971_v41  ;;  %v1852_v47 = vshrl.u32 %v4326_v42, 16  ;;  %v1855_v48 = vshll.u32 %v4326_v42, 16  ;;  %v1973_v50 = vrot.slane %v4326_v42, 1 }
  0x9e   : > { %4087 = vmatprep.subr.bf16.mxu0 %v4471_v1  ;;  %v2114_v31 = vrot.slane %v4849_v58, 2  ;;  %v4336_v58 = vld [vmem:[%s4582_s15 + $0x30] ss:$0 sps:$4 sm:$0x77]  }
  0x9f   : > { %v1857_v52 = vrot.slane %v1855_v48, 2  ;;  %v1974_v56 = vsel %vm628_vm4, %v1971_v41, %v1973_v50 }
  0xa0   : > { %v2115_v39 = vsel %vm1531_vm5, %v2113_v30, %v2114_v31 }
  0xa3   : > { %4006 = vmatmul.mubr.msk.bf16.gmra.mxu0 %vm408_vm1, %v1392_v51  ;;  %v1854_v51 = vrot.slane %v1852_v47, 1 }
  0xa4   : > { %4032 = vmatmul.mubr.msk.bf16.gmra.mxu1 %vm408_vm1, %v1538_v55  ;;  %4009 = vmatprep.mubr.msk.bf16.mxu0 %vm4472_vm0, %v4471_v1  ;;  %v4328_v55 = vld [vmem:[%s4582_s15 + $0x2c] ss:$0 sps:$4 sm:$0x33]  }
  0xa5   : > { %4035 = vmatprep.mubr.msk.bf16.mxu1 %vm4472_vm0, %v4471_v1  ;;  %v1858_v59 = vor.u32 %v1857_v52, %v1854_v51  ;;  %v1861_v61 = vshrl.u32 %v4328_v55, 16  ;;  %v1864_v62 = vshll.u32 %v4328_v55, 16  ;;  %v2272_v52 = vshrl.u32 %v4908_v45, 16 }
  0xa7   : > { %v1859_v4 = vsel %vm751_vm3, %v1849_v49, %v1858_v59  ;;  %v1863_v6 = vrot.slane %v1861_v61, 1  ;;  %v2116_v49 = vrot.slane %v4862_v12, 2  ;;  %v2274_v61 = vrot.slane %v2272_v52, 2 }
  0xab   : > { %4010 = vmatmul.mubr.msk.bf16.gmra.mxu0 %vm408_vm1, %v1401_v60  ;;  %v1975_v60 = vrot.slane %v4327_v54, 1 }
  0xac   : > { %4036 = vmatmul.mubr.msk.bf16.gmra.mxu1 %vm408_vm1, %v1540_v0  ;;  %4013 = vmatprep.mubr.msk.bf16.mxu0 %vm4472_vm0, %v4471_v1  ;;  %v2240_v0 = vshll.u32 %v4329_v57, 16  ;;  %v2117_v57 = vsel %vm1531_vm5, %v2114_v31, %v2116_v49 }
  0xad   : > { %4039 = vmatprep.mubr.msk.bf16.mxu1 %vm4472_vm0, %v4471_v1  ;;  %v1976_v5 = vsel %vm628_vm4, %v1973_v50, %v1975_v60 }
  0xae   : > { %v2242_v9 = vrot.slane %v2240_v0, 3 }
  0xb0   : > { %v2243_v15 = vor.u32 %v2242_v9, %v2239_v8  ;;  %v2516_v9 = vld [vmem:[%s4582_s15 + $0x4] sm:$0xe] }
  0xb3   : > { %4014 = vmatmul.mubr.msk.bf16.gmra.mxu0 %vm408_vm1, %v1410_v7  ;;  %v1866_v7 = vrot.slane %v1864_v62, 2 }
  0xb4   : > { %4040 = vmatmul.mubr.msk.bf16.gmra.mxu1 %vm408_vm1, %v1542_v11  ;;  %4017 = vmatprep.mubr.msk.bf16.mxu0 %vm4472_vm0, %v4471_v1  ;;  %v2250_v11 = vrot.slane %v2248_v3, 3 }
  0xb5   : > { %4067 = vmatprep.mubr.msk.bf16.mxu1 %vm4472_vm0, %v4471_v1  ;;  %v1867_v14 = vor.u32 %v1866_v7, %v1863_v6 }
  0xb6   : > { %v2251_v16 = vor.u32 %v2250_v11, %v2247_v10  ;;  %v4944_v10 = vld [vmem:[%s4582_s15 + $0x8] sm:$0xf] }
  0xb7   : > { %v1868_v21 = vsel %vm751_vm3, %v1858_v59, %v1867_v14 }
  0xb8   : > { %v2252_v22 = vsel %vm2235_vm6, %v2243_v15, %v2251_v16 }
  0xbb   : > { %4018 = vmatmul.mubr.msk.bf16.gmra.mxu0 %vm408_vm1, %v1419_v20 }
  0xbc   : > { %4068 = vmatmul.mubr.msk.bf16.vlgmr.msra.gmra.mxu1 %vm408_vm1, %v1968_v25  ;;  %4045 = vmatprep.mubr.msk.bf16.mxu0 %vm4472_vm0, %v4471_v1  ;;  %v2259_v25 = vrot.slane %v2257_v18, 3 }
  0xbd   : > { %4110 = vmatpush3.bf16.msra.mxu1 %v4323_v26  ;;  %4071 = vmatprep.mubr.msk.bf16.mxu1 %vm4472_vm0, %v4471_v1  ;;  %v4882_v26 = vld [vmem:[%s4582_s15 + $0x20] sm:$0xff]  }
  0xbe   : > { %4153 = vmatprep.subr.bf16.mxu1 %v4471_v1  ;;  %v2263_v34 = vshrl.u32 %v4882_v26, 16  ;;  %v2266_v35 = vshll.u32 %v4882_v26, 16  ;;  %v2118_v3 = vrot.slane %v4882_v26, 2 }
  0xc0   : > { %v2268_v44 = vrot.slane %v2266_v35, 3  ;;  %v2119_v14 = vsel %vm1531_vm5, %v2116_v49, %v2118_v3  ;;  %v4977_v49 = vld [vmem:[%s4582_s15 + $0x14] sm:$0xff]  }
  0xc3   : > { %4046 = vmatmul.mubr.msk.bf16.vlgmr.msra.gmra.mxu0 %vm408_vm1, %v1832_v32 }
  0xc4   : > { %4088 = vmatpush3.bf16.msra.mxu0 %v4322_v33  ;;  %4072 = vmatmul.mubr.msk.bf16.gmra.mxu1 %vm408_vm1, %v1970_v37  ;;  %v2260_v33 = vor.u32 %v2259_v25, %v2256_v24  ;;  %v2120_v25 = vrot.slane %v4908_v45, 2 }
  0xc5   : > { %4049 = vmatprep.mubr.msk.bf16.mxu0 %vm4472_vm0, %v4471_v1  ;;  %4075 = vmatprep.mubr.msk.bf16.mxu1 %vm4472_vm0, %v4471_v1 }
  0xc6   : > { %4131 = vmatprep.subr.bf16.mxu0 %v4471_v1  ;;  %v2261_v42 = vsel %vm2235_vm6, %v2251_v16, %v2260_v33 }
  0xcb   : > { %4050 = vmatmul.mubr.msk.bf16.gmra.mxu0 %vm408_vm1, %v1841_v43  ;;  %v2265_v43 = vrot.slane %v2263_v34, 2 }
  0xcc   : > { %4076 = vmatmul.mubr.msk.bf16.gmra.mxu1 %vm408_vm1, %v1972_v46  ;;  %4053 = vmatprep.mubr.msk.bf16.mxu0 %vm4472_vm0, %v4471_v1 }
  0xcd   : > { %4079 = vmatprep.mubr.msk.bf16.mxu1 %vm4472_vm0, %v4471_v1  ;;  %v2269_v51 = vor.u32 %v2268_v44, %v2265_v43 }
  0xcf   : > { %v2270_v60 = vsel %vm2235_vm6, %v2260_v33, %v2269_v51 }
  0xd3   : > { %4054 = vmatmul.mubr.msk.bf16.gmra.mxu0 %vm408_vm1, %v1850_v53  ;;  %v2275_v53 = vshll.u32 %v4908_v45, 16 }
  0xd4   : > { %4080 = vmatmul.mubr.msk.bf16.gmra.mxu1 %vm408_vm1, %v1974_v56  ;;  %4057 = vmatprep.mubr.msk.bf16.mxu0 %vm4472_vm0, %v4471_v1 }
  0xd5   : > { %4083 = vmatprep.mubr.msk.bf16.mxu1 %vm4472_vm0, %v4471_v1  ;;  %v2277_v62 = vrot.slane %v2275_v53, 3 }
  0xd7   : > { %v2278_v7 = vor.u32 %v2277_v62, %v2274_v61  ;;  %v2691_v61 = vshll.u32 %v4977_v49, 16 }
  0xd9   : > { %v2279_v18 = vsel %vm2235_vm6, %v2269_v51, %v2278_v7 }
  0xdb   : > { %4058 = vmatmul.mubr.msk.bf16.gmra.mxu0 %vm408_vm1, %v1859_v4  ;;  %v2281_v4 = vshrl.u32 %v4336_v58, 16 }
  0xdc   : > { %v4865_v13 = vpop.f32.mrf.mxu1  ;;  %4084 = vmatmul.mubr.msk.bf16.gmra.mxu1 %vm408_vm1, %v1976_v5  ;;  %4061 = vmatprep.mubr.msk.bf16.mxu0 %vm4472_vm0, %v4471_v1  ;;  %v2284_v5 = vshll.u32 %v4336_v58, 16 }
  0xdd   : > { %4111 = vmatprep.mubr.msk.bf16.mxu1 %vm4472_vm0, %v4471_v1  ;;  %v2283_v15 = vrot.slane %v2281_v4, 2 }
  0xde   : > { %v3893_v19 = vpop.f32.mrf.mxu1  ;;  %v2286_v16 = vrot.slane %v2284_v5, 3 }
  0xdf   : > { %v4953_v19 = vld [vmem:[%s4582_s15 + $0xc] sm:$0xff]  }
  0xe0   : > { %v4874_v20 = vpop.f32.mrf.mxu1  ;;  %v2287_v26 = vor.u32 %v2286_v16, %v2283_v15  ;;  %v2682_v33 = vshll.u32 %v4953_v19, 16  ;;  %v2693_v15 = vrot.slane %v2691_v61, 2 }
  0xe2   : > { %v3894_v27 = vpop.f32.mrf.mxu1 }
  0xe3   : > { %v4884_v28 = vpop.f32.mrf.mxu0  ;;  %4062 = vmatmul.mubr.msk.bf16.gmra.mxu0 %vm408_vm1, %v1868_v21  ;;  %v3677_v21 = vcombine.low %v2516_v9, %v4944_v10  ;;  %v4341_v9 = vld [vmem:[%s5720_s1 + $0x78] sm:$0xff]  }
  0xe4   : > { %v4887_v29 = vpop.f32.mrf.mxu1  ;;  %4112 = vmatmul.mubr.msk.bf16.vlgmr.msra.gmra.mxu1 %vm408_vm1, %v2252_v22  ;;  %4089 = vmatprep.mubr.msk.bf16.mxu0 %vm4472_vm0, %v4471_v1  ;;  %v548_v16 = vadd.f32 %v4865_v13, %v4884_v28  ;;  %v5014_v13 = vld [vmem:[%s5721_s2] sm:$0xff] }
  0xe5   : > { %v3871_v32 = vpop.f32.mrf.mxu0  ;;  %4154 = vmatpush3.bf16.msra.mxu1 %v4332_v23  ;;  %4115 = vmatprep.mubr.msk.bf16.mxu1 %vm4472_vm0, %v4471_v1  ;;  %v2671_v30 = vshrl.u32 %v3677_v21, 16  ;;  %v2674_v31 = vshll.u32 %v3677_v21, 16 }
  0xe6   : > { %v3897_v36 = vpop.f32.mrf.mxu1  ;;  %4197 = vmatprep.subr.bf16.mxu1 %v4471_v1  ;;  %v2679_v32 = vshrl.u32 %v4953_v19, 16 }
  0xe7   : > { %v4898_v37 = vpop.f32.mrf.mxu0  ;;  %v2673_v43 = vrot.slane %v2671_v30, 1  ;;  %v2676_v44 = vrot.slane %v2674_v31, 2 }
  0xe8   : > { %v4900_v38 = vpop.f32.mrf.mxu1  ;;  %v2681_v45 = vrot.slane %v2679_v32, 1  ;;  %v551_v31 = vadd.f32 %v4874_v20, %v4898_v37  ;;  %v5033_v20 = vld [vmem:[%s5721_s2 + $0x8] sm:$0xff] }
  0xe9   : > { %v3872_v41 = vpop.f32.mrf.mxu0 }
  0xea   : > { %v3898_v46 = vpop.f32.mrf.mxu1  ;;  %v4337_v41 = vld [vmem:[%s4582_s15 + $0x30] ss:$0 sps:$4 sm:$0x33]  }
  0xeb   : > { %v4910_v47 = vpop.f32.mrf.mxu0  ;;  %4090 = vmatmul.mubr.msk.bf16.vlgmr.msra.gmra.mxu0 %vm408_vm1, %v2115_v39  ;;  %v2121_v39 = vsel %vm1531_vm5, %v2118_v3, %v2120_v25  ;;  %v2684_v46 = vrot.slane %v2682_v33, 2  ;;  %v2122_v53 = vrot.slane %v4337_v41, 2  ;;  %v4993_v3 = vld [vmem:[%s4582_s15 + $0x1c] sm:$0xff]  }
  0xec   : > { %4132 = vmatpush3.bf16.msra.mxu0 %v4331_v40  ;;  %v4913_v48 = vpop.f32.mrf.mxu1  ;;  %4116 = vmatmul.mubr.msk.bf16.gmra.mxu1 %vm408_vm1, %v2261_v42  ;;  %v2288_v40 = vsel %vm2235_vm6, %v2278_v7, %v2287_v26  ;;  %v2697_v21 = vshrl.u32 %v4993_v3, 16 }
  0xed   : > { %v3875_v50 = vpop.f32.mrf.mxu0  ;;  %4093 = vmatprep.mubr.msk.bf16.mxu0 %vm4472_vm0, %v4471_v1  ;;  %4119 = vmatprep.mubr.msk.bf16.mxu1 %vm4472_vm0, %v4471_v1  ;;  %v2685_v58 = vor.u32 %v2684_v46, %v2681_v45  ;;  %v2123_v5 = vsel %vm1531_vm5, %v2120_v25, %v2122_v53  ;;  %v5037_v46 = vld [vmem:[%s4582_s15 + $0x24] sm:$0xff]  }
  0xee   : > { %v3901_v54 = vpop.f32.mrf.mxu1  ;;  %4175 = vmatprep.subr.bf16.mxu0 %v4471_v1 }
  0xef   : > { %v4924_v55 = vpop.f32.mrf.mxu0 }
  0xf0   : > { %v4926_v56 = vpop.f32.mrf.mxu1 }
  0xf1   : > { %v3876_v59 = vpop.f32.mrf.mxu0 }
  0xf2   : > { %v3902_v63 = vpop.f32.mrf.mxu1  ;;  %v2530_v59 = vld [vmem:[%s4582_s15 + $0x4] sm:$0xc] }
  0xf3   : > { %v4931_v0 = vpop.f32.mrf.mxu0  ;;  %4094 = vmatmul.mubr.msk.bf16.gmra.mxu0 %vm408_vm1, %v2117_v57  ;;  %v2677_v57 = vor.u32 %v2676_v44, %v2673_v43  ;;  %v4340_v44 = vld [vmem:[%s5720_s1 + $0x70] sm:$0xff]  }
  0xf4   : > { %v4934_v2 = vpop.f32.mrf.mxu1  ;;  %4120 = vmatmul.mubr.msk.bf16.gmra.mxu1 %vm408_vm1, %v2270_v60  ;;  %4097 = vmatprep.mubr.msk.bf16.mxu0 %vm4472_vm0, %v4471_v1  ;;  %v2688_v60 = vshrl.u32 %v4977_v49, 16 }
  0xf5   : > { %v3879_v6 = vpop.f32.mrf.mxu0  ;;  %4123 = vmatprep.mubr.msk.bf16.mxu1 %vm4472_vm0, %v4471_v1 }
  0xf6   : > { %v3905_v8 = vpop.f32.mrf.mxu1  ;;  %v3665_v6 = vcombine.low %v2530_v59, %v4944_v10  ;;  %v2700_v10 = vshll.u32 %v4993_v3, 16  ;;  %v2565_v59 = vrot.slane %v4977_v49, 2 }
  0xf7   : > { %v4946_v11 = vpop.f32.mrf.mxu0  ;;  %v2686_v8 = vsel %vm751_vm3, %v2677_v57, %v2685_v58 }
  0xf8   : > { %v4948_v12 = vpop.f32.mrf.mxu1  ;;  %v2562_v26 = vrot.slane %v3665_v6, 2 }
  0xf9   : > { %v3880_v17 = vpop.f32.mrf.mxu0 }
  0xfa   : > { %v3906_v22 = vpop.f32.mrf.mxu1 }
  0xfb   : > { %v4956_v23 = vpop.f32.mrf.mxu0  ;;  %4098 = vmatmul.mubr.msk.bf16.gmra.mxu0 %vm408_vm1, %v2119_v14  ;;  %v2690_v14 = vrot.slane %v2688_v60, 1 }
  0xfc   : > { %v4959_v24 = vpop.f32.mrf.mxu1  ;;  %4124 = vmatmul.mubr.msk.bf16.gmra.mxu1 %vm408_vm1, %v2279_v18  ;;  %4101 = vmatprep.mubr.msk.bf16.mxu0 %vm4472_vm0, %v4471_v1 }
  0xfd   : > { %v3883_v27 = vpop.f32.mrf.mxu0  ;;  %4127 = vmatprep.mubr.msk.bf16.mxu1 %vm4472_vm0, %v4471_v1  ;;  %v2694_v30 = vor.u32 %v2693_v15, %v2690_v14 }
  0xfe   : > { %v3909_v34 = vpop.f32.mrf.mxu1  ;;  %v2563_v27 = vrot.slane %v4953_v19, 2  ;;  %v2699_v19 = vrot.slane %v2697_v21, 1 }
  0xff   : > { %v4969_v35 = vpop.f32.mrf.mxu0  ;;  %v2695_v45 = vsel %vm751_vm3, %v2685_v58, %v2694_v30 }
 0x100   : > { %v4971_v36 = vpop.f32.mrf.mxu1  ;;  %v2564_v43 = vsel %vm1531_vm5, %v2562_v26, %v2563_v27 }
 0x101   : > { %v3884_v42 = vpop.f32.mrf.mxu0 }
 0x102   : > { %v3910_v50 = vpop.f32.mrf.mxu1 }
 0x103   : > { %v4979_v51 = vpop.f32.mrf.mxu0  ;;  %4102 = vmatmul.mubr.msk.bf16.gmra.mxu0 %vm408_vm1, %v2121_v39  ;;  %v2702_v39 = vrot.slane %v2700_v10, 2  ;;  %v556_v50 = vadd.f32 %v4887_v29, %v4910_v47  ;;  %v559_v29 = vadd.f32 %v4900_v38, %v4924_v55  ;;  %v2709_v38 = vshll.u32 %v5037_v46, 16  ;;  %v5070_v10 = vld [vmem:[%s4582_s15 + $0x2c] ss:$0 sps:$4 sm:$0x33]  }
 0x104   : > { %v860_v52 = vpop.f32.mrf.mxu1  ;;  %4128 = vmatmul.mubr.msk.bf16.gmra.mxu1 %vm408_vm1, %v2288_v40  ;;  %4105 = vmatprep.mubr.msk.bf16.mxu0 %vm4472_vm0, %v4471_v1 }
 0x105   : > { %v3887_v54 = vpop.f32.mrf.mxu0  ;;  %4155 = vmatprep.mubr.msk.bf16.mxu1 %vm4472_vm0, %v4471_v1  ;;  %v5043_v60 = vor.u32 %v2702_v39, %v2699_v19  ;;  %v2711_v19 = vrot.slane %v2709_v38, 2 }
 0x106   : > { %v3937_v62 = vpop.f32.mrf.mxu1 }
 0x107   : > { %v4990_v63 = vpop.f32.mrf.mxu0  ;;  %v2704_v21 = vsel %vm751_vm3, %v2694_v30, %v5043_v60  ;;  %v5082_v30 = vld [vmem:[%s5721_s2 + $0x18] sm:$0xff] }
 0x108   : > { %v863_v4 = vpop.f32.mrf.mxu1 }
 0x109   : > { %v3888_v7 = vpop.f32.mrf.mxu0 }
 0x10a   : > { %v3938_v17 = vpop.f32.mrf.mxu1  ;;  %v2706_v7 = vshrl.u32 %v5037_v46, 16 }
 0x10b   : > { %v695_v18 = vpop.f32.mrf.mxu0  ;;  %4106 = vmatmul.mubr.msk.bf16.gmra.mxu0 %vm408_vm1, %v2123_v5 }
 0x10c   : > { %v734_v22 = vadd.f32 %v695_v18, %v548_v16  ;;  %v868_v25 = vpop.f32.mrf.mxu1  ;;  %4156 = vmatmul.mubr.msk.bf16.vlgmr.msra.gmra.mxu1 %vm408_vm1, %v2686_v8  ;;  %4133 = vmatprep.mubr.msk.bf16.mxu0 %vm4472_vm0, %v4471_v1  ;;  %v2566_v18 = vsel %vm1531_vm5, %v2563_v27, %v2565_v59 }
 0x10d   : > { %v3915_v28 = vpop.f32.mrf.mxu0  ;;  %4198 = vmatpush3.bf16.msra.mxu1 %v4341_v9  ;;  %4159 = vmatprep.mubr.msk.bf16.mxu1 %vm4472_vm0, %v4471_v1 }
 0x10e   : > { %v899_v32 = vadd.f32 %v860_v52, %v734_v22  ;;  %v3941_v33 = vpop.f32.mrf.mxu1 }
 0x10f   : > { %v698_v34 = vpop.f32.mrf.mxu0 }
 0x110   : > { %v909_v40 = vmul.f32 %v899_v32, %v5014_v13  ;;  %v735_v41 = vadd.f32 %v698_v34, %v551_v31  ;;  %v871_v42 = vpop.f32.mrf.mxu1  ;;  %v564_v32 = vadd.f32 %v4913_v48, %v4931_v0  ;;  %v2708_v34 = vrot.slane %v2706_v7, 1 }
 0x111   : > { %v3916_v37 = vpop.f32.mrf.mxu0  ;;  %v2715_v48 = vshrl.u32 %v5070_v10, 16  ;;  %v2718_v0 = vshll.u32 %v5070_v10, 16 }
 0x112   : > { %v3731_v52 = vpack.c.bf16 %v909_v40, %v909_v40  ;;  %v900_v53 = vadd.f32 %v863_v4, %v735_v41  ;;  %v3942_v54 = vpop.f32.mrf.mxu1  ;;  %v997_v61 = vmul.f32 %v909_v40, %v909_v40  ;;  %v971_v47 = vsel %vm970_vm8, %v909_v40, 0.0  ;;  %v5055_v4 = vld [vmem:[%s5721_s2 + $0x10] sm:$0xff] }
 0x113   : > { %v703_v57 = vpop.f32.mrf.mxu0  ;;  %4134 = vmatmul.mubr.msk.bf16.vlgmr.msra.gmra.mxu0 %vm408_vm1, %v2564_v43 }
 0x114   : > { %960 = vst.msk [vmem:[%s5028_s7] sm:$0xf] %vm959_vm7, %v3731_v52  ;;  %v910_v58 = vmul.f32 %v900_v53, %v5033_v20  ;;  %v736_v62 = vadd.f32 %v703_v57, %v556_v50  ;;  %4176 = vmatpush3.bf16.msra.mxu0 %v4340_v44  ;;  %v876_v5 = vpop.f32.mrf.mxu1  ;;  %4160 = vmatmul.mubr.msk.bf16.gmra.mxu1 %vm408_vm1, %v2695_v45  ;;  %v1007_v22 = vsel %vm970_vm8, %v997_v61, 0.0 }
 0x115   : > { %v3919_v6 = vpop.f32.mrf.mxu0  ;;  %4137 = vmatprep.mubr.msk.bf16.mxu0 %vm4472_vm0, %v4471_v1  ;;  %4163 = vmatprep.mubr.msk.bf16.mxu1 %vm4472_vm0, %v4471_v1  ;;  %v567_v57 = vadd.f32 %v4926_v56, %v4946_v11  ;;  %v2717_v11 = vrot.slane %v2715_v48, 1 }
 0x116   : > { %v3732_v55 = vpack.c.bf16 %v910_v58, %v910_v58  ;;  %v972_v8 = vsel %vm970_vm8, %v910_v58, 0.0  ;;  %v998_v9 = vmul.f32 %v910_v58, %v910_v58  ;;  %v901_v14 = vadd.f32 %v868_v25, %v736_v62  ;;  %v3945_v15 = vpop.f32.mrf.mxu1  ;;  %v5101_v58 = vld [vmem:[%s5721_s2 + $0x20] sm:$0xff] }
 0x117   : > { %v973_v16 = vadd.f32 %v972_v8, %v971_v47  ;;  %v706_v17 = vpop.f32.mrf.mxu0  ;;  %v2720_v8 = vrot.slane %v2718_v0, 2 }
 0x118   : > { %961 = vst.msk [vmem:[%s5028_s7 + $0x4] sm:$0xf] %vm959_vm7, %v3732_v55  ;;  %v1008_v26 = vsel %vm970_vm8, %v998_v9, 0.0  ;;  %v911_v25 = vmul.f32 %v901_v14, %v5055_v4  ;;  %v737_v28 = vadd.f32 %v706_v17, %v559_v29  ;;  %v879_v31 = vpop.f32.mrf.mxu1  ;;  %v2712_v29 = vor.u32 %v2711_v19, %v2708_v34 }
 0x119   : > { %v1009_v27 = vadd.f32 %v1008_v26, %v1007_v22  ;;  %v3920_v33 = vpop.f32.mrf.mxu0  ;;  %v572_v17 = vadd.f32 %v4934_v2, %v4956_v23  ;;  %v3016_v2 = vld [vmem:[%s4582_s15 + $0x8] sm:$0x8]  ;;  %v2569_v19 = vrot.slane %v5037_v46, 2 }
 0x11a   : > { %v3733_v39 = vpack.c.bf16 %v911_v25, %v911_v25  ;;  %v974_v40 = vsel %vm970_vm8, %v911_v25, 0.0  ;;  %v999_v41 = vmul.f32 %v911_v25, %v911_v25  ;;  %v902_v43 = vadd.f32 %v871_v42, %v737_v28  ;;  %v3946_v44 = vpop.f32.mrf.mxu1  ;;  %v2817_v25 = vld [vmem:[%s4582_s15 + $0x8] sm:$0xc]  ;;  %v2818_v33 = vld [vmem:[%s4582_s15 + $0xc] sm:$0xf] }
 0x11b   : > { %v975_v37 = vadd.f32 %v974_v40, %v973_v16  ;;  %v711_v45 = vpop.f32.mrf.mxu0  ;;  %4138 = vmatmul.mubr.msk.bf16.gmra.mxu0 %vm408_vm1, %v2566_v18  ;;  %v2567_v42 = vrot.slane %v4993_v3, 2  ;;  %v2713_v26 = vsel %vm751_vm3, %v5043_v60, %v2712_v29  ;;  %v3686_v48 = vcombine.low %v2817_v25, %v2818_v33 }
 0x11c   : > { %962 = vst.msk [vmem:[%s5028_s7 + $0x8] sm:$0xf] %vm959_vm7, %v3733_v39  ;;  %v1010_v50 = vsel %vm970_vm8, %v999_v41, 0.0  ;;  %v912_v52 = vmul.f32 %v902_v43, %v5082_v30  ;;  %v738_v53 = vadd.f32 %v711_v45, %v564_v32  ;;  %v884_v54 = vpop.f32.mrf.mxu1  ;;  %4164 = vmatmul.mubr.msk.bf16.gmra.mxu1 %vm408_vm1, %v2704_v21  ;;  %4141 = vmatprep.mubr.msk.bf16.mxu0 %vm4472_vm0, %v4471_v1  ;;  %v5118_v21 = vld [vmem:[%s5721_s2 + $0x28] sm:$0xff] }
 0x11d   : > { %v1011_v61 = vadd.f32 %v1010_v50, %v1009_v27  ;;  %v3923_v62 = vpop.f32.mrf.mxu0  ;;  %4167 = vmatprep.mubr.msk.bf16.mxu1 %vm4472_vm0, %v4471_v1  ;;  %v2721_v39 = vor.u32 %v2720_v8, %v2717_v11  ;;  %v3700_v0 = vcombine.low %v3016_v2, %v2818_v33  ;;  %v5183_v33 = vld [vmem:[%s5721_s2 + $0x40] sm:$0xff] }
 0x11e   : > { %v3734_v47 = vpack.c.bf16 %v912_v52, %v912_v52  ;;  %v976_v6 = vsel %vm970_vm8, %v912_v52, 0.0  ;;  %v1000_v7 = vmul.f32 %v912_v52, %v912_v52  ;;  %v903_v3 = vadd.f32 %v876_v5, %v738_v53  ;;  %v3949_v38 = vpop.f32.mrf.mxu1 }
 0x11f   : > { %v977_v55 = vadd.f32 %v976_v6, %v975_v37  ;;  %v714_v56 = vpop.f32.mrf.mxu0  ;;  %v2568_v5 = vsel %vm1531_vm5, %v2565_v59, %v2567_v42  ;;  %v5140_v37 = vld [vmem:[%s5721_s2 + $0x30] sm:$0xff]  ;;  %v2570_v62 = vsel %vm1531_vm5, %v2567_v42, %v2569_v19  ;;  %v5162_v42 = vld [vmem:[%s5721_s2 + $0x38] sm:$0xff]  ;;  %v3024_v8 = vrot.slane %v3700_v0, 3 }
 0x120   : > { %963 = vst.msk [vmem:[%s5028_s7 + $0xc] sm:$0xf] %vm959_vm7, %v3734_v47  ;;  %v1012_v9 = vsel %vm970_vm8, %v1000_v7, 0.0  ;;  %v913_v14 = vmul.f32 %v903_v3, %v5101_v58  ;;  %v739_v15 = vadd.f32 %v714_v56, %v567_v57  ;;  %v887_v16 = vpop.f32.mrf.mxu1  ;;  %v2722_v47 = vsel %vm751_vm3, %v2712_v29, %v2721_v39  ;;  %v5150_v6 = vld [vmem:[%s4582_s15 + $0x10] sm:$0xff]  }
 0x121   : > { %v1013_v18 = vadd.f32 %v1012_v9, %v1011_v61  ;;  %v3924_v22 = vpop.f32.mrf.mxu0  ;;  %v580_v56 = vadd.f32 %v4959_v24, %v4979_v51  ;;  %v2860_v9 = vshrl.u32 %v3686_v48, 16  ;;  %v2863_v24 = vshll.u32 %v3686_v48, 16 }
 0x122   : > { %v3735_v28 = vpack.c.bf16 %v913_v14, %v913_v14  ;;  %v978_v49 = vsel %vm970_vm8, %v913_v14, 0.0  ;;  %v1001_v32 = vmul.f32 %v913_v14, %v913_v14  ;;  %v904_v59 = vadd.f32 %v879_v31, %v739_v15  ;;  %v3950_v27 = vpop.f32.mrf.mxu1 }
 0x123   : > { %v979_v23 = vadd.f32 %v978_v49, %v977_v55  ;;  %v719_v34 = vpop.f32.mrf.mxu0  ;;  %4142 = vmatmul.mubr.msk.bf16.gmra.mxu0 %vm408_vm1, %v2568_v5  ;;  %v575_v31 = vadd.f32 %v4948_v12, %v4969_v35  ;;  %v2868_v51 = vshrl.u32 %v5150_v6, 16 }
 0x124   : > { %964 = vst.msk [vmem:[%s5028_s7 + $0x10] sm:$0xf] %vm959_vm7, %v3735_v28  ;;  %v1014_v60 = vsel %vm970_vm8, %v1001_v32, 0.0  ;;  %v914_v40 = vmul.f32 %v904_v59, %v5118_v21  ;;  %v740_v41 = vadd.f32 %v719_v34, %v572_v17  ;;  %v892_v43 = vpop.f32.mrf.mxu1  ;;  %4168 = vmatmul.mubr.msk.bf16.gmra.mxu1 %vm408_vm1, %v2713_v26  ;;  %4145 = vmatprep.mubr.msk.bf16.mxu0 %vm4472_vm0, %v4471_v1  ;;  %v2871_v26 = vshll.u32 %v5150_v6, 16 }
 0x125   : > { %v1015_v44 = vadd.f32 %v1014_v60, %v1013_v18  ;;  %v3927_v45 = vpop.f32.mrf.mxu0  ;;  %4171 = vmatprep.mubr.msk.bf16.mxu1 %vm4472_vm0, %v4471_v1  ;;  %v583_v59 = vadd.f32 %v4971_v36, %v4990_v63 }
 0x126   : > { %v3736_v50 = vpack.c.bf16 %v914_v40, %v914_v40  ;;  %v980_v52 = vsel %vm970_vm8, %v914_v40, 0.0  ;;  %v1002_v53 = vmul.f32 %v914_v40, %v914_v40  ;;  %v905_v57 = vadd.f32 %v884_v54, %v740_v41  ;;  %v3953_v12 = vpop.f32.mrf.mxu1 }
 0x127   : > { %v981_v35 = vadd.f32 %v980_v52, %v979_v23  ;;  %v722_v61 = vpop.f32.mrf.mxu0  ;;  %v2571_v54 = vrot.slane %v5070_v10, 2  ;;  %v2862_v23 = vrot.slane %v2860_v9, 2  ;;  %v2873_v45 = vrot.slane %v2871_v26, 3  ;;  %v5203_v12 = vld [vmem:[%s5721_s2 + $0x48] sm:$0xff] }
 0x128   : > { %965 = vst.msk [vmem:[%s5028_s7 + $0x14] sm:$0xf] %vm959_vm7, %v3736_v50  ;;  %v1016_v7 = vsel %vm970_vm8, %v1002_v53, 0.0  ;;  %v915_v3 = vmul.f32 %v905_v57, %v5140_v37  ;;  %v741_v38 = vadd.f32 %v722_v61, %v575_v31  ;;  %v895_v55 = vpop.f32.mrf.mxu1  ;;  %v2865_v31 = vrot.slane %v2863_v24, 3 }
 0x129   : > { %v1017_v11 = vadd.f32 %v1016_v7, %v1015_v44  ;;  %v3928_v29 = vpop.f32.mrf.mxu0  ;;  %v2870_v44 = vrot.slane %v2868_v51, 2  ;;  %v2572_v53 = vsel %vm1531_vm5, %v2569_v19, %v2571_v54 }
 0x12a   : > { %v3737_v14 = vpack.c.bf16 %v915_v3, %v915_v3  ;;  %v982_v15 = vsel %vm970_vm8, %v915_v3, 0.0  ;;  %v1003_v5 = vmul.f32 %v915_v3, %v915_v3  ;;  %v906_v17 = vadd.f32 %v887_v16, %v741_v38  ;;  %v3954_v18 = vpop.f32.mrf.mxu1 }
 0x12b   : > { %v983_v10 = vadd.f32 %v982_v15, %v981_v35  ;;  %v727_v22 = vpop.f32.mrf.mxu0  ;;  %4146 = vmatmul.mubr.msk.bf16.gmra.mxu0 %vm408_vm1, %v2570_v62  ;;  %v3025_v16 = vrot.slane %v5150_v6, 3  ;;  %v2866_v54 = vor.u32 %v2865_v31, %v2862_v23 }
 0x12c   : > { %966 = vst.msk [vmem:[%s5028_s7 + $0x18] sm:$0xf] %vm959_vm7, %v3737_v14  ;;  %v1018_v25 = vsel %vm970_vm8, %v1003_v5, 0.0  ;;  %v916_v28 = vmul.f32 %v906_v17, %v5162_v42  ;;  %v742_v49 = vadd.f32 %v727_v22, %v580_v56  ;;  %v5172_v32 = vpop.f32.mrf.mxu1  ;;  %4172 = vmatmul.mubr.msk.bf16.gmra.mxu1 %vm408_vm1, %v2722_v47  ;;  %4149 = vmatprep.mubr.msk.bf16.mxu0 %vm4472_vm0, %v4471_v1 }
 0x12d   : > { %v1019_v27 = vadd.f32 %v1018_v25, %v1017_v11  ;;  %v3931_v2 = vpop.f32.mrf.mxu0  ;;  %4199 = vmatprep.mubr.msk.bf16.mxu1 %vm4472_vm0, %v4471_v1  ;;  %v3026_v61 = vsel %vm3023_vm9, %v3024_v8, %v3025_v16  ;;  %v2874_v56 = vor.u32 %v2873_v45, %v2870_v44 }
 0x12e   : > { %v3738_v34 = vpack.c.bf16 %v916_v28, %v916_v28  ;;  %v984_v39 = vsel %vm970_vm8, %v916_v28, 0.0  ;;  %v1004_v60 = vmul.f32 %v916_v28, %v916_v28  ;;  %v907_v40 = vadd.f32 %v892_v43, %v742_v49  ;;  %v3981_v36 = vpop.f32.mrf.mxu1  ;;  %v5198_v43 = vld [vmem:[%s4582_s15 + $0x18] sm:$0xff]  }
 0x12f   : > { %v985_v63 = vadd.f32 %v984_v39, %v983_v10  ;;  %v730_v41 = vpop.f32.mrf.mxu0  ;;  %v2880_v9 = vshll.u32 %v5198_v43, 16  ;;  %v3027_v5 = vrot.slane %v5198_v43, 3  ;;  %v2875_v28 = vsel %vm2235_vm6, %v2866_v54, %v2874_v56 }
 0x130   : > { %967 = vst.msk [vmem:[%s5028_s7 + $0x1c] sm:$0xf] %vm959_vm7, %v3738_v34  ;;  %v1020_v48 = vsel %vm970_vm8, %v1004_v60, 0.0  ;;  %v917_v0 = vmul.f32 %v907_v40, %v5183_v33  ;;  %v743_v50 = vadd.f32 %v730_v41, %v583_v59  ;;  %v5192_v52 = vpop.f32.mrf.mxu1 }
 0x131   : > { %v1021_v57 = vadd.f32 %v1020_v48, %v1019_v27  ;;  %v3932_v35 = vpop.f32.mrf.mxu0  ;;  %v2882_v59 = vrot.slane %v2880_v9, 3  ;;  %v4350_v27 = vld [vmem:[%s4582_s15 + $0x20] sm:$0xff]   ;;  %v3028_v34 = vsel %vm3023_vm9, %v3025_v16, %v3027_v5 }
 0x132   : > { %v3739_v62 = vpack.c.bf16 %v917_v0, %v917_v0  ;;  %v986_v47 = vsel %vm970_vm8, %v917_v0, 0.0  ;;  %v1005_v46 = vmul.f32 %v917_v0, %v917_v0  ;;  %v908_v7 = vadd.f32 %v895_v55, %v743_v50  ;;  %v3982_v19 = vpop.f32.mrf.mxu1 }
 0x133   : > { %v987_v3 = vadd.f32 %v986_v47, %v985_v63  ;;  %v5209_v38 = vpop.f32.mrf.mxu0  ;;  %4150 = vmatmul.mubr.msk.bf16.gmra.mxu0 %vm408_vm1, %v2572_v53  ;;  %v2877_v55 = vshrl.u32 %v5198_v43, 16  ;;  %v2886_v63 = vshrl.u32 %v4350_v27, 16  ;;  %v2889_v41 = vshll.u32 %v4350_v27, 16  ;;  %v4351_v53 = vld [vmem:[%s4582_s15 + $0x28] sm:$0xff]  }
 0x134   : > { %968 = vst.msk [vmem:[%s5028_s7 + $0x20] sm:$0xf] %vm959_vm7, %v3739_v62  ;;  %v1022_v11 = vsel %vm970_vm8, %v1005_v46, 0.0  ;;  %v918_v29 = vmul.f32 %v908_v7, %v5203_v12  ;;  %v5216_v8 = vpop.f32.mrf.mxu1  ;;  %4200 = vmatmul.mubr.msk.bf16.vlgmr.msra.gmra.mxu1 %vm408_vm1, %v3026_v61  ;;  %4177 = vmatprep.mubr.msk.bf16.mxu0 %vm4472_vm0, %v4471_v1  ;;  %v3029_v6 = vrot.slane %v4350_v27, 3  ;;  %v2895_v46 = vshrl.u32 %v4351_v53, 16 }
 0x135   : > { %v1023_v14 = vadd.f32 %v1022_v11, %v1021_v57  ;;  %v3959_v15 = vpop.f32.mrf.mxu0  ;;  %4203 = vmatprep.mubr.msk.bf16.mxu1 %vm4472_vm0, %v4471_v1  ;;  %v2879_v49 = vrot.slane %v2877_v55, 2  ;;  %v2888_v0 = vrot.slane %v2886_v63, 2  ;;  %v2891_v50 = vrot.slane %v2889_v41, 3 }
 0x136   : > { %v3740_v17 = vpack.c.bf16 %v918_v29, %v918_v29  ;;  %v988_v18 = vsel %vm970_vm8, %v918_v29, 0.0  ;;  %v1006_v10 = vmul.f32 %v918_v29, %v918_v29  ;;  %v3985_v22 = vpop.f32.mrf.mxu1  ;;  %v3030_v57 = vsel %vm3023_vm9, %v3027_v5, %v3029_v6 }
 0x137   : > { %v5227_v24 = vadd.f32 %v988_v18, %v987_v3  ;;  %v5229_v51 = vpop.f32.mrf.mxu0  ;;  %v2883_v36 = vor.u32 %v2882_v59, %v2879_v49  ;;  %v2892_v47 = vor.u32 %v2891_v50, %v2888_v0  ;;  %v2898_v7 = vshll.u32 %v4351_v53, 16 }
 0x138   : > { %969 = vst.msk [vmem:[%s5028_s7 + $0x24] sm:$0xf] %vm959_vm7, %v3740_v17  ;;  %v1024_v26 = vsel %vm970_vm8, %v1006_v10, 0.0  ;;  %v5234_v25 = vpop.f32.mrf.mxu1  ;;  %v3031_v3 = vrot.slane %v4351_v53, 3  ;;  %v2897_v55 = vrot.slane %v2895_v46, 2  ;;  %v1287_v46 = vadd.f32 %v5172_v32, %v5209_v38 }
 0x139   : > { %v5238_v2 = vadd.f32 %v1024_v26, %v1023_v14  ;;  %v3960_v23 = vpop.f32.mrf.mxu0  ;;  %v2884_v48 = vsel %vm2235_vm6, %v2874_v56, %v2883_v36  ;;  %v2893_v29 = vsel %vm2235_vm6, %v2883_v36, %v2892_v47  ;;  %v2900_v9 = vrot.slane %v2898_v7, 3  ;;  %v4352_v14 = vld [vmem:[%s4582_s15 + $0x30] ss:$0 sps:$4 sm:$0x77]  }
 0x13a   : > { %v3986_v39 = vpop.f32.mrf.mxu1  ;;  %v3032_v5 = vsel %vm3023_vm9, %v3029_v6, %v3031_v3  ;;  %v2904_v26 = vshrl.u32 %v4352_v14, 16  ;;  %v3033_v59 = vrot.slane %v4352_v14, 3 }
 0x13b   : > { %v5243_v60 = vpop.f32.mrf.mxu0  ;;  %4178 = vmatmul.mubr.msk.bf16.vlgmr.msra.gmra.mxu0 %vm408_vm1, %v2875_v28  ;;  %v2901_v22 = vor.u32 %v2900_v9, %v2897_v55  ;;  %v2907_v28 = vshll.u32 %v4352_v14, 16 }
 0x13c   : > { %v5246_v40 = vpop.f32.mrf.mxu1  ;;  %4204 = vmatmul.mubr.msk.bf16.gmra.mxu1 %vm408_vm1, %v3028_v34  ;;  %4181 = vmatprep.mubr.msk.bf16.mxu0 %vm4472_vm0, %v4471_v1  ;;  %v2906_v36 = vrot.slane %v2904_v26, 2  ;;  %v1295_v32 = vadd.f32 %v5216_v8, %v5243_v60 }
 0x13d   : > { %v3963_v31 = vpop.f32.mrf.mxu0  ;;  %4207 = vmatprep.mubr.msk.bf16.mxu1 %vm4472_vm0, %v4471_v1  ;;  %v2902_v39 = vsel %vm2235_vm6, %v2892_v47, %v2901_v22  ;;  %v2909_v63 = vrot.slane %v2907_v28, 3 }
 0x13e   : > { %v3989_v16 = vpop.f32.mrf.mxu1  ;;  %v3034_v31 = vsel %vm3023_vm9, %v3031_v3, %v3033_v59 }
 0x13f   : > { %v5253_v44 = vpop.f32.mrf.mxu0  ;;  %v2910_v0 = vor.u32 %v2909_v63, %v2906_v36 }
 0x140   : > { %v5255_v45 = vpop.f32.mrf.mxu1 }
 0x141   : > { %v3964_v43 = vpop.f32.mrf.mxu0 }
 0x142   : > { %v3990_v35 = vpop.f32.mrf.mxu1 }
 0x143   : > { %v5260_v61 = vpop.f32.mrf.mxu0  ;;  %4182 = vmatmul.mubr.msk.bf16.gmra.mxu0 %vm408_vm1, %v2884_v48  ;;  %v2911_v35 = vsel %vm2235_vm6, %v2901_v22, %v2910_v0 }
 0x144   : > { %v5263_v62 = vpop.f32.mrf.mxu1  ;;  %4208 = vmatmul.mubr.msk.bf16.gmra.mxu1 %vm408_vm1, %v3030_v57  ;;  %4185 = vmatprep.mubr.msk.bf16.mxu0 %vm4472_vm0, %v4471_v1 }
 0x145   : > { %v3967_v19 = vpop.f32.mrf.mxu0  ;;  %4211 = vmatprep.mubr.msk.bf16.mxu1 %vm4472_vm0, %v4471_v1 }
 0x146   : > { %v3993_v54 = vpop.f32.mrf.mxu1 }
 0x147   : > { %v5270_v56 = vpop.f32.mrf.mxu0 }
 0x148   : > { %v5272_v11 = vpop.f32.mrf.mxu1 }
 0x149   : > { %v3968_v15 = vpop.f32.mrf.mxu0 }
 0x14a   : > { %v3994_v17 = vpop.f32.mrf.mxu1 }
 0x14b   : > { %v5277_v18 = vpop.f32.mrf.mxu0  ;;  %4186 = vmatmul.mubr.msk.bf16.gmra.mxu0 %vm408_vm1, %v2893_v29  ;;  %v1290_v29 = vadd.f32 %v5192_v52, %v5229_v51 }
 0x14c   : > { %v5280_v10 = vpop.f32.mrf.mxu1  ;;  %4212 = vmatmul.mubr.msk.bf16.gmra.mxu1 %vm408_vm1, %v3032_v5  ;;  %4189 = vmatprep.mubr.msk.bf16.mxu0 %vm4472_vm0, %v4471_v1 }
 0x14d   : > { %v3971_v49 = vpop.f32.mrf.mxu0  ;;  %4215 = vmatprep.mubr.msk.bf16.mxu1 %vm4472_vm0, %v4471_v1 }
 0x14e   : > { %v3997_v27 = vpop.f32.mrf.mxu1 }
 0x14f   : > { %v5287_v23 = vpop.f32.mrf.mxu0 }
 0x150   : > { %v5289_v34 = vpop.f32.mrf.mxu1 }
 0x151   : > { %v3972_v41 = vpop.f32.mrf.mxu0 }
 0x152   : > { %v3998_v6 = vpop.f32.mrf.mxu1 }
 0x153   : > { %v5293_v16 = vpop.f32.mrf.mxu0  ;;  %4190 = vmatmul.mubr.msk.bf16.gmra.mxu0 %vm408_vm1, %v2902_v39 }
 0x154   : > { %v1598_v48 = vpop.f32.mrf.mxu1  ;;  %4216 = vmatmul.mubr.msk.bf16.gmra.mxu1 %vm408_vm1, %v3034_v31  ;;  %4193 = vmatprep.mubr.msk.bf16.mxu0 %vm4472_vm0, %v4471_v1 }
 0x155   : > { %v3975_v50 = vpop.f32.mrf.mxu0 }
 0x156   : > { %v4025_v53 = vpop.f32.mrf.mxu1 }
 0x157   : > { %v5299_v43 = vpop.f32.mrf.mxu0  ;;  %v1303_v53 = vadd.f32 %v5246_v40, %v5260_v61  ;;  %v1306_v40 = vadd.f32 %v5255_v45, %v5270_v56  ;;  %v1311_v45 = vadd.f32 %v5263_v62, %v5277_v18  ;;  %v1314_v62 = vadd.f32 %v5272_v11, %v5287_v23 }
 0x158   : > { %v1601_v57 = vpop.f32.mrf.mxu1  ;;  %v1319_v11 = vadd.f32 %v5280_v10, %v5293_v16  ;;  %v1322_v10 = vadd.f32 %v5289_v34, %v5299_v43 }
 0x159   : > { %v3976_v47 = vpop.f32.mrf.mxu0 }
 0x15a   : > { %v4026_v7 = vpop.f32.mrf.mxu1 }
 0x15b   : > { %v1475_v19 = vpop.f32.mrf.mxu0  ;;  %4194 = vmatmul.mubr.msk.bf16.gmra.mxu0 %vm408_vm1, %v2911_v35 }
 0x15c   : > { %v1514_v3 = vadd.f32 %v1475_v19, %v1287_v46  ;;  %v1606_v54 = vpop.f32.mrf.mxu1 }
 0x15d   : > { %v4003_v1 = vpop.f32.mrf.mxu0 }
 0x15e   : > { %v1637_v55 = vadd.f32 %v1598_v48, %v1514_v3  ;;  %v4029_v9 = vpop.f32.mrf.mxu1 }
 0x15f   : > { %v1478_v14 = vpop.f32.mrf.mxu0 }
 0x160   : > { %v1647_v15 = vmul.f32 %v1637_v55, %v5014_v13  ;;  %v1515_v5 = vadd.f32 %v1478_v14, %v1290_v29  ;;  %v1609_v17 = vpop.f32.mrf.mxu1  ;;  %v1298_v13 = vadd.f32 %v5234_v25, %v5253_v44 }
 0x161   : > { %v4004_v22 = vpop.f32.mrf.mxu0 }
 0x162   : > { %v3741_v38 = vpack.c.bf16 %v1647_v15, %v1647_v15  ;;  %v1638_v26 = vadd.f32 %v1601_v57, %v1515_v5  ;;  %v4030_v28 = vpop.f32.mrf.mxu1  ;;  %v1734_v59 = vmul.f32 %v1647_v15, %v1647_v15  ;;  %v1708_v39 = vsel %vm970_vm8, %v1647_v15, 0.0 }
 0x163   : > { %v1483_v49 = vpop.f32.mrf.mxu0 }
 0x164   : > { %3585 = vst.msk [vmem:[%s5028_s7 + $0x28] sm:$0xf] %vm959_vm7, %v3741_v38  ;;  %v1648_v52 = vmul.f32 %v1638_v26, %v5033_v20  ;;  %v1516_v51 = vadd.f32 %v1483_v49, %v1295_v32  ;;  %v1614_v27 = vpop.f32.mrf.mxu1  ;;  %v1744_v0 = vsel %vm970_vm8, %v1734_v59, 0.0 }
 0x165   : > { %v4007_v36 = vpop.f32.mrf.mxu0 }
 0x166   : > { %v3742_v63 = vpack.c.bf16 %v1648_v52, %v1648_v52  ;;  %v1709_v8 = vsel %vm970_vm8, %v1648_v52, 0.0  ;;  %v1735_v60 = vmul.f32 %v1648_v52, %v1648_v52  ;;  %v1639_v41 = vadd.f32 %v1606_v54, %v1516_v51  ;;  %v4033_v31 = vpop.f32.mrf.mxu1 }
 0x167   : > { %v1710_v6 = vadd.f32 %v1709_v8, %v1708_v39  ;;  %v1486_v48 = vpop.f32.mrf.mxu0 }
 0x168   : > { %3586 = vst.msk [vmem:[%s5028_s7 + $0x2c] sm:$0xf] %vm959_vm7, %v3742_v63  ;;  %v1745_v20 = vsel %vm970_vm8, %v1735_v60, 0.0  ;;  %v1649_v25 = vmul.f32 %v1639_v41, %v5055_v4  ;;  %v1517_v44 = vadd.f32 %v1486_v48, %v1298_v13  ;;  %v1617_v50 = vpop.f32.mrf.mxu1 }
 0x169   : > { %v1746_v57 = vadd.f32 %v1745_v20, %v1744_v0  ;;  %v4008_v35 = vpop.f32.mrf.mxu0 }
 0x16a   : > { %v3743_v47 = vpack.c.bf16 %v1649_v25, %v1649_v25  ;;  %v1711_v46 = vsel %vm970_vm8, %v1649_v25, 0.0  ;;  %v1736_v7 = vmul.f32 %v1649_v25, %v1649_v25  ;;  %v1640_v19 = vadd.f32 %v1609_v17, %v1517_v44  ;;  %v4034_v3 = vpop.f32.mrf.mxu1 }
 0x16b   : > { %v1712_v54 = vadd.f32 %v1711_v46, %v1710_v6  ;;  %v1491_v1 = vpop.f32.mrf.mxu0 }
 0x16c   : > { %3587 = vst.msk [vmem:[%s5028_s7 + $0x30] sm:$0xf] %vm959_vm7, %v3743_v47  ;;  %v1747_v4 = vsel %vm970_vm8, %v1736_v7, 0.0  ;;  %v1650_v29 = vmul.f32 %v1640_v19, %v5082_v30  ;;  %v1518_v55 = vadd.f32 %v1491_v1, %v1303_v53  ;;  %v1622_v9 = vpop.f32.mrf.mxu1 }
 0x16d   : > { %v1748_v61 = vadd.f32 %v1747_v4, %v1746_v57  ;;  %v4011_v14 = vpop.f32.mrf.mxu0 }
 0x16e   : > { %v3744_v15 = vpack.c.bf16 %v1650_v29, %v1650_v29  ;;  %v1713_v5 = vsel %vm970_vm8, %v1650_v29, 0.0  ;;  %v1737_v17 = vmul.f32 %v1650_v29, %v1650_v29  ;;  %v1641_v22 = vadd.f32 %v1614_v27, %v1518_v55  ;;  %v4037_v32 = vpop.f32.mrf.mxu1 }
 0x16f   : > { %v1714_v38 = vadd.f32 %v1713_v5, %v1712_v54  ;;  %v1494_v26 = vpop.f32.mrf.mxu0 }
 0x170   : > { %3588 = vst.msk [vmem:[%s5028_s7 + $0x34] sm:$0xf] %vm959_vm7, %v3744_v15  ;;  %v1749_v30 = vsel %vm970_vm8, %v1737_v17, 0.0  ;;  %v1651_v28 = vmul.f32 %v1641_v22, %v5101_v58  ;;  %v1519_v49 = vadd.f32 %v1494_v26, %v1306_v40  ;;  %v1625_v59 = vpop.f32.mrf.mxu1  ;;  %v990_v26 = vrot.slane %v5227_v24, 4 }
 0x171   : > { %v1750_v56 = vadd.f32 %v1749_v30, %v1748_v61  ;;  %v4012_v52 = vpop.f32.mrf.mxu0 }
 0x172   : > { %v3745_v51 = vpack.c.bf16 %v1651_v28, %v1651_v28  ;;  %v1715_v27 = vsel %vm970_vm8, %v1651_v28, 0.0  ;;  %v1738_v13 = vmul.f32 %v1651_v28, %v1651_v28  ;;  %v1642_v39 = vadd.f32 %v1617_v50, %v1519_v49  ;;  %v4038_v36 = vpop.f32.mrf.mxu1 }
 0x173   : > { %v1716_v63 = vadd.f32 %v1715_v27, %v1714_v38  ;;  %v1499_v8 = vpop.f32.mrf.mxu0 }
 0x174   : > { %3589 = vst.msk [vmem:[%s5028_s7 + $0x38] sm:$0xf] %vm959_vm7, %v3745_v51  ;;  %v1751_v58 = vsel %vm970_vm8, %v1738_v13, 0.0  ;;  %v1652_v60 = vmul.f32 %v1642_v39, %v5118_v21  ;;  %v1520_v41 = vadd.f32 %v1499_v8, %v1311_v45  ;;  %v1630_v31 = vpop.f32.mrf.mxu1  ;;  %v1026_v45 = vrot.slane %v5238_v2, 4 }
 0x175   : > { %v1752_v18 = vadd.f32 %v1751_v58, %v1750_v56  ;;  %v4015_v6 = vpop.f32.mrf.mxu0 }
 0x176   : > { %v3746_v48 = vpack.c.bf16 %v1652_v60, %v1652_v60  ;;  %v1717_v0 = vsel %vm970_vm8, %v1652_v60, 0.0  ;;  %v1739_v20 = vmul.f32 %v1652_v60, %v1652_v60  ;;  %v1643_v25 = vadd.f32 %v1622_v9, %v1520_v41  ;;  %v4041_v44 = vpop.f32.mrf.mxu1 }
 0x177   : > { %v1718_v50 = vadd.f32 %v1717_v0, %v1716_v63  ;;  %v1502_v53 = vpop.f32.mrf.mxu0  ;;  %v991_v63 = vadd.f32 %v990_v26, %v5227_v24 }
 0x178   : > { %3590 = vst.msk [vmem:[%s5028_s7 + $0x3c] sm:$0xf] %vm959_vm7, %v3746_v48  ;;  %v1753_v57 = vsel %vm970_vm8, %v1739_v20, 0.0  ;;  %v1653_v35 = vmul.f32 %v1643_v25, %v5140_v37  ;;  %v1521_v47 = vadd.f32 %v1502_v53, %v1314_v62  ;;  %v1633_v46 = vpop.f32.mrf.mxu1  ;;  %v1027_v62 = vadd.f32 %v1026_v45, %v5238_v2 }
 0x179   : > { %v1754_v23 = vadd.f32 %v1753_v57, %v1752_v18  ;;  %v4016_v7 = vpop.f32.mrf.mxu0  ;;  %v992_v25 = vrot.slane %v991_v63, 2 }
 0x17a   : > { %v3747_v19 = vpack.c.bf16 %v1653_v35, %v1653_v35  ;;  %v1719_v3 = vsel %vm970_vm8, %v1653_v35, 0.0  ;;  %v1740_v54 = vmul.f32 %v1653_v35, %v1653_v35  ;;  %v1644_v1 = vadd.f32 %v1625_v59, %v1521_v47  ;;  %v4042_v4 = vpop.f32.mrf.mxu1 }
 0x17b   : > { %v1720_v29 = vadd.f32 %v1719_v3, %v1718_v50  ;;  %v1507_v55 = vpop.f32.mrf.mxu0  ;;  %v1028_v35 = vrot.slane %v1027_v62, 2 }
 0x17c   : > { %3591 = vst.msk [vmem:[%s5028_s7 + $0x40] sm:$0xf] %vm959_vm7, %v3747_v19  ;;  %v1755_v9 = vsel %vm970_vm8, %v1740_v54, 0.0  ;;  %v1654_v40 = vmul.f32 %v1644_v1, %v5162_v42  ;;  %v1522_v61 = vadd.f32 %v1507_v55, %v1319_v11  ;;  %v5357_v14 = vpop.f32.mrf.mxu1 }
 0x17d   : > { %v1756_v16 = vadd.f32 %v1755_v9, %v1754_v23  ;;  %v4019_v15 = vpop.f32.mrf.mxu0  ;;  %v993_v23 = vadd.f32 %v992_v25, %v991_v63  ;;  %v1029_v55 = vadd.f32 %v1028_v35, %v1027_v62 }
 0x17e   : > { %v3748_v5 = vpack.c.bf16 %v1654_v40, %v1654_v40  ;;  %v1721_v17 = vsel %vm970_vm8, %v1654_v40, 0.0  ;;  %v1741_v22 = vmul.f32 %v1654_v40, %v1654_v40  ;;  %v1645_v32 = vadd.f32 %v1630_v31, %v1522_v61  ;;  %v4069_v38 = vpop.f32.mrf.mxu1 }
 0x17f   : > { %v1722_v30 = vadd.f32 %v1721_v17, %v1720_v29  ;;  %v1510_v28 = vpop.f32.mrf.mxu0 }
 0x180   : > { %3592 = vst.msk [vmem:[%s5028_s7 + $0x44] sm:$0xf] %vm959_vm7, %v3748_v5  ;;  %v1757_v49 = vsel %vm970_vm8, %v1741_v22, 0.0  ;;  %v1655_v59 = vmul.f32 %v1645_v32, %v5183_v33  ;;  %v1523_v34 = vadd.f32 %v1510_v28, %v1322_v10  ;;  %v5367_v43 = vpop.f32.mrf.mxu1  ;;  %v1030_v22 = vrot.slane %v1029_v55, 1 }
 0x181   : > { %v1758_v56 = vadd.f32 %v1757_v49, %v1756_v16  ;;  %v4020_v52 = vpop.f32.mrf.mxu0  ;;  %v994_v16 = vrot.slane %v993_v23, 1 }
 0x182   : > { %v3749_v51 = vpack.c.bf16 %v1655_v59, %v1655_v59  ;;  %v1723_v27 = vsel %vm970_vm8, %v1655_v59, 0.0  ;;  %v1742_v13 = vmul.f32 %v1655_v59, %v1655_v59  ;;  %v1646_v39 = vadd.f32 %v1633_v46, %v1523_v34  ;;  %v4070_v36 = vpop.f32.mrf.mxu1 }
 0x183   : > { %v1724_v8 = vadd.f32 %v1723_v27, %v1722_v30  ;;  %v5372_v58 = vpop.f32.mrf.mxu0  ;;  %v995_v30 = vadd.f32 %v994_v16, %v993_v23 }
 0x184   : > { %3593 = vst.msk [vmem:[%s5028_s7 + $0x48] sm:$0xf] %vm959_vm7, %v3749_v51  ;;  %v1759_v60 = vsel %vm970_vm8, %v1742_v13, 0.0  ;;  %v1656_v41 = vmul.f32 %v1646_v39, %v5203_v12  ;;  %v5378_v31 = vpop.f32.mrf.mxu1 }
 0x185   : > { %v1760_v18 = vadd.f32 %v1759_v60, %v1758_v56  ;;  %v4047_v6 = vpop.f32.mrf.mxu0  ;;  %v1031_v56 = vadd.f32 %v1030_v22, %v1029_v55 }
 0x186   : > { %v3750_v48 = vpack.c.bf16 %v1656_v41, %v1656_v41  ;;  %v1725_v0 = vsel %vm970_vm8, %v1656_v41, 0.0  ;;  %v1743_v24 = vmul.f32 %v1656_v41, %v1656_v41  ;;  %v4073_v20 = vpop.f32.mrf.mxu1 }
 0x187   : > { %v1726_v44 = vadd.f32 %v1725_v0, %v1724_v8  ;;  %v5382_v50 = vpop.f32.mrf.mxu0 }
 0x188   : > { %3594 = vst.msk [vmem:[%s5028_s7 + $0x4c] sm:$0xf] %vm959_vm7, %v3750_v48  ;;  %v1761_v53 = vsel %vm970_vm8, %v1743_v24, 0.0  ;;  %v5387_v57 = vpop.f32.mrf.mxu1 }
 0x189   : > { %v1727_v47 = vrot.slane %v1726_v44, 4  ;;  %v1762_v2 = vadd.f32 %v1761_v53, %v1760_v18  ;;  %v4048_v46 = vpop.f32.mrf.mxu0 }
 0x18a   : > { %v4074_v11 = vpop.f32.mrf.mxu1 }
 0x18b   : > { %v1728_v7 = vadd.f32 %v1727_v47, %v1726_v44  ;;  %v1763_v19 = vrot.slane %v1762_v2, 4  ;;  %v1932_v3 = vpop.f32.mrf.mxu0 }
 0x18c   : > { %v5389_v54 = vpop.f32.mrf.mxu1  ;;  %v2041_v16 = vadd.f32 %v5378_v31, %v1932_v3 }
 0x18d   : > { %v1729_v1 = vrot.slane %v1728_v7, 2  ;;  %v1764_v4 = vadd.f32 %v1763_v19, %v1762_v2  ;;  %v4051_v29 = vpop.f32.mrf.mxu0  ;;  %v2033_v2 = vadd.f32 %v5357_v14, %v5372_v58 }
 0x18e   : > { %v4077_v9 = vpop.f32.mrf.mxu1 }
 0x18f   : > { %v1730_v40 = vadd.f32 %v1729_v1, %v1728_v7  ;;  %v1765_v61 = vrot.slane %v1764_v4, 2  ;;  %v5391_v10 = vpop.f32.mrf.mxu0  ;;  %v2036_v1 = vadd.f32 %v5367_v43, %v5382_v50  ;;  %v5426_v9 = vld [vmem:[%s5721_s2] sm:$0xff]  ;;  %v5435_v50 = vld [vmem:[%s5721_s2 + $0x8] sm:$0xff] }
 0x190   : > { %v5393_v15 = vpop.f32.mrf.mxu1  ;;  %v2044_v31 = vadd.f32 %v5387_v57, %v5391_v10  ;;  %v5449_v57 = vld [vmem:[%s5721_s2 + $0x10] sm:$0xff] }
 0x191   : > { %v4052_v5 = vpop.f32.mrf.mxu0  ;;  %v1731_v17 = vrot.slane %v1730_v40, 1  ;;  %v1766_v32 = vadd.f32 %v1765_v61, %v1764_v4 }
 0x192   : > { %v4078_v38 = vpop.f32.mrf.mxu1 }
 0x193   : > { %v5395_v26 = vpop.f32.mrf.mxu0  ;;  %v1732_v28 = vadd.f32 %v1731_v17, %v1730_v40  ;;  %v1767_v49 = vrot.slane %v1766_v32, 1 }
 0x194   : > { %v5397_v59 = vpop.f32.mrf.mxu1 }
 0x195   : > { %v4055_v34 = vpop.f32.mrf.mxu0  ;;  %v5399_v45 = vadd.f32 %v1732_v28, %v995_v30  ;;  %v1768_v52 = vadd.f32 %v1767_v49, %v1766_v32 }
 0x196   : > { %v4081_v51 = vpop.f32.mrf.mxu1 }
 0x197   : > { %v5401_v27 = vpop.f32.mrf.mxu0  ;;  %v5403_v13 = vadd.f32 %v1768_v52, %v1031_v56 }
 0x198   : > { %v5405_v39 = vpop.f32.mrf.mxu1 }
 0x199   : > { %v4056_v36 = vpop.f32.mrf.mxu0 }
 0x19a   : > { %v4082_v63 = vpop.f32.mrf.mxu1 }
 0x19b   : > { %v5407_v8 = vpop.f32.mrf.mxu0 }
 0x19c   : > { %v5409_v60 = vpop.f32.mrf.mxu1 }
 0x19d   : > { %v4059_v41 = vpop.f32.mrf.mxu0 }
 0x19e   : > { %v4085_v62 = vpop.f32.mrf.mxu1 }
 0x19f   : > { %v5411_v18 = vpop.f32.mrf.mxu0 }
 0x1a0   : > { %v5413_v6 = vpop.f32.mrf.mxu1 }
 0x1a1   : > { %v4060_v48 = vpop.f32.mrf.mxu0 }
 0x1a2   : > { %v4086_v0 = vpop.f32.mrf.mxu1 }
 0x1a3   : > { %v5415_v24 = vpop.f32.mrf.mxu0 }
 0x1a4   : > { %v2344_v20 = vpop.f32.mrf.mxu1 }
 0x1a5   : > { %v4063_v25 = vpop.f32.mrf.mxu0 }
 0x1a6   : > { %v4113_v44 = vpop.f32.mrf.mxu1  ;;  %v2049_v25 = vadd.f32 %v5389_v54, %v5395_v26 }
 0x1a7   : > { %v5417_v53 = vpop.f32.mrf.mxu0 }
 0x1a8   : > { %v2347_v35 = vpop.f32.mrf.mxu1 }
 0x1a9   : > { %v4064_v47 = vpop.f32.mrf.mxu0 }
 0x1aa   : > { %v4114_v46 = vpop.f32.mrf.mxu1 }
 0x1ab   : > { %v2179_v11 = vpop.f32.mrf.mxu0 }
 0x1ac   : > { %v2218_v23 = vadd.f32 %v2179_v11, %v2033_v2  ;;  %v2352_v7 = vpop.f32.mrf.mxu1 }
 0x1ad   : > { %v4091_v19 = vpop.f32.mrf.mxu0 }
 0x1ae   : > { %v2383_v4 = vadd.f32 %v2344_v20, %v2218_v23  ;;  %v4117_v29 = vpop.f32.mrf.mxu1 }
 0x1af   : > { %v2182_v55 = vpop.f32.mrf.mxu0 }
 0x1b0   : > { %v2393_v40 = vmul.f32 %v5426_v9, %v2383_v4  ;;  %v2219_v14 = vadd.f32 %v2182_v55, %v2036_v1  ;;  %v2355_v58 = vpop.f32.mrf.mxu1  ;;  %v5461_v4 = vld [vmem:[%s5721_s2 + $0x18] sm:$0xff]  ;;  %v2052_v55 = vadd.f32 %v5393_v15, %v5401_v27 }
 0x1b1   : > { %v4092_v61 = vpop.f32.mrf.mxu0 }
 0x1b2   : > { %v3751_v5 = vpack.c.bf16 %v2393_v40, %v2393_v40  ;;  %v2384_v17 = vadd.f32 %v2347_v35, %v2219_v14  ;;  %v4118_v22 = vpop.f32.mrf.mxu1  ;;  %v2480_v43 = vmul.f32 %v2393_v40, %v2393_v40  ;;  %v2454_v3 = vsel %vm970_vm8, %v2393_v40, 0.0 }
 0x1b3   : > { %v2187_v32 = vpop.f32.mrf.mxu0 }
 0x1b4   : > { %3651 = vst.msk [vmem:[%s5028_s7 + $0x50] sm:$0xf] %vm959_vm7, %v3751_v5  ;;  %v2394_v38 = vmul.f32 %v5435_v50, %v2384_v17  ;;  %v2220_v30 = vadd.f32 %v2187_v32, %v2041_v16  ;;  %v2360_v28 = vpop.f32.mrf.mxu1  ;;  %v2490_v62 = vsel %vm970_vm8, %v2480_v43, 0.0 }
 0x1b5   : > { %v4095_v49 = vpop.f32.mrf.mxu0 }
 0x1b6   : > { %v3752_v34 = vpack.c.bf16 %v2394_v38, %v2394_v38  ;;  %v2455_v56 = vsel %vm970_vm8, %v2394_v38, 0.0  ;;  %v2481_v52 = vmul.f32 %v2394_v38, %v2394_v38  ;;  %v2385_v51 = vadd.f32 %v2352_v7, %v2220_v30  ;;  %v4121_v36 = vpop.f32.mrf.mxu1  ;;  %v5473_v38 = vld [vmem:[%s5721_s2 + $0x20] sm:$0xff] }
 0x1b7   : > { %v2456_v63 = vadd.f32 %v2455_v56, %v2454_v3  ;;  %v2190_v41 = vpop.f32.mrf.mxu0 }
 0x1b8   : > { %3652 = vst.msk [vmem:[%s5028_s7 + $0x54] sm:$0xf] %vm959_vm7, %v3752_v34  ;;  %v2491_v48 = vsel %vm970_vm8, %v2481_v52, 0.0  ;;  %v2395_v10 = vmul.f32 %v5449_v57, %v2385_v51  ;;  %v2221_v0 = vadd.f32 %v2190_v41, %v2044_v31  ;;  %v2363_v20 = vpop.f32.mrf.mxu1 }
 0x1b9   : > { %v2492_v44 = vadd.f32 %v2491_v48, %v2490_v62  ;;  %v4096_v35 = vpop.f32.mrf.mxu0 }
 0x1ba   : > { %v3753_v47 = vpack.c.bf16 %v2395_v10, %v2395_v10  ;;  %v2457_v2 = vsel %vm970_vm8, %v2395_v10, 0.0  ;;  %v2482_v46 = vmul.f32 %v2395_v10, %v2395_v10  ;;  %v2386_v11 = vadd.f32 %v2355_v58, %v2221_v0  ;;  %v4122_v23 = vpop.f32.mrf.mxu1 }
 0x1bb   : > { %v2458_v7 = vadd.f32 %v2457_v2, %v2456_v63  ;;  %v2195_v19 = vpop.f32.mrf.mxu0 }
 0x1bc   : > { %3653 = vst.msk [vmem:[%s5028_s7 + $0x58] sm:$0xf] %vm959_vm7, %v3753_v47  ;;  %v2493_v1 = vsel %vm970_vm8, %v2482_v46, 0.0  ;;  %v2396_v54 = vmul.f32 %v5461_v4, %v2386_v11  ;;  %v2222_v26 = vadd.f32 %v2195_v19, %v2049_v25  ;;  %v2368_v29 = vpop.f32.mrf.mxu1 }
 0x1bd   : > { %v2494_v40 = vadd.f32 %v2493_v1, %v2492_v44  ;;  %v4099_v14 = vpop.f32.mrf.mxu0 }
 0x1be   : > { %v3754_v58 = vpack.c.bf16 %v2396_v54, %v2396_v54  ;;  %v2459_v61 = vsel %vm970_vm8, %v2396_v54, 0.0  ;;  %v2483_v16 = vmul.f32 %v2396_v54, %v2396_v54  ;;  %v2387_v5 = vadd.f32 %v2360_v28, %v2222_v26  ;;  %v4125_v17 = vpop.f32.mrf.mxu1 }
 0x1bf   : > { %v2460_v22 = vadd.f32 %v2459_v61, %v2458_v7  ;;  %v2198_v32 = vpop.f32.mrf.mxu0  ;;  %v2057_v28 = vadd.f32 %v5397_v59, %v5407_v8  ;;  %v2060_v59 = vadd.f32 %v5405_v39, %v5411_v18  ;;  %v2065_v39 = vadd.f32 %v5409_v60, %v5415_v24 }
 0x1c0   : > { %3654 = vst.msk [vmem:[%s5028_s7 + $0x5c] sm:$0xf] %vm959_vm7, %v3754_v58  ;;  %v2495_v43 = vsel %vm970_vm8, %v2483_v16, 0.0  ;;  %v2397_v15 = vmul.f32 %v5473_v38, %v2387_v5  ;;  %v2223_v27 = vadd.f32 %v2198_v32, %v2052_v55  ;;  %v2371_v30 = vpop.f32.mrf.mxu1  ;;  %v2068_v60 = vadd.f32 %v5413_v6, %v5417_v53 }
 0x1c1   : > { %v2496_v31 = vadd.f32 %v2495_v43, %v2494_v40  ;;  %v4100_v3 = vpop.f32.mrf.mxu0 }
 0x1c2   : > { %v3755_v49 = vpack.c.bf16 %v2397_v15, %v2397_v15  ;;  %v2461_v34 = vsel %vm970_vm8, %v2397_v15, 0.0  ;;  %v2484_v56 = vmul.f32 %v2397_v15, %v2397_v15  ;;  %v2388_v52 = vadd.f32 %v2363_v20, %v2223_v27  ;;  %v4126_v51 = vpop.f32.mrf.mxu1 }
 0x1c3   : > { %v2462_v36 = vadd.f32 %v2461_v34, %v2460_v22  ;;  %v2203_v63 = vpop.f32.mrf.mxu0 }
 0x1c4   : > { %3655 = vst.msk [vmem:[%s5028_s7 + $0x60] sm:$0xf] %vm959_vm7, %v3755_v49  ;;  %v2497_v41 = vsel %vm970_vm8, %v2484_v56, 0.0  ;;  %v2398_v62 = vmul.f32 %v2388_v52, %v5118_v21  ;;  %v2224_v48 = vadd.f32 %v2203_v63, %v2057_v28  ;;  %v2376_v10 = vpop.f32.mrf.mxu1 }
 0x1c5   : > { %v2498_v8 = vadd.f32 %v2497_v41, %v2496_v31  ;;  %v4103_v0 = vpop.f32.mrf.mxu0 }
 0x1c6   : > { %v3756_v25 = vpack.c.bf16 %v2398_v62, %v2398_v62  ;;  %v2463_v20 = vsel %vm970_vm8, %v2398_v62, 0.0  ;;  %v2485_v44 = vmul.f32 %v2398_v62, %v2398_v62  ;;  %v2389_v35 = vadd.f32 %v2368_v29, %v2224_v48  ;;  %v4129_v47 = vpop.f32.mrf.mxu1 }
 0x1c7   : > { %v2464_v2 = vadd.f32 %v2463_v20, %v2462_v36  ;;  %v2206_v46 = vpop.f32.mrf.mxu0 }
 0x1c8   : > { %3656 = vst.msk [vmem:[%s5028_s7 + $0x64] sm:$0xf] %vm959_vm7, %v3756_v25  ;;  %v2499_v21 = vsel %vm970_vm8, %v2485_v44, 0.0  ;;  %v2399_v11 = vmul.f32 %v2389_v35, %v5140_v37  ;;  %v2225_v23 = vadd.f32 %v2206_v46, %v2060_v59  ;;  %v2379_v7 = vpop.f32.mrf.mxu1 }
 0x1c9   : > { %v2500_v18 = vadd.f32 %v2499_v21, %v2498_v8  ;;  %v4104_v19 = vpop.f32.mrf.mxu0 }
 0x1ca   : > { %v3757_v1 = vpack.c.bf16 %v2399_v11, %v2399_v11  ;;  %v2465_v54 = vsel %vm970_vm8, %v2399_v11, 0.0  ;;  %v2486_v26 = vmul.f32 %v2399_v11, %v2399_v11  ;;  %v2390_v29 = vadd.f32 %v2371_v30, %v2225_v23  ;;  %v4130_v55 = vpop.f32.mrf.mxu1 }
 0x1cb   : > { %v2466_v40 = vadd.f32 %v2465_v54, %v2464_v2  ;;  %v2211_v14 = vpop.f32.mrf.mxu0 }
 0x1cc   : > { %3657 = vst.msk [vmem:[%s5028_s7 + $0x68] sm:$0xf] %vm959_vm7, %v3757_v1  ;;  %v2501_v37 = vsel %vm970_vm8, %v2486_v26, 0.0  ;;  %v2400_v58 = vmul.f32 %v2390_v29, %v5162_v42  ;;  %v2226_v61 = vadd.f32 %v2211_v14, %v2065_v39  ;;  %v5497_v16 = vpop.f32.mrf.mxu1 }
 0x1cd   : > { %v2502_v24 = vadd.f32 %v2501_v37, %v2500_v18  ;;  %v4107_v5 = vpop.f32.mrf.mxu0 }
 0x1ce   : > { %v3758_v17 = vpack.c.bf16 %v2400_v58, %v2400_v58  ;;  %v2467_v22 = vsel %vm970_vm8, %v2400_v58, 0.0  ;;  %v2487_v32 = vmul.f32 %v2400_v58, %v2400_v58  ;;  %v2391_v43 = vadd.f32 %v2376_v10, %v2226_v61  ;;  %v4157_v15 = vpop.f32.mrf.mxu1 }
 0x1cf   : > { %v2468_v27 = vadd.f32 %v2467_v22, %v2466_v40  ;;  %v2214_v30 = vpop.f32.mrf.mxu0 }
 0x1d0   : > { %3658 = vst.msk [vmem:[%s5028_s7 + $0x6c] sm:$0xf] %vm959_vm7, %v3758_v17  ;;  %v2503_v42 = vsel %vm970_vm8, %v2487_v32, 0.0  ;;  %v2401_v28 = vmul.f32 %v2391_v43, %v5183_v33  ;;  %v2227_v31 = vadd.f32 %v2214_v30, %v2068_v60  ;;  %v5506_v3 = vpop.f32.mrf.mxu1 }
 0x1d1   : > { %v2504_v6 = vadd.f32 %v2503_v42, %v2502_v24  ;;  %v4108_v53 = vpop.f32.mrf.mxu0 }
 0x1d2   : > { %v3759_v49 = vpack.c.bf16 %v2401_v28, %v2401_v28  ;;  %v2469_v34 = vsel %vm970_vm8, %v2401_v28, 0.0  ;;  %v2488_v56 = vmul.f32 %v2401_v28, %v2401_v28  ;;  %v2392_v52 = vadd.f32 %v2379_v7, %v2227_v31  ;;  %v4158_v51 = vpop.f32.mrf.mxu1 }
 0x1d3   : > { %v2470_v36 = vadd.f32 %v2469_v34, %v2468_v27  ;;  %v5509_v63 = vpop.f32.mrf.mxu0 }
 0x1d4   : > { %3659 = vst.msk [vmem:[%s5028_s7 + $0x70] sm:$0xf] %vm959_vm7, %v3759_v49  ;;  %v2505_v41 = vsel %vm970_vm8, %v2488_v56, 0.0  ;;  %v2402_v33 = vmul.f32 %v2392_v52, %v5203_v12  ;;  %v5515_v62 = vpop.f32.mrf.mxu1 }
 0x1d5   : > { %v2506_v48 = vadd.f32 %v2505_v41, %v2504_v6  ;;  %v4135_v10 = vpop.f32.mrf.mxu0 }
 0x1d6   : > { %v3760_v59 = vpack.c.bf16 %v2402_v33, %v2402_v33  ;;  %v2471_v8 = vsel %vm970_vm8, %v2402_v33, 0.0  ;;  %v2489_v0 = vmul.f32 %v2402_v33, %v2402_v33  ;;  %v4161_v25 = vpop.f32.mrf.mxu1 }
 0x1d7   : > { %v2472_v20 = vadd.f32 %v2471_v8, %v2470_v36  ;;  %v2631_v44 = vpop.f32.mrf.mxu0  ;;  %v2779_v8 = vadd.f32 %v5497_v16, %v5509_v63 }
 0x1d8   : > { %3660 = vst.msk [vmem:[%s5028_s7 + $0x74] sm:$0xf] %vm959_vm7, %v3760_v59  ;;  %v2507_v35 = vsel %vm970_vm8, %v2489_v0, 0.0  ;;  %v5521_v47 = vpop.f32.mrf.mxu1 }
 0x1d9   : > { %v2473_v2 = vrot.slane %v2472_v20, 4  ;;  %v2508_v46 = vadd.f32 %v2507_v35, %v2506_v48  ;;  %v4136_v12 = vpop.f32.mrf.mxu0 }
 0x1da   : > { %v4162_v21 = vpop.f32.mrf.mxu1 }
 0x1db   : > { %v2474_v11 = vadd.f32 %v2473_v2, %v2472_v20  ;;  %v2509_v23 = vrot.slane %v2508_v46, 4  ;;  %v2636_v7 = vpop.f32.mrf.mxu0 }
 0x1dc   : > { %v5523_v39 = vpop.f32.mrf.mxu1 }
 0x1dd   : > { %v2475_v18 = vrot.slane %v2474_v11, 2  ;;  %v2510_v19 = vadd.f32 %v2509_v23, %v2508_v46  ;;  %v4139_v1 = vpop.f32.mrf.mxu0  ;;  %v2782_v46 = vadd.f32 %v5506_v3, %v2631_v44 }
 0x1de   : > { %v4165_v54 = vpop.f32.mrf.mxu1 }
 0x1df   : > { %v2639_v26 = vpop.f32.mrf.mxu0  ;;  %v2476_v29 = vadd.f32 %v2475_v18, %v2474_v11  ;;  %v2511_v55 = vrot.slane %v2510_v19, 2  ;;  %v2787_v54 = vadd.f32 %v5515_v62, %v2636_v7 }
 0x1e0   : > { %v5525_v40 = vpop.f32.mrf.mxu1 }
 0x1e1   : > { %v4140_v14 = vpop.f32.mrf.mxu0  ;;  %v2477_v37 = vrot.slane %v2476_v29, 1  ;;  %v2512_v58 = vadd.f32 %v2511_v55, %v2510_v19 }
 0x1e2   : > { %v4166_v61 = vpop.f32.mrf.mxu1 }
 0x1e3   : > { %v2644_v60 = vpop.f32.mrf.mxu0  ;;  %v2478_v24 = vadd.f32 %v2477_v37, %v2476_v29  ;;  %v2513_v5 = vrot.slane %v2512_v58, 1 }
 0x1e4   : > { %v5527_v17 = vpop.f32.mrf.mxu1 }
 0x1e5   : > { %v4143_v22 = vpop.f32.mrf.mxu0  ;;  %v5530_v32 = vadd.f32 %v2478_v24, %v5399_v45  ;;  %v2514_v43 = vadd.f32 %v2513_v5, %v2512_v58 }
 0x1e6   : > { %v4169_v15 = vpop.f32.mrf.mxu1 }
 0x1e7   : > { %v5532_v27 = vpop.f32.mrf.mxu0  ;;  %v5535_v30 = vadd.f32 %v2514_v43, %v5403_v13 }
 0x1e8   : > { %v5537_v42 = vpop.f32.mrf.mxu1 }
 0x1e9   : > { %v4144_v28 = vpop.f32.mrf.mxu0 }
 0x1ea   : > { %v4170_v31 = vpop.f32.mrf.mxu1 }
 0x1eb   : > { %v5539_v6 = vpop.f32.mrf.mxu0 }
 0x1ec   : > { %v5541_v53 = vpop.f32.mrf.mxu1 }
 0x1ed   : > { %v4147_v49 = vpop.f32.mrf.mxu0 }
 0x1ee   : > { %v4173_v34 = vpop.f32.mrf.mxu1 }
 0x1ef   : > { %v5543_v56 = vpop.f32.mrf.mxu0 }
 0x1f0   : > { %v5545_v45 = vpop.f32.mrf.mxu1 }
 0x1f1   : > { %v4148_v52 = vpop.f32.mrf.mxu0 }
 0x1f2   : > { %v4174_v51 = vpop.f32.mrf.mxu1 }
 0x1f3   : > { %v5547_v36 = vpop.f32.mrf.mxu0 }
 0x1f4   : > { %v3090_v13 = vpop.f32.mrf.mxu1 }
 0x1f5   : > { %v4151_v41 = vpop.f32.mrf.mxu0 }
 0x1f6   : > { %v4201_v33 = vpop.f32.mrf.mxu1 }
 0x1f7   : > { %v5549_v48 = vpop.f32.mrf.mxu0 }
 0x1f8   : > { %v3093_v10 = vpop.f32.mrf.mxu1 }
 0x1f9   : > { %v4152_v59 = vpop.f32.mrf.mxu0 }
 0x1fa   : > { %v4202_v0 = vpop.f32.mrf.mxu1 }
 0x1fb   : > { %v2967_v25 = vpop.f32.mrf.mxu0 }
 0x1fc   : > { %v3006_v20 = vadd.f32 %v2967_v25, %v2779_v8  ;;  %v3098_v35 = vpop.f32.mrf.mxu1 }
 0x1fd   : > { %v4179_v2 = vpop.f32.mrf.mxu0 }
 0x1fe   : > { %v3129_v12 = vadd.f32 %v3090_v13, %v3006_v20  ;;  %v4205_v21 = vpop.f32.mrf.mxu1 }
 0x1ff   : > { %v2970_v11 = vpop.f32.mrf.mxu0 }
 0x200   : > { %v3139_v23 = vmul.f32 %v5426_v9, %v3129_v12  ;;  %v3007_v18 = vadd.f32 %v2970_v11, %v2782_v46  ;;  %v3101_v19 = vpop.f32.mrf.mxu1  ;;  %v2790_v9 = vadd.f32 %v5521_v47, %v2639_v26 }
 0x201   : > { %v4180_v1 = vpop.f32.mrf.mxu0 }
 0x202   : > { %v3761_v16 = vpack.c.bf16 %v3139_v23, %v3139_v23  ;;  %v3130_v63 = vadd.f32 %v3093_v10, %v3007_v18  ;;  %v4206_v29 = vpop.f32.mrf.mxu1 }
 0x203   : > { %v2975_v55 = vpop.f32.mrf.mxu0 }
 0x204   : > { %3717 = vst.msk [vmem:[%s5028_s7 + $0x78] sm:$0xf] %vm959_vm7, %v3761_v16  ;;  %v3140_v14 = vmul.f32 %v5435_v50, %v3130_v63  ;;  %v3008_v3 = vadd.f32 %v2975_v55, %v2787_v54  ;;  %v3106_v44 = vpop.f32.mrf.mxu1  ;;  %v2795_v50 = vadd.f32 %v5523_v39, %v2644_v60 }
 0x205   : > { %v4183_v37 = vpop.f32.mrf.mxu0 }
 0x206   : > { %v3762_v58 = vpack.c.bf16 %v3140_v14, %v3140_v14  ;;  %v3131_v61 = vadd.f32 %v3098_v35, %v3008_v3  ;;  %v4209_v24 = vpop.f32.mrf.mxu1  ;;  %v3227_v59 = vmul.f32 %v3140_v14, %v3140_v14  ;;  %v3201_v35 = vsel %vm970_vm8, %v3140_v14, 0.0 }
 0x207   : > { %v2978_v5 = vpop.f32.mrf.mxu0 }
 0x208   : > { %3718 = vst.msk [vmem:[%s5028_s7 + $0x7c] sm:$0xf] %vm959_vm7, %v3762_v58  ;;  %v3141_v62 = vmul.f32 %v5449_v57, %v3131_v61  ;;  %v3009_v7 = vadd.f32 %v2978_v5, %v2790_v9  ;;  %v3109_v22 = vpop.f32.mrf.mxu1  ;;  %v2798_v57 = vadd.f32 %v5525_v40, %v5532_v27  ;;  %v3226_v40 = vmul.f32 %v3139_v23, %v3139_v23 }
 0x209   : > { %v4184_v43 = vpop.f32.mrf.mxu0  ;;  %v3237_v11 = vsel %vm970_vm8, %v3227_v59, 0.0  ;;  %v2811_v58 = vadd.f32 %v5541_v53, %v5547_v36  ;;  %v4360_v36 = vld [vmem:[%s5721_s2 + $0x38] sm:$0xff] }
 0x20a   : > { %v3763_v15 = vpack.c.bf16 %v3141_v62, %v3141_v62  ;;  %v3132_v28 = vadd.f32 %v3101_v19, %v3009_v7  ;;  %v4210_v31 = vpop.f32.mrf.mxu1  ;;  %v3228_v2 = vmul.f32 %v3141_v62, %v3141_v62  ;;  %v3203_v19 = vsel %vm970_vm8, %v3141_v62, 0.0 }
 0x20b   : > { %v2983_v49 = vpop.f32.mrf.mxu0  ;;  %v3236_v29 = vsel %vm970_vm8, %v3226_v40, 0.0 }
 0x20c   : > { %3719 = vst.msk [vmem:[%s5028_s7 + $0x80] sm:$0xf] %vm959_vm7, %v3763_v15  ;;  %v3142_v47 = vmul.f32 %v5461_v4, %v3132_v28  ;;  %v3010_v26 = vadd.f32 %v2983_v49, %v2795_v50  ;;  %v3114_v34 = vpop.f32.mrf.mxu1  ;;  %v2803_v4 = vadd.f32 %v5527_v17, %v5539_v6  ;;  %v2806_v17 = vadd.f32 %v5537_v42, %v5543_v56  ;;  %v4359_v56 = vld [vmem:[%s5721_s2 + $0x30] sm:$0xff] }
 0x20d   : > { %v4187_v52 = vpop.f32.mrf.mxu0  ;;  %v3200_v6 = vsel %vm970_vm8, %v3139_v23, 0.0  ;;  %v3238_v61 = vadd.f32 %v3237_v11, %v3236_v29 }
 0x20e   : > { %v3764_v51 = vpack.c.bf16 %v3142_v47, %v3142_v47  ;;  %v3133_v13 = vadd.f32 %v3106_v44, %v3010_v26  ;;  %v4213_v41 = vpop.f32.mrf.mxu1  ;;  %v3229_v1 = vmul.f32 %v3142_v47, %v3142_v47  ;;  %v3202_v55 = vadd.f32 %v3201_v35, %v3200_v6 }
 0x20f   : > { %v2986_v33 = vpop.f32.mrf.mxu0  ;;  %v3239_v44 = vsel %vm970_vm8, %v3228_v2, 0.0  ;;  %v3205_v42 = vsel %vm970_vm8, %v3142_v47, 0.0 }
 0x210   : > { %3720 = vst.msk [vmem:[%s5028_s7 + $0x84] sm:$0xf] %vm959_vm7, %v3764_v51  ;;  %v3143_v39 = vmul.f32 %v5473_v38, %v3133_v13  ;;  %v3011_v60 = vadd.f32 %v2986_v33, %v2798_v57  ;;  %v3117_v10 = vpop.f32.mrf.mxu1  ;;  %v4358_v38 = vld [vmem:[%s5721_s2 + $0x28] sm:$0xff]  ;;  %v3204_v24 = vadd.f32 %v3203_v19, %v3202_v55  ;;  %v3241_v7 = vsel %vm970_vm8, %v3229_v1, 0.0 }
 0x211   : > { %v4188_v8 = vpop.f32.mrf.mxu0  ;;  %v3240_v28 = vadd.f32 %v3239_v44, %v3238_v61  ;;  %v2814_v57 = vadd.f32 %v5545_v45, %v5549_v48  ;;  %v4361_v48 = vld [vmem:[%s5721_s2 + $0x40] sm:$0xff]  ;;  %v4362_v19 = vld [vmem:[%s5721_s2 + $0x48] sm:$0xff] }
 0x212   : > { %v3765_v0 = vpack.c.bf16 %v3143_v39, %v3143_v39  ;;  %v3134_v25 = vadd.f32 %v3109_v22, %v3011_v60  ;;  %v4214_v20 = vpop.f32.mrf.mxu1  ;;  %v3230_v14 = vmul.f32 %v3143_v39, %v3143_v39  ;;  %v3207_v22 = vsel %vm970_vm8, %v3143_v39, 0.0 }
 0x213   : > { %v2991_v27 = vpop.f32.mrf.mxu0  ;;  %v3206_v31 = vadd.f32 %v3205_v42, %v3204_v24  ;;  %v3242_v51 = vadd.f32 %v3241_v7, %v3240_v28 }
 0x214   : > { %3721 = vst.msk [vmem:[%s5028_s7 + $0x88] sm:$0xf] %vm959_vm7, %v3765_v0  ;;  %v3144_v46 = vmul.f32 %v4358_v38, %v3134_v25  ;;  %v3012_v12 = vadd.f32 %v2991_v27, %v2803_v4  ;;  %v3122_v21 = vpop.f32.mrf.mxu1  ;;  %v3243_v49 = vsel %vm970_vm8, %v3230_v14, 0.0 }
 0x215   : > { %v4191_v18 = vpop.f32.mrf.mxu0  ;;  %v3208_v13 = vadd.f32 %v3207_v22, %v3206_v31  ;;  %v3244_v8 = vadd.f32 %v3243_v49, %v3242_v51 }
 0x216   : > { %v3766_v54 = vpack.c.bf16 %v3144_v46, %v3144_v46  ;;  %v3135_v16 = vadd.f32 %v3114_v34, %v3012_v12  ;;  %v4217_v63 = vpop.f32.mrf.mxu1  ;;  %v3231_v5 = vmul.f32 %v3144_v46, %v3144_v46  ;;  %v3209_v26 = vsel %vm970_vm8, %v3144_v46, 0.0 }
 0x217   : > { %v2994_v3 = vpop.f32.mrf.mxu0  ;;  %v3210_v4 = vadd.f32 %v3209_v26, %v3208_v13 }
 0x218   : > { %3722 = vst.msk [vmem:[%s5028_s7 + $0x8c] sm:$0xf] %vm959_vm7, %v3766_v54  ;;  %v3145_v23 = vmul.f32 %v4359_v56, %v3135_v16  ;;  %v3013_v37 = vadd.f32 %v2994_v3, %v2806_v17  ;;  %v3125_v9 = vpop.f32.mrf.mxu1  ;;  %v3245_v41 = vsel %vm970_vm8, %v3231_v5, 0.0 }
 0x219   : > { %v4192_v62 = vpop.f32.mrf.mxu0  ;;  %v3246_v27 = vadd.f32 %v3245_v41, %v3244_v8 }
 0x21a   : > { %v3767_v43 = vpack.c.bf16 %v3145_v23, %v3145_v23  ;;  %v3136_v50 = vadd.f32 %v3117_v10, %v3013_v37  ;;  %v4218_v15 = vpop.f32.mrf.mxu1  ;;  %v3232_v53 = vmul.f32 %v3145_v23, %v3145_v23  ;;  %v3211_v39 = vsel %vm970_vm8, %v3145_v23, 0.0 }
 0x21b   : > { %v2999_v47 = vpop.f32.mrf.mxu0  ;;  %v3212_v35 = vadd.f32 %v3211_v39, %v3210_v4 }
 0x21c   : > { %3723 = vst.msk [vmem:[%s5028_s7 + $0x90] sm:$0xf] %vm959_vm7, %v3767_v43  ;;  %v3146_v34 = vmul.f32 %v4360_v36, %v3136_v50  ;;  %v3014_v52 = vadd.f32 %v2999_v47, %v2811_v58  ;;  %v3247_v25 = vsel %vm970_vm8, %v3232_v53, 0.0 }
 0x21d   : > { %v4195_v33 = vpop.f32.mrf.mxu0  ;;  %v3248_v6 = vadd.f32 %v3247_v25, %v3246_v27 }
 0x21e   : > { %v3768_v60 = vpack.c.bf16 %v3146_v34, %v3146_v34  ;;  %v3233_v10 = vmul.f32 %v3146_v34, %v3146_v34  ;;  %v3137_v59 = vadd.f32 %v3122_v21, %v3014_v52  ;;  %v3213_v45 = vsel %vm970_vm8, %v3146_v34, 0.0 }
 0x21f   : > { %v3002_v0 = vpop.f32.mrf.mxu0  ;;  %v3214_v11 = vadd.f32 %v3213_v45, %v3212_v35 }
 0x220   : > { %3724 = vst.msk [vmem:[%s5028_s7 + $0x94] sm:$0xf] %vm959_vm7, %v3768_v60  ;;  %v3147_v20 = vmul.f32 %v4361_v48, %v3137_v59  ;;  %v3015_v40 = vadd.f32 %v3002_v0, %v2814_v57  ;;  %v3249_v2 = vsel %vm970_vm8, %v3233_v10, 0.0 }
 0x221   : > { %v4196_v38 = vpop.f32.mrf.mxu0  ;;  %v3250_v54 = vadd.f32 %v3249_v2, %v3248_v6 }
 0x222   : > { %v3769_v46 = vpack.c.bf16 %v3147_v20, %v3147_v20  ;;  %v3215_v12 = vsel %vm970_vm8, %v3147_v20, 0.0  ;;  %v3234_v21 = vmul.f32 %v3147_v20, %v3147_v20  ;;  %v3138_v17 = vadd.f32 %v3125_v9, %v3015_v40 }
 0x223   : > { %v3216_v16 = vadd.f32 %v3215_v12, %v3214_v11 }
 0x224   : > { %3725 = vst.msk [vmem:[%s5028_s7 + $0x98] sm:$0xf] %vm959_vm7, %v3769_v46  ;;  %v3251_v18 = vsel %vm970_vm8, %v3234_v21, 0.0  ;;  %v3148_v1 = vmul.f32 %v4362_v19, %v3138_v17 }
 0x225   : > { %v3252_v14 = vadd.f32 %v3251_v18, %v3250_v54 }
 0x226   : > { %v3770_v63 = vpack.c.bf16 %v3148_v1, %v3148_v1  ;;  %v3217_v29 = vsel %vm970_vm8, %v3148_v1, 0.0  ;;  %v3235_v55 = vmul.f32 %v3148_v1, %v3148_v1 }
 0x227   : > { %v3218_v3 = vadd.f32 %v3217_v29, %v3216_v16 }
 0x228   : > { %3726 = vst.msk [vmem:[%s5028_s7 + $0x9c] sm:$0xf] %vm959_vm7, %v3770_v63  ;;  %v3253_v44 = vsel %vm970_vm8, %v3235_v55, 0.0  ;;  %s274_s7 = scalar_lea.vmem [#allocation2], %s5628_s25 }
 0x229   : > { %v3219_v42 = vrot.slane %v3218_v3, 4  ;;  %v3254_v56 = vadd.f32 %v3253_v44, %v3252_v14  ;;  %s3294_s29 = sshll.u32 %s274_s7, 4  ;;  %s5641_s29 = int_to_ptr.vmem [resolvable:$true] %s3294_s29 }
 0x22a   : > { %s4363_s17 = scalar_lea.vmem %s5641_s29, 16  ;;  %p4370_p1 = scmp.lt.s32.totalorder %s5641_s29, %s4368_s11 }
 0x22b   : > { %v3220_v23 = vadd.f32 %v3219_v42, %v3218_v3  ;;  %v3255_v37 = vrot.slane %v3254_v56, 4  ;;  %p4364_p12 = scmp.ne.s32.totalorder %s5641_s29, %s4363_s17  ;;  %p4371_p2 = scmp.lt.s32.totalorder %s4369_s10, %s4363_s17 }
 0x22d   : > { %v3221_v9 = vrot.slane %v3220_v23, 2  ;;  %v3256_v58 = vadd.f32 %v3255_v37, %v3254_v56  ;;  %p4365_p13 = pnand %p4364_p12, %p4545_p4  ;;  %p4372_p3 = por %p4371_p2, %p4370_p1 }
 0x22f   : > { %v3222_v61 = vadd.f32 %v3221_v9, %v3220_v23  ;;  %v3257_v24 = vrot.slane %v3256_v58, 2  ;;  %p4366_p0 = pneg %p4365_p13 }
 0x231   : > { %v3223_v5 = vrot.slane %v3222_v61, 1  ;;  %v3258_v62 = vadd.f32 %v3257_v24, %v3256_v58  ;;  %p4373_p5 = pnand %p4372_p3, %p4366_p0 }
 0x233   : > { %v3224_v7 = vadd.f32 %v3223_v5, %v3222_v61  ;;  %v3259_v22 = vrot.slane %v3258_v62, 1 }
 0x235   : > { %v3225_v43 = vadd.f32 %v3224_v7, %v5530_v32  ;;  %v3260_v50 = vadd.f32 %v3259_v22, %v3258_v62 }
 0x237   : > { %3263 = vst.msk [vmem:[%s274_s7] sm:$0x1] %vm3262_vm10, %v3225_v43  ;;  %v3261_v15 = vadd.f32 %v3260_v50, %v5535_v30 }
 0x238   : > { %4376 = shalt.err (!%p4373_p5)
}
 0x239   : > { %s4377_s27 = scalar_lea.hbm %s5639_s13, 16  ;;  %s4381_s21 = scalar_lea.hbm %s5723_s4, 32 }
 0x23a   : > { %p4378_p6 = scmp.ne.s32.totalorder %s5639_s13, %s4377_s27  ;;  %p4382_p10 = scmp.lt.s32.totalorder %s5639_s13, %s5723_s4 }
 0x23b   : > { %p4383_p11 = scmp.lt.s32.totalorder %s4381_s21, %s4377_s27 }
 0x23c   : > { %p4379_p7 = pnand %p4378_p6, %p4545_p4 }
 0x23d   : > { %p4384_p12 = por %p4383_p11, %p4382_p10 }
 0x23e   : > { %p4380_p9 = pneg %p4379_p7 }
 0x240   : > { %p4385_p13 = pnand %p4384_p12, %p4380_p9 }
 0x242   : > { %4388 = shalt.err (!%p4385_p13)
}
 0x243   : > { %4221 = dma.vmem_to_hbm [thread:$0]  (%p4545_p4), %s5641_s29, 16, %s5639_s13, %s3274_s16   ;;  %3264 = vst.msk [vmem:[%s280_s8] sm:$0x1] %vm3262_vm10, %v3261_v15 }
 0x244   : > { %s3278_s17 = scalar_lea.sflag [#allocation5], %s5628_s25  ;;  %s4389_s11 = scalar_lea.vmem %s5650_s9, 16 }
 0x245   : > { %p4390_p0 = scmp.ne.s32.totalorder %s5650_s9, %s4389_s11  ;;  %s4474_s10 = smov [#allocation4]  }
 0x246   : > { %s4393_s27 = sshll.u32 %s4474_s10, 4  ;;  %s4394_s27 = int_to_ptr.vmem [resolvable:$false] %s4393_s27 }
 0x247   : > { %p4391_p1 = pnand %p4390_p0, %p4545_p4  ;;  %s4395_s7 = scalar_lea.vmem %s4394_s27, 32 }
 0x248   : > { %p4396_p3 = scmp.lt.s32.totalorder %s5650_s9, %s4394_s27  ;;  %p4397_p5 = scmp.lt.s32.totalorder %s4395_s7, %s4389_s11 }
 0x249   : > { %p4392_p2 = pneg %p4391_p1 }
 0x24a   : > { %p4398_p6 = por %p4397_p5, %p4396_p3 }
 0x24c   : > { %p4399_p7 = pnand %p4398_p6, %p4392_p2 }
 0x24e   : > { %4402 = shalt.err (!%p4399_p7)
}
 0x24f   : > { %s4403_s29 = scalar_lea.hbm %s5648_s14, 16  ;;  %s4407_s13 = scalar_lea.hbm %s5724_s5, 32 }
 0x250   : > { %p4404_p9 = scmp.ne.s32.totalorder %s5648_s14, %s4403_s29  ;;  %p4408_p12 = scmp.lt.s32.totalorder %s5648_s14, %s5724_s5 }
 0x251   : > { %p4409_p13 = scmp.lt.s32.totalorder %s4407_s13, %s4403_s29 }
 0x252   : > { %p4405_p10 = pnand %p4404_p9, %p4545_p4 }
 0x253   : > { %p4410_p0 = por %p4409_p13, %p4408_p12 }
 0x254   : > { %p4406_p11 = pneg %p4405_p10 }
 0x256   : > { %p4411_p1 = pnand %p4410_p0, %p4406_p11 }
 0x258   : > { %4414 = shalt.err (!%p4411_p1)
}
 0x259   : > { %4222 = dma.vmem_to_hbm [thread:$0]  (%p4545_p4), %s5650_s9, 16, %s5648_s14, %s3278_s17  }
 0x25a PF: > { %p4232_p2 = scmp.ge.s32.totalorder %s4469_s23, 2  ;;  %s3331_s21 = sand.u32 1, %s4449_s18  }
 0x25b   : > { %s3332_s15 = scalar_lea.sflag [#allocation3], %s3331_s21 }
 0x25c   : > { %p4226_p3 = pnand %p4232_p2, %p4552_p8 }
 0x25e   : > { %p4227_p5 = pneg %p4226_p3 }
 0x260   : > { %4440 = dma.done.wait (%p4227_p5), %s3332_s15, 16  }
 0x261   : > { %4442 = vsyncadd (%p4227_p5), %s3332_s15, 4294967280  ;;  %s3340_s24 = scalar_lea.sflag [#allocation5], %s3331_s21 }
 0x262   : > { %4444 = dma.done.wait (%p4227_p5), %s3340_s24, 16  }
 0x263   : > { %4446 = vsyncadd (%p4227_p5), %s3340_s24, 4294967280  ;;  %s22_s23 = sadd.s32 1, %s4469_s23   ;;  %s5727_s18 = smov %s4453_s19 }
 0x264   : > { %p19_p6 = scmp.ge.s32.totalorder %s22_s23, 4   ;;  %s5728_s19 = smov %s4457_s20 }
 0x265   : > { %s5729_s20 = smov %s4558_s6  ;;  %s5730_s21 = smov %s4465_s22 }
 0x266   : > { %s5731_s22 = smov %s5733_s26  ;;  %21 = sbr.rel (!%p19_p6) target bundleno = 6 (0x6), region = 120 }
 0x26b   :  { %3344 = vsyncpa [#allocation3], 1 }
 0x26c   :  { %3346 = vsyncpa [#allocation3 + $0x1], 1 }
 0x26d   :  { %3347 = vsyncpa [#allocation5], 1 }
 0x26e   :  { %3349 = vsyncpa [#allocation5 + $0x1], 1 }

</bundles_post_ra>
